<compile_context>
chip_gen: v6e
topology: v6e:2x2x1
jax: 0.10.0
libtpu: 0.0.40
codegen_flags: <defaults>
</compile_context>

<pallas_src>
import functools

import jax
import jax.numpy as jnp
from jax.experimental import pallas as pl
from jax.experimental.pallas import tpu as pltpu


# ------------------------------ Pallas kernel --------------------------------

def _down_kernel(xr_ref, w1_ref, b1_ref, g1_ref, bt1_ref,
                 w2_ref, b2_ref, g2_ref, bt2_ref,
                 o_ref, pad1_ref, pad2_ref,
                 *, N, H2, W2, Cin, Cout, eps):
    # xr_ref : (N, 2*H2, W2, 2*Cin)  input with W-pairs folded into lanes
    # w1_ref : (9*Cin,  Cout)        conv1 weight, im2col layout
    # w2_ref : (9*Cout, Cout)        conv2 weight, im2col layout
    # b*_ref, g*_ref, bt*_ref : (1, C) conv bias, BN gamma, BN beta
    # o_ref  : (N, H2, W2, Cout)
    # pad1_ref : VMEM (N, H2+2, W2+2, Cin)   halo scratch for conv1
    # pad2_ref : VMEM (N, H2+2, W2+2, Cout)  halo scratch for conv2
    f32 = jnp.float32
    M = N * H2 * W2

    # ---------------- MaxPool2d(kernel=2, stride=2) ----------------
    xr = xr_ref[...].astype(f32)                              # (N, 2H2, W2, 2Cin)
    wmax = jnp.maximum(xr[..., :Cin], xr[..., Cin:])          # max over W pair
    wmax = wmax.reshape(N, H2, 2, W2, Cin)
    pooled = jnp.maximum(wmax[:, :, 0], wmax[:, :, 1])        # (N, H2, W2, Cin)

    # ------------- fused Conv3x3(pad=1) + train-BN + ReLU -------------
    def conv_bn_relu(act, pad_ref, w_ref, b_ref, g_ref, bt_ref, c_in):
        # Build padded activation in VMEM scratch (in-kernel halo, no jnp.pad).
        pad_ref[...] = jnp.zeros((N, H2 + 2, W2 + 2, c_in), f32)
        pad_ref[:, 1:H2 + 1, 1:W2 + 1, :] = act

        # im2col: concatenate the 9 shifted windows along the lane axis.
        cols = []
        for kh in range(3):
            for kw in range(3):
                cols.append(
                    pad_ref[:, kh:kh + H2, kw:kw + W2, :].reshape(M, c_in))
        patches = jnp.concatenate(cols, axis=-1)              # (M, 9*c_in)

        # Single MXU matmul (contraction depth 9*c_in), f32 accumulation.
        acc = jnp.dot(patches, w_ref[...],
                      preferred_element_type=f32)             # (M, Cout)
        acc = acc + b_ref[...]                                # (1, Cout) bcast

        # Training-mode BatchNorm folded to one scale/shift FMA.
        s = jnp.sum(acc, axis=0, keepdims=True)               # (1, Cout)
        ss = jnp.sum(acc * acc, axis=0, keepdims=True)        # (1, Cout)
        mean = s * (1.0 / M)
        var = jnp.maximum(ss * (1.0 / M) - mean * mean, 0.0)  # biased variance
        scale = g_ref[...] * jax.lax.rsqrt(var + eps)
        shift = bt_ref[...] - mean * scale
        return jnp.maximum(acc * scale + shift, 0.0)          # ReLU

    h1 = conv_bn_relu(pooled, pad1_ref, w1_ref, b1_ref, g1_ref, bt1_ref, Cin)
    h1 = h1.reshape(N, H2, W2, Cout)
    h2 = conv_bn_relu(h1, pad2_ref, w2_ref, b2_ref, g2_ref, bt2_ref, Cout)

    o_ref[...] = h2.reshape(N, H2, W2, Cout).astype(o_ref.dtype)


# --------------------------------- wrapper -----------------------------------

def down_forward(x_nchw, params, *, eps=1e-5):
    """PyTorch `down(in_plane, out_plane)` forward.

    x_nchw: (N, Cin, H, W) with H, W even  ->  (N, Cout, H//2, W//2)
    params: ((w1, b1, g1, bt1), (w2, b2, g2, bt2)) with w in HWIO layout.
    """
    (w1, b1, g1, bt1), (w2, b2, g2, bt2) = params
    N, Cin, H, W = x_nchw.shape
    Cout = w1.shape[-1]
    H2, W2 = H // 2, W // 2

    x = jnp.transpose(x_nchw, (0, 2, 3, 1))            # NCHW -> NHWC
    # Free metadata reshape: fold the W pair into the lane axis so the kernel's
    # maxpool is plain elementwise max (no strided loads needed in-kernel).
    xr = x.reshape(N, H, W2, 2 * Cin)

    # Weights in im2col layout: (3,3,Cin,Cout) -> (9*Cin, Cout).
    w1_2d = w1.reshape(9 * Cin, Cout)
    w2_2d = w2.reshape(9 * Cout, Cout)

    kernel = functools.partial(_down_kernel, N=N, H2=H2, W2=W2,
                               Cin=Cin, Cout=Cout, eps=eps)

    out = pl.pallas_call(
        kernel,
        out_shape=jax.ShapeDtypeStruct((N, H2, W2, Cout), jnp.float32),
        grid=(1,),
        in_specs=[
            pl.BlockSpec((N, H, W2, 2 * Cin), lambda i: (0, 0, 0, 0)),
            pl.BlockSpec((9 * Cin, Cout), lambda i: (0, 0)),
            pl.BlockSpec((1, Cout), lambda i: (0, 0)),
            pl.BlockSpec((1, Cout), lambda i: (0, 0)),
            pl.BlockSpec((1, Cout), lambda i: (0, 0)),
            pl.BlockSpec((9 * Cout, Cout), lambda i: (0, 0)),
            pl.BlockSpec((1, Cout), lambda i: (0, 0)),
            pl.BlockSpec((1, Cout), lambda i: (0, 0)),
            pl.BlockSpec((1, Cout), lambda i: (0, 0)),
        ],
        out_specs=pl.BlockSpec((N, H2, W2, Cout), lambda i: (0, 0, 0, 0)),
        scratch_shapes=[
            pltpu.VMEM((N, H2 + 2, W2 + 2, Cin), jnp.float32),
            pltpu.VMEM((N, H2 + 2, W2 + 2, Cout), jnp.float32),
        ],
        compiler_params=pltpu.CompilerParams(
            dimension_semantics=("arbitrary",)),
    )(xr, w1_2d, b1.reshape(1, -1), g1.reshape(1, -1), bt1.reshape(1, -1),
      w2_2d, b2.reshape(1, -1), g2.reshape(1, -1), bt2.reshape(1, -1))

    return jnp.transpose(out, (0, 3, 1, 2))             # NHWC -> NCHW


# --------------------------------- params ------------------------------------

def init_down_params(key, in_plane, out_plane):
    """PyTorch-style uniform init for the two conv layers; BN gamma=1, beta=0."""
    params = []
    cfg = [(in_plane, out_plane), (out_plane, out_plane)]
    for li, (cin, cout) in enumerate(cfg):
        wk, bk = jax.random.split(jax.random.fold_in(key, li))
        bound = 1.0 / (cin * 9) ** 0.5
        w = jax.random.uniform(wk, (3, 3, cin, cout), jnp.float32,
                               -bound, bound)            # HWIO
        b = jax.random.uniform(bk, (cout,), jnp.float32, -bound, bound)
        gamma = jnp.ones((cout,), jnp.float32)
        beta = jnp.zeros((cout,), jnp.float32)
        params.append((w, b, gamma, beta))
    return params


# ----------------------------- pure-JAX reference -----------------------------

def _conv_bn_relu_ref(x, w, b, gamma, beta, eps=1e-5):
    out = jax.lax.conv_general_dilated(
        x, w, window_strides=(1, 1), padding=[(1, 1), (1, 1)],
        dimension_numbers=('NHWC', 'HWIO', 'NHWC'),
        precision=jax.lax.Precision.HIGHEST) + b[None, None, None, :]
    mean = out.mean(axis=(0, 1, 2), keepdims=True)
    var = ((out - mean) ** 2).mean(axis=(0, 1, 2), keepdims=True)
    out = (out - mean) / jnp.sqrt(var + eps) * gamma + beta
    return jnp.maximum(out, 0.0)


def down_ref(x_nchw, params):
    x = jnp.transpose(x_nchw, (0, 2, 3, 1))
    N, H, W, C = x.shape
    x = x.reshape(N, H // 2, 2, W // 2, 2, C).max(axis=(2, 4))   # MaxPool2d(2,2)
    for (w, b, g, bt) in params:
        x = _conv_bn_relu_ref(x, w, b, g, bt)
    return jnp.transpose(x, (0, 3, 1, 2))


# ----------------------------------- main --------------------------------------

if __name__ == "__main__":
    key = jax.random.PRNGKey(0)
    xkey, pkey = jax.random.split(key)

    N, Cin, H, W = 2, 4, 16, 16          # small shapes per the module spec
    Cout = 32
    x = jax.random.normal(xkey, (N, Cin, H, W), jnp.float32)   # NCHW input
    params = init_down_params(pkey, Cin, Cout)

    out = jax.jit(down_forward)(x, params)
    out = jax.block_until_ready(out)
    assert out.shape == (N, Cout, H // 2, W // 2), out.shape

    ref = down_ref(x, params)
    max_err = float(jnp.max(jnp.abs(out - ref)))
    assert jnp.allclose(out, ref, atol=2e-3, rtol=2e-3), f"max abs err = {max_err}"

    print("KERNEL_OK")
</pallas_src>

<mosaic_0001>
module attributes {stable_mosaic.version = 11 : i64} {
  func.func @_down_kernel(%arg0: i32, %arg1: memref<2x16x8x8xf32, #tpu.memory_space<vmem>>, %arg2: memref<36x32xf32, #tpu.memory_space<vmem>>, %arg3: memref<1x32xf32, #tpu.memory_space<vmem>>, %arg4: memref<1x32xf32, #tpu.memory_space<vmem>>, %arg5: memref<1x32xf32, #tpu.memory_space<vmem>>, %arg6: memref<288x32xf32, #tpu.memory_space<vmem>>, %arg7: memref<1x32xf32, #tpu.memory_space<vmem>>, %arg8: memref<1x32xf32, #tpu.memory_space<vmem>>, %arg9: memref<1x32xf32, #tpu.memory_space<vmem>>, %arg10: memref<2x8x8x32xf32, #tpu.memory_space<vmem>>, %arg11: memref<2x10x10x4xf32, #tpu.memory_space<vmem>>, %arg12: memref<2x10x10x32xf32, #tpu.memory_space<vmem>>) attributes {dimension_semantics = [#tpu.dimension_semantics<arbitrary>], iteration_bounds = array<i64: 1>, scalar_prefetch = 0 : i64, scratch_operands = 2 : i64, tpu.core_type = #tpu.core_type<tc>, window_params = [{pipeline_mode = #tpu.pipeline_mode<synchronous>, transform_indices = @transform_0, window_bounds = array<i64: 2, 16, 8, 8>}, {pipeline_mode = #tpu.pipeline_mode<synchronous>, transform_indices = @transform_1, window_bounds = array<i64: 36, 32>}, {pipeline_mode = #tpu.pipeline_mode<synchronous>, transform_indices = @transform_2, window_bounds = array<i64: 1, 32>}, {pipeline_mode = #tpu.pipeline_mode<synchronous>, transform_indices = @transform_3, window_bounds = array<i64: 1, 32>}, {pipeline_mode = #tpu.pipeline_mode<synchronous>, transform_indices = @transform_4, window_bounds = array<i64: 1, 32>}, {pipeline_mode = #tpu.pipeline_mode<synchronous>, transform_indices = @transform_5, window_bounds = array<i64: 288, 32>}, {pipeline_mode = #tpu.pipeline_mode<synchronous>, transform_indices = @transform_6, window_bounds = array<i64: 1, 32>}, {pipeline_mode = #tpu.pipeline_mode<synchronous>, transform_indices = @transform_7, window_bounds = array<i64: 1, 32>}, {pipeline_mode = #tpu.pipeline_mode<synchronous>, transform_indices = @transform_8, window_bounds = array<i64: 1, 32>}, {pipeline_mode = #tpu.pipeline_mode<synchronous>, transform_indices = @transform_9, window_bounds = array<i64: 2, 8, 8, 32>}]} {
    %c0 = arith.constant 0 : index
    %c0_0 = arith.constant 0 : index
    %c0_1 = arith.constant 0 : index
    %c0_2 = arith.constant 0 : index
    %0 = vector.load %arg1[%c0, %c0_0, %c0_1, %c0_2] : memref<2x16x8x8xf32, #tpu.memory_space<vmem>>, vector<2x16x8x8xf32>
    %1 = vector.extract_strided_slice %0 {offsets = [0, 0, 0, 0], sizes = [2, 16, 8, 4], strides = [1, 1, 1, 1]} : vector<2x16x8x8xf32> to vector<2x16x8x4xf32>
    %2 = vector.extract_strided_slice %0 {offsets = [0, 0, 0, 4], sizes = [2, 16, 8, 4], strides = [1, 1, 1, 1]} : vector<2x16x8x8xf32> to vector<2x16x8x4xf32>
    %3 = arith.maximumf %1, %2 : vector<2x16x8x4xf32>
    %4 = vector.shape_cast %3 : vector<2x16x8x4xf32> to vector<2x8x2x8x4xf32>
    %5 = vector.extract_strided_slice %4 {offsets = [0, 0, 0, 0, 0], sizes = [2, 8, 1, 8, 4], strides = [1, 1, 1, 1, 1]} : vector<2x8x2x8x4xf32> to vector<2x8x1x8x4xf32>
    %6 = vector.shape_cast %5 : vector<2x8x1x8x4xf32> to vector<2x8x8x4xf32>
    %7 = vector.extract_strided_slice %4 {offsets = [0, 0, 1, 0, 0], sizes = [2, 8, 1, 8, 4], strides = [1, 1, 1, 1, 1]} : vector<2x8x2x8x4xf32> to vector<2x8x1x8x4xf32>
    %8 = vector.shape_cast %7 : vector<2x8x1x8x4xf32> to vector<2x8x8x4xf32>
    %9 = arith.maximumf %6, %8 : vector<2x8x8x4xf32>
    %cst = arith.constant 0.000000e+00 : f32
    %10 = vector.broadcast %cst : f32 to vector<2x10x10x4xf32>
    %c0_3 = arith.constant 0 : index
    %c0_4 = arith.constant 0 : index
    %c0_5 = arith.constant 0 : index
    %c0_6 = arith.constant 0 : index
    %11 = vector.load %arg11[%c0_3, %c0_4, %c0_5, %c0_6] : memref<2x10x10x4xf32, #tpu.memory_space<vmem>>, vector<2x10x10x4xf32>
    tpu.vector_store %arg11[%c0_3, %c0_4, %c0_5, %c0_6], %10 {strides = array<i32>} : memref<2x10x10x4xf32, #tpu.memory_space<vmem>>, vector<2x10x10x4xf32>,
    %c0_7 = arith.constant 0 : index
    %c1 = arith.constant 1 : index
    %c1_8 = arith.constant 1 : index
    %c0_9 = arith.constant 0 : index
    %12 = vector.load %arg11[%c0_7, %c1, %c1_8, %c0_9] : memref<2x10x10x4xf32, #tpu.memory_space<vmem>>, vector<2x8x8x4xf32>
    tpu.vector_store %arg11[%c0_7, %c1, %c1_8, %c0_9], %9 {strides = array<i32>} : memref<2x10x10x4xf32, #tpu.memory_space<vmem>>, vector<2x8x8x4xf32>,
    %c0_10 = arith.constant 0 : index
    %c0_11 = arith.constant 0 : index
    %c0_12 = arith.constant 0 : index
    %c0_13 = arith.constant 0 : index
    %13 = vector.load %arg11[%c0_10, %c0_11, %c0_12, %c0_13] : memref<2x10x10x4xf32, #tpu.memory_space<vmem>>, vector<2x8x8x4xf32>
    %14 = vector.shape_cast %13 : vector<2x8x8x4xf32> to vector<128x4xf32>
    %c0_14 = arith.constant 0 : index
    %c0_15 = arith.constant 0 : index
    %c1_16 = arith.constant 1 : index
    %c0_17 = arith.constant 0 : index
    %15 = vector.load %arg11[%c0_14, %c0_15, %c1_16, %c0_17] : memref<2x10x10x4xf32, #tpu.memory_space<vmem>>, vector<2x8x8x4xf32>
    %16 = vector.shape_cast %15 : vector<2x8x8x4xf32> to vector<128x4xf32>
    %c0_18 = arith.constant 0 : index
    %c0_19 = arith.constant 0 : index
    %c2 = arith.constant 2 : index
    %c0_20 = arith.constant 0 : index
    %17 = vector.load %arg11[%c0_18, %c0_19, %c2, %c0_20] : memref<2x10x10x4xf32, #tpu.memory_space<vmem>>, vector<2x8x8x4xf32>
    %18 = vector.shape_cast %17 : vector<2x8x8x4xf32> to vector<128x4xf32>
    %c0_21 = arith.constant 0 : index
    %c1_22 = arith.constant 1 : index
    %c0_23 = arith.constant 0 : index
    %c0_24 = arith.constant 0 : index
    %19 = vector.load %arg11[%c0_21, %c1_22, %c0_23, %c0_24] : memref<2x10x10x4xf32, #tpu.memory_space<vmem>>, vector<2x8x8x4xf32>
    %20 = vector.shape_cast %19 : vector<2x8x8x4xf32> to vector<128x4xf32>
    %c0_25 = arith.constant 0 : index
    %c1_26 = arith.constant 1 : index
    %c1_27 = arith.constant 1 : index
    %c0_28 = arith.constant 0 : index
    %21 = vector.load %arg11[%c0_25, %c1_26, %c1_27, %c0_28] : memref<2x10x10x4xf32, #tpu.memory_space<vmem>>, vector<2x8x8x4xf32>
    %22 = vector.shape_cast %21 : vector<2x8x8x4xf32> to vector<128x4xf32>
    %c0_29 = arith.constant 0 : index
    %c1_30 = arith.constant 1 : index
    %c2_31 = arith.constant 2 : index
    %c0_32 = arith.constant 0 : index
    %23 = vector.load %arg11[%c0_29, %c1_30, %c2_31, %c0_32] : memref<2x10x10x4xf32, #tpu.memory_space<vmem>>, vector<2x8x8x4xf32>
    %24 = vector.shape_cast %23 : vector<2x8x8x4xf32> to vector<128x4xf32>
    %c0_33 = arith.constant 0 : index
    %c2_34 = arith.constant 2 : index
    %c0_35 = arith.constant 0 : index
    %c0_36 = arith.constant 0 : index
    %25 = vector.load %arg11[%c0_33, %c2_34, %c0_35, %c0_36] : memref<2x10x10x4xf32, #tpu.memory_space<vmem>>, vector<2x8x8x4xf32>
    %26 = vector.shape_cast %25 : vector<2x8x8x4xf32> to vector<128x4xf32>
    %c0_37 = arith.constant 0 : index
    %c2_38 = arith.constant 2 : index
    %c1_39 = arith.constant 1 : index
    %c0_40 = arith.constant 0 : index
    %27 = vector.load %arg11[%c0_37, %c2_38, %c1_39, %c0_40] : memref<2x10x10x4xf32, #tpu.memory_space<vmem>>, vector<2x8x8x4xf32>
    %28 = vector.shape_cast %27 : vector<2x8x8x4xf32> to vector<128x4xf32>
    %c0_41 = arith.constant 0 : index
    %c2_42 = arith.constant 2 : index
    %c2_43 = arith.constant 2 : index
    %c0_44 = arith.constant 0 : index
    %29 = vector.load %arg11[%c0_41, %c2_42, %c2_43, %c0_44] : memref<2x10x10x4xf32, #tpu.memory_space<vmem>>, vector<2x8x8x4xf32>
    %30 = vector.shape_cast %29 : vector<2x8x8x4xf32> to vector<128x4xf32>
    %31 = tpu.concatenate %14, %16, %18, %20, %22, %24, %26, %28, %30 in 1 : vector<128x4xf32>, vector<128x4xf32>, vector<128x4xf32>, vector<128x4xf32>, vector<128x4xf32>, vector<128x4xf32>, vector<128x4xf32>, vector<128x4xf32>, vector<128x4xf32> -> vector<128x36xf32>
    %c0_45 = arith.constant 0 : index
    %c0_46 = arith.constant 0 : index
    %32 = vector.load %arg2[%c0_45, %c0_46] : memref<36x32xf32, #tpu.memory_space<vmem>>, vector<36x32xf32>
    %cst_47 = arith.constant dense<0.000000e+00> : vector<128x32xf32>
    %33 = tpu.matmul %31, %32, %cst_47 {dimension_numbers = #tpu.dot_dimension_numbers<[1], [0], [0], [1], [0, 0, 1, 1], [], []>} : vector<128x36xf32>, vector<36x32xf32>, vector<128x32xf32> -> vector<128x32xf32>
    %c0_48 = arith.constant 0 : index
    %c0_49 = arith.constant 0 : index
    %34 = vector.load %arg3[%c0_48, %c0_49] : memref<1x32xf32, #tpu.memory_space<vmem>>, vector<1x32xf32>
    %35 = vector.broadcast %34 : vector<1x32xf32> to vector<128x32xf32>
    %36 = arith.addf %33, %35 : vector<128x32xf32>
    %cst_50 = arith.constant dense<0.000000e+00> : vector<32xf32>
    %37 = vector.multi_reduction <add>, %36, %cst_50 [0] : vector<128x32xf32> to vector<32xf32>
    %38 = vector.shape_cast %37 : vector<32xf32> to vector<1x32xf32>
    %39 = arith.mulf %36, %36 : vector<128x32xf32>
    %cst_51 = arith.constant dense<0.000000e+00> : vector<32xf32>
    %40 = vector.multi_reduction <add>, %39, %cst_51 [0] : vector<128x32xf32> to vector<32xf32>
    %41 = vector.shape_cast %40 : vector<32xf32> to vector<1x32xf32>
    %cst_52 = arith.constant 7.812500e-03 : f32
    %42 = vector.broadcast %cst_52 : f32 to vector<1x32xf32>
    %43 = arith.mulf %38, %42 : vector<1x32xf32>
    %cst_53 = arith.constant 7.812500e-03 : f32
    %44 = vector.broadcast %cst_53 : f32 to vector<1x32xf32>
    %45 = arith.mulf %41, %44 : vector<1x32xf32>
    %46 = arith.mulf %43, %43 : vector<1x32xf32>
    %47 = arith.subf %45, %46 : vector<1x32xf32>
    %cst_54 = arith.constant 0.000000e+00 : f32
    %48 = vector.broadcast %cst_54 : f32 to vector<1x32xf32>
    %49 = arith.maximumf %47, %48 : vector<1x32xf32>
    %c0_55 = arith.constant 0 : index
    %c0_56 = arith.constant 0 : index
    %50 = vector.load %arg4[%c0_55, %c0_56] : memref<1x32xf32, #tpu.memory_space<vmem>>, vector<1x32xf32>
    %cst_57 = arith.constant 9.99999974E-6 : f32
    %51 = vector.broadcast %cst_57 : f32 to vector<1x32xf32>
    %52 = arith.addf %49, %51 : vector<1x32xf32>
    %53 = math.rsqrt %52 : vector<1x32xf32>
    %54 = arith.mulf %50, %53 : vector<1x32xf32>
    %c0_58 = arith.constant 0 : index
    %c0_59 = arith.constant 0 : index
    %55 = vector.load %arg5[%c0_58, %c0_59] : memref<1x32xf32, #tpu.memory_space<vmem>>, vector<1x32xf32>
    %56 = arith.mulf %43, %54 : vector<1x32xf32>
    %57 = arith.subf %55, %56 : vector<1x32xf32>
    %58 = vector.broadcast %54 : vector<1x32xf32> to vector<128x32xf32>
    %59 = arith.mulf %36, %58 : vector<128x32xf32>
    %60 = vector.broadcast %57 : vector<1x32xf32> to vector<128x32xf32>
    %61 = arith.addf %59, %60 : vector<128x32xf32>
    %cst_60 = arith.constant 0.000000e+00 : f32
    %62 = vector.broadcast %cst_60 : f32 to vector<128x32xf32>
    %63 = arith.maximumf %61, %62 : vector<128x32xf32>
    %64 = vector.shape_cast %63 : vector<128x32xf32> to vector<2x8x8x32xf32>
    %cst_61 = arith.constant 0.000000e+00 : f32
    %65 = vector.broadcast %cst_61 : f32 to vector<2x10x10x32xf32>
    %c0_62 = arith.constant 0 : index
    %c0_63 = arith.constant 0 : index
    %c0_64 = arith.constant 0 : index
    %c0_65 = arith.constant 0 : index
    %66 = vector.load %arg12[%c0_62, %c0_63, %c0_64, %c0_65] : memref<2x10x10x32xf32, #tpu.memory_space<vmem>>, vector<2x10x10x32xf32>
    tpu.vector_store %arg12[%c0_62, %c0_63, %c0_64, %c0_65], %65 {strides = array<i32>} : memref<2x10x10x32xf32, #tpu.memory_space<vmem>>, vector<2x10x10x32xf32>,
    %c0_66 = arith.constant 0 : index
    %c1_67 = arith.constant 1 : index
    %c1_68 = arith.constant 1 : index
    %c0_69 = arith.constant 0 : index
    %67 = vector.load %arg12[%c0_66, %c1_67, %c1_68, %c0_69] : memref<2x10x10x32xf32, #tpu.memory_space<vmem>>, vector<2x8x8x32xf32>
    tpu.vector_store %arg12[%c0_66, %c1_67, %c1_68, %c0_69], %64 {strides = array<i32>} : memref<2x10x10x32xf32, #tpu.memory_space<vmem>>, vector<2x8x8x32xf32>,
    %c0_70 = arith.constant 0 : index
    %c0_71 = arith.constant 0 : index
    %c0_72 = arith.constant 0 : index
    %c0_73 = arith.constant 0 : index
    %68 = vector.load %arg12[%c0_70, %c0_71, %c0_72, %c0_73] : memref<2x10x10x32xf32, #tpu.memory_space<vmem>>, vector<2x8x8x32xf32>
    %69 = vector.shape_cast %68 : vector<2x8x8x32xf32> to vector<128x32xf32>
    %c0_74 = arith.constant 0 : index
    %c0_75 = arith.constant 0 : index
    %c1_76 = arith.constant 1 : index
    %c0_77 = arith.constant 0 : index
    %70 = vector.load %arg12[%c0_74, %c0_75, %c1_76, %c0_77] : memref<2x10x10x32xf32, #tpu.memory_space<vmem>>, vector<2x8x8x32xf32>
    %71 = vector.shape_cast %70 : vector<2x8x8x32xf32> to vector<128x32xf32>
    %c0_78 = arith.constant 0 : index
    %c0_79 = arith.constant 0 : index
    %c2_80 = arith.constant 2 : index
    %c0_81 = arith.constant 0 : index
    %72 = vector.load %arg12[%c0_78, %c0_79, %c2_80, %c0_81] : memref<2x10x10x32xf32, #tpu.memory_space<vmem>>, vector<2x8x8x32xf32>
    %73 = vector.shape_cast %72 : vector<2x8x8x32xf32> to vector<128x32xf32>
    %c0_82 = arith.constant 0 : index
    %c1_83 = arith.constant 1 : index
    %c0_84 = arith.constant 0 : index
    %c0_85 = arith.constant 0 : index
    %74 = vector.load %arg12[%c0_82, %c1_83, %c0_84, %c0_85] : memref<2x10x10x32xf32, #tpu.memory_space<vmem>>, vector<2x8x8x32xf32>
    %75 = vector.shape_cast %74 : vector<2x8x8x32xf32> to vector<128x32xf32>
    %c0_86 = arith.constant 0 : index
    %c1_87 = arith.constant 1 : index
    %c1_88 = arith.constant 1 : index
    %c0_89 = arith.constant 0 : index
    %76 = vector.load %arg12[%c0_86, %c1_87, %c1_88, %c0_89] : memref<2x10x10x32xf32, #tpu.memory_space<vmem>>, vector<2x8x8x32xf32>
    %77 = vector.shape_cast %76 : vector<2x8x8x32xf32> to vector<128x32xf32>
    %c0_90 = arith.constant 0 : index
    %c1_91 = arith.constant 1 : index
    %c2_92 = arith.constant 2 : index
    %c0_93 = arith.constant 0 : index
    %78 = vector.load %arg12[%c0_90, %c1_91, %c2_92, %c0_93] : memref<2x10x10x32xf32, #tpu.memory_space<vmem>>, vector<2x8x8x32xf32>
    %79 = vector.shape_cast %78 : vector<2x8x8x32xf32> to vector<128x32xf32>
    %c0_94 = arith.constant 0 : index
    %c2_95 = arith.constant 2 : index
    %c0_96 = arith.constant 0 : index
    %c0_97 = arith.constant 0 : index
    %80 = vector.load %arg12[%c0_94, %c2_95, %c0_96, %c0_97] : memref<2x10x10x32xf32, #tpu.memory_space<vmem>>, vector<2x8x8x32xf32>
    %81 = vector.shape_cast %80 : vector<2x8x8x32xf32> to vector<128x32xf32>
    %c0_98 = arith.constant 0 : index
    %c2_99 = arith.constant 2 : index
    %c1_100 = arith.constant 1 : index
    %c0_101 = arith.constant 0 : index
    %82 = vector.load %arg12[%c0_98, %c2_99, %c1_100, %c0_101] : memref<2x10x10x32xf32, #tpu.memory_space<vmem>>, vector<2x8x8x32xf32>
    %83 = vector.shape_cast %82 : vector<2x8x8x32xf32> to vector<128x32xf32>
    %c0_102 = arith.constant 0 : index
    %c2_103 = arith.constant 2 : index
    %c2_104 = arith.constant 2 : index
    %c0_105 = arith.constant 0 : index
    %84 = vector.load %arg12[%c0_102, %c2_103, %c2_104, %c0_105] : memref<2x10x10x32xf32, #tpu.memory_space<vmem>>, vector<2x8x8x32xf32>
    %85 = vector.shape_cast %84 : vector<2x8x8x32xf32> to vector<128x32xf32>
    %86 = tpu.concatenate %69, %71, %73, %75, %77, %79, %81, %83, %85 in 1 : vector<128x32xf32>, vector<128x32xf32>, vector<128x32xf32>, vector<128x32xf32>, vector<128x32xf32>, vector<128x32xf32>, vector<128x32xf32>, vector<128x32xf32>, vector<128x32xf32> -> vector<128x288xf32>
    %c0_106 = arith.constant 0 : index
    %c0_107 = arith.constant 0 : index
    %87 = vector.load %arg6[%c0_106, %c0_107] : memref<288x32xf32, #tpu.memory_space<vmem>>, vector<288x32xf32>
    %cst_108 = arith.constant dense<0.000000e+00> : vector<128x32xf32>
    %88 = tpu.matmul %86, %87, %cst_108 {dimension_numbers = #tpu.dot_dimension_numbers<[1], [0], [0], [1], [0, 0, 1, 1], [], []>} : vector<128x288xf32>, vector<288x32xf32>, vector<128x32xf32> -> vector<128x32xf32>
    %c0_109 = arith.constant 0 : index
    %c0_110 = arith.constant 0 : index
    %89 = vector.load %arg7[%c0_109, %c0_110] : memref<1x32xf32, #tpu.memory_space<vmem>>, vector<1x32xf32>
    %90 = vector.broadcast %89 : vector<1x32xf32> to vector<128x32xf32>
    %91 = arith.addf %88, %90 : vector<128x32xf32>
    %cst_111 = arith.constant dense<0.000000e+00> : vector<32xf32>
    %92 = vector.multi_reduction <add>, %91, %cst_111 [0] : vector<128x32xf32> to vector<32xf32>
    %93 = vector.shape_cast %92 : vector<32xf32> to vector<1x32xf32>
    %94 = arith.mulf %91, %91 : vector<128x32xf32>
    %cst_112 = arith.constant dense<0.000000e+00> : vector<32xf32>
    %95 = vector.multi_reduction <add>, %94, %cst_112 [0] : vector<128x32xf32> to vector<32xf32>
    %96 = vector.shape_cast %95 : vector<32xf32> to vector<1x32xf32>
    %cst_113 = arith.constant 7.812500e-03 : f32
    %97 = vector.broadcast %cst_113 : f32 to vector<1x32xf32>
    %98 = arith.mulf %93, %97 : vector<1x32xf32>
    %cst_114 = arith.constant 7.812500e-03 : f32
    %99 = vector.broadcast %cst_114 : f32 to vector<1x32xf32>
    %100 = arith.mulf %96, %99 : vector<1x32xf32>
    %101 = arith.mulf %98, %98 : vector<1x32xf32>
    %102 = arith.subf %100, %101 : vector<1x32xf32>
    %cst_115 = arith.constant 0.000000e+00 : f32
    %103 = vector.broadcast %cst_115 : f32 to vector<1x32xf32>
    %104 = arith.maximumf %102, %103 : vector<1x32xf32>
    %c0_116 = arith.constant 0 : index
    %c0_117 = arith.constant 0 : index
    %105 = vector.load %arg8[%c0_116, %c0_117] : memref<1x32xf32, #tpu.memory_space<vmem>>, vector<1x32xf32>
    %cst_118 = arith.constant 9.99999974E-6 : f32
    %106 = vector.broadcast %cst_118 : f32 to vector<1x32xf32>
    %107 = arith.addf %104, %106 : vector<1x32xf32>
    %108 = math.rsqrt %107 : vector<1x32xf32>
    %109 = arith.mulf %105, %108 : vector<1x32xf32>
    %c0_119 = arith.constant 0 : index
    %c0_120 = arith.constant 0 : index
    %110 = vector.load %arg9[%c0_119, %c0_120] : memref<1x32xf32, #tpu.memory_space<vmem>>, vector<1x32xf32>
    %111 = arith.mulf %98, %109 : vector<1x32xf32>
    %112 = arith.subf %110, %111 : vector<1x32xf32>
    %113 = vector.broadcast %109 : vector<1x32xf32> to vector<128x32xf32>
    %114 = arith.mulf %91, %113 : vector<128x32xf32>
    %115 = vector.broadcast %112 : vector<1x32xf32> to vector<128x32xf32>
    %116 = arith.addf %114, %115 : vector<128x32xf32>
    %cst_121 = arith.constant 0.000000e+00 : f32
    %117 = vector.broadcast %cst_121 : f32 to vector<128x32xf32>
    %118 = arith.maximumf %116, %117 : vector<128x32xf32>
    %119 = vector.shape_cast %118 : vector<128x32xf32> to vector<2x8x8x32xf32>
    %c0_122 = arith.constant 0 : index
    %c0_123 = arith.constant 0 : index
    %c0_124 = arith.constant 0 : index
    %c0_125 = arith.constant 0 : index
    %120 = vector.load %arg10[%c0_122, %c0_123, %c0_124, %c0_125] : memref<2x8x8x32xf32, #tpu.memory_space<vmem>>, vector<2x8x8x32xf32>
    tpu.vector_store %arg10[%c0_122, %c0_123, %c0_124, %c0_125], %119 {strides = array<i32>} : memref<2x8x8x32xf32, #tpu.memory_space<vmem>>, vector<2x8x8x32xf32>,
    return
  }
  func.func @transform_0(%arg0: i32) -> (i32, i32, i32, i32) {
    %c0_i32 = arith.constant 0 : i32
    %c0_i32_0 = arith.constant 0 : i32
    %c0_i32_1 = arith.constant 0 : i32
    %c0_i32_2 = arith.constant 0 : i32
    %c0_i32_3 = arith.constant 0 : i32
    return %c0_i32, %c0_i32_0, %c0_i32_1, %c0_i32_2 : i32, i32, i32, i32
  }
  func.func @transform_1(%arg0: i32) -> (i32, i32) {
    %c0_i32 = arith.constant 0 : i32
    %c0_i32_0 = arith.constant 0 : i32
    %c0_i32_1 = arith.constant 0 : i32
    return %c0_i32, %c0_i32_0 : i32, i32
  }
  func.func @transform_2(%arg0: i32) -> (i32, i32) {
    %c0_i32 = arith.constant 0 : i32
    %c0_i32_0 = arith.constant 0 : i32
    %c0_i32_1 = arith.constant 0 : i32
    return %c0_i32, %c0_i32_0 : i32, i32
  }
  func.func @transform_3(%arg0: i32) -> (i32, i32) {
    %c0_i32 = arith.constant 0 : i32
    %c0_i32_0 = arith.constant 0 : i32
    %c0_i32_1 = arith.constant 0 : i32
    return %c0_i32, %c0_i32_0 : i32, i32
  }
  func.func @transform_4(%arg0: i32) -> (i32, i32) {
    %c0_i32 = arith.constant 0 : i32
    %c0_i32_0 = arith.constant 0 : i32
    %c0_i32_1 = arith.constant 0 : i32
    return %c0_i32, %c0_i32_0 : i32, i32
  }
  func.func @transform_5(%arg0: i32) -> (i32, i32) {
    %c0_i32 = arith.constant 0 : i32
    %c0_i32_0 = arith.constant 0 : i32
    %c0_i32_1 = arith.constant 0 : i32
    return %c0_i32, %c0_i32_0 : i32, i32
  }
  func.func @transform_6(%arg0: i32) -> (i32, i32) {
    %c0_i32 = arith.constant 0 : i32
    %c0_i32_0 = arith.constant 0 : i32
    %c0_i32_1 = arith.constant 0 : i32
    return %c0_i32, %c0_i32_0 : i32, i32
  }
  func.func @transform_7(%arg0: i32) -> (i32, i32) {
    %c0_i32 = arith.constant 0 : i32
    %c0_i32_0 = arith.constant 0 : i32
    %c0_i32_1 = arith.constant 0 : i32
    return %c0_i32, %c0_i32_0 : i32, i32
  }
  func.func @transform_8(%arg0: i32) -> (i32, i32) {
    %c0_i32 = arith.constant 0 : i32
    %c0_i32_0 = arith.constant 0 : i32
    %c0_i32_1 = arith.constant 0 : i32
    return %c0_i32, %c0_i32_0 : i32, i32
  }
  func.func @transform_9(%arg0: i32) -> (i32, i32, i32, i32) {
    %c0_i32 = arith.constant 0 : i32
    %c0_i32_0 = arith.constant 0 : i32
    %c0_i32_1 = arith.constant 0 : i32
    %c0_i32_2 = arith.constant 0 : i32
    %c0_i32_3 = arith.constant 0 : i32
    return %c0_i32, %c0_i32_0, %c0_i32_1, %c0_i32_2 : i32, i32, i32, i32
  }
}

</mosaic_0001>

<bundles_post_ra>
// kernel: down_forward.1
= control target key start
LH: loop header
LB: loop body
LE: loop exit
PB: predicated region body
PF: predicated region fallthrough
CT: control target
= control target key end

     0   :  { %vm241_vm0 = vcmask 31744   ;;  %s3258_s13 = smov 124   ;;  %vm243_vm1 = vcmask 25600   ;;  %v3259_v2 = vmov 0.0   ;;  %s5091_s0 = inlined_call_operand.vmem [shape: f32[2,16,8,8], index: 0, kind: input, shape index: {}]   ;;  %s5092_s1 = inlined_call_operand.vmem [shape: f32[36,32], index: 1, kind: input, shape index: {}]   ;;  %s5093_s2 = inlined_call_operand.vmem [shape: f32[1,32], index: 2, kind: input, shape index: {}]   ;;  %s5094_s3 = inlined_call_operand.vmem [shape: f32[1,32], index: 3, kind: input, shape index: {}]   ;;  %s5095_s4 = inlined_call_operand.vmem [shape: f32[1,32], index: 4, kind: input, shape index: {}]   ;;  %s5096_s5 = inlined_call_operand.vmem [shape: f32[288,32], index: 5, kind: input, shape index: {}]   ;;  %s5097_s6 = inlined_call_operand.vmem [shape: f32[1,32], index: 6, kind: input, shape index: {}]   ;;  %s5098_s7 = inlined_call_operand.vmem [shape: f32[1,32], index: 7, kind: input, shape index: {}]   ;;  %s5099_s8 = inlined_call_operand.vmem [shape: f32[1,32], index: 8, kind: input, shape index: {}]   ;;  %s5100_s9 = inlined_call_operand.hbm [shape: f32[2,8,8,32], index: 9, kind: output, shape index: {}]  }
   0x1   :  { %v3325_v0 = vld [vmem:[%s5091_s0] sm:$0xff]  ;;  %v3330_v1 = vld [vmem:[%s5091_s0 + $0x10] sm:$0xff]  ;;  %245 = vst.msk [vmem:[#allocation2 + $0x10] sm:$0xff] %vm241_vm0, %v3259_v2  ;;  %242 = vst.msk [vmem:[#allocation2] sm:$0xff] %vm241_vm0, %v3259_v2 }
   0x2   :  { %97 = vrot.lane.b32.xlu0 %v3325_v0, %s3258_s13  ;;  %101 = vrot.lane.b32.xlu1 %v3330_v1, %s3258_s13  ;;  %247 = vst.msk [vmem:[#allocation2 + $0x20] sm:$0xff] %vm241_vm0, %v3259_v2  ;;  %249 = vst.msk [vmem:[#allocation2 + $0x30] sm:$0xff] %vm241_vm0, %v3259_v2  ;;  %v3379_v3 = vld [vmem:[%s5091_s0 + $0x8] sm:$0xff]  ;;  %v3384_v4 = vld [vmem:[%s5091_s0 + $0x18] sm:$0xff] }
   0x3   :  { %251 = vst.msk [vmem:[#allocation2 + $0x40] sm:$0xff] %vm241_vm0, %v3259_v2  ;;  %253 = vst.msk [vmem:[#allocation2 + $0x50] sm:$0xff] %vm241_vm0, %v3259_v2  ;;  %v3433_v5 = vld [vmem:[%s5091_s0 + $0x28] sm:$0xff]  ;;  %v3438_v6 = vld [vmem:[%s5091_s0 + $0x20] sm:$0xff] }
   0x4   :  { %255 = vst.msk [vmem:[#allocation2 + $0x60] sm:$0xff] %vm241_vm0, %v3259_v2  ;;  %257 = vst.msk [vmem:[#allocation2 + $0x70] sm:$0xff] %vm241_vm0, %v3259_v2  ;;  %v3447_v7 = vld [vmem:[%s5091_s0 + $0x38] sm:$0xff]  ;;  %v3452_v8 = vld [vmem:[%s5091_s0 + $0x30] sm:$0xff] }
   0x5   :  { %259 = vst.msk [vmem:[#allocation2 + $0x80] sm:$0xff] %vm241_vm0, %v3259_v2  ;;  %261 = vst.msk [vmem:[#allocation2 + $0x90] sm:$0xff] %vm241_vm0, %v3259_v2 }
   0x6   :  { %263 = vst.msk [vmem:[#allocation2 + $0xa0] sm:$0xff] %vm241_vm0, %v3259_v2  ;;  %265 = vst.msk [vmem:[#allocation2 + $0xb0] sm:$0xff] %vm241_vm0, %v3259_v2  ;;  %99 = vrot.lane.b32.xlu0 %v3379_v3, %s3258_s13  ;;  %103 = vrot.lane.b32.xlu1 %v3384_v4, %s3258_s13 }
   0x7   :  { %267 = vst.msk [vmem:[#allocation2 + $0xc0] sm:$0xff] %vm241_vm0, %v3259_v2  ;;  %269 = vst.msk [vmem:[#allocation2 + $0xd0] sm:$0xff] %vm241_vm0, %v3259_v2 }
   0x8   :  { %271 = vst.msk [vmem:[#allocation2 + $0xe0] sm:$0xff] %vm241_vm0, %v3259_v2  ;;  %273 = vst.msk [vmem:[#allocation2 + $0xf0] sm:$0xff] %vm241_vm0, %v3259_v2 }
   0x9   :  { %275 = vst.msk [vmem:[#allocation2 + $0x100] sm:$0xff] %vm241_vm0, %v3259_v2  ;;  %277 = vst.msk [vmem:[#allocation2 + $0x110] sm:$0xff] %vm241_vm0, %v3259_v2 }
   0xa   :  { %279 = vst.msk [vmem:[#allocation2 + $0x120] sm:$0xff] %vm241_vm0, %v3259_v2  ;;  %281 = vst.msk [vmem:[#allocation2 + $0x130] sm:$0xff] %vm241_vm0, %v3259_v2  ;;  %107 = vrot.lane.b32.xlu1 %v3433_v5, %s3258_s13  ;;  %105 = vrot.lane.b32.xlu0 %v3438_v6, %s3258_s13 }
   0xb   :  { %246 = vst.msk [vmem:[#allocation2 + $0x18] sm:$0x3] %vm243_vm1, %v3259_v2  ;;  %244 = vst.msk [vmem:[#allocation2 + $0x8] sm:$0x3] %vm243_vm1, %v3259_v2 }
   0xc   :  { %248 = vst.msk [vmem:[#allocation2 + $0x28] sm:$0x3] %vm243_vm1, %v3259_v2  ;;  %250 = vst.msk [vmem:[#allocation2 + $0x38] sm:$0x3] %vm243_vm1, %v3259_v2 }
   0xd   :  { %252 = vst.msk [vmem:[#allocation2 + $0x48] sm:$0x3] %vm243_vm1, %v3259_v2  ;;  %254 = vst.msk [vmem:[#allocation2 + $0x58] sm:$0x3] %vm243_vm1, %v3259_v2 }
   0xe   :  { %256 = vst.msk [vmem:[#allocation2 + $0x68] sm:$0x3] %vm243_vm1, %v3259_v2  ;;  %258 = vst.msk [vmem:[#allocation2 + $0x78] sm:$0x3] %vm243_vm1, %v3259_v2 }
   0xf   :  { %260 = vst.msk [vmem:[#allocation2 + $0x88] sm:$0x3] %vm243_vm1, %v3259_v2  ;;  %262 = vst.msk [vmem:[#allocation2 + $0x98] sm:$0x3] %vm243_vm1, %v3259_v2 }
  0x10   :  { %264 = vst.msk [vmem:[#allocation2 + $0xa8] sm:$0x3] %vm243_vm1, %v3259_v2  ;;  %266 = vst.msk [vmem:[#allocation2 + $0xb8] sm:$0x3] %vm243_vm1, %v3259_v2 }
  0x11   :  { %268 = vst.msk [vmem:[#allocation2 + $0xc8] sm:$0x3] %vm243_vm1, %v3259_v2  ;;  %270 = vst.msk [vmem:[#allocation2 + $0xd8] sm:$0x3] %vm243_vm1, %v3259_v2 }
  0x12   :  { %272 = vst.msk [vmem:[#allocation2 + $0xe8] sm:$0x3] %vm243_vm1, %v3259_v2  ;;  %274 = vst.msk [vmem:[#allocation2 + $0xf8] sm:$0x3] %vm243_vm1, %v3259_v2 }
  0x13   :  { %276 = vst.msk [vmem:[#allocation2 + $0x108] sm:$0x3] %vm243_vm1, %v3259_v2  ;;  %278 = vst.msk [vmem:[#allocation2 + $0x118] sm:$0x3] %vm243_vm1, %v3259_v2 }
  0x14   :  { %280 = vst.msk [vmem:[#allocation2 + $0x128] sm:$0x3] %vm243_vm1, %v3259_v2  ;;  %282 = vst.msk [vmem:[#allocation2 + $0x138] sm:$0x3] %vm243_vm1, %v3259_v2 }
  0x15   :  { %14 = vsyncpa [#allocation5], 0  ;;  %111 = vrot.lane.b32.xlu1 %v3447_v7, %s3258_s13  ;;  %109 = vrot.lane.b32.xlu0 %v3452_v8, %s3258_s13  ;;  %v3461_v9 = vld [vmem:[%s5091_s0 + $0x48] sm:$0xff]  ;;  %v3466_v10 = vld [vmem:[%s5091_s0 + $0x40] sm:$0xff]  ;;  %s3260_s14 = smov 4   ;;  %s3261_s15 = smov 8  }
  0x16   :  { %v3475_v11 = vld [vmem:[%s5091_s0 + $0x58] sm:$0xff]  ;;  %v3480_v12 = vld [vmem:[%s5091_s0 + $0x50] sm:$0xff]  ;;  %v3489_v13 = vld [vmem:[%s5091_s0 + $0x68] sm:$0xff]  ;;  %s3264_s16 = smov 20   ;;  %s3265_s17 = smov 24   ;;  %vm1153_vm2 = vcmask 1043456  }
  0x17   :  { %v3494_v14 = vld [vmem:[%s5091_s0 + $0x60] sm:$0xff]  ;;  %v3503_v15 = vld [vmem:[%s5091_s0 + $0x70] sm:$0xff]  ;;  %v3508_v16 = vld [vmem:[%s5091_s0 + $0x78] sm:$0xff]  ;;  %vm1075_vm3 = vcmask 261120   ;;  %s3266_s24 = smov 28   ;;  %vm973_vm4 = vcmask 64512  }
  0x18   :  { %v3517_v17 = vld [vmem:[%s5091_s0 + $0x80] sm:$0xff]  ;;  %v3522_v18 = vld [vmem:[%s5091_s0 + $0x88] sm:$0xff]  ;;  %v3531_v19 = vld [vmem:[%s5091_s0 + $0x90] sm:$0xff]  ;;  %1464 = vst.msk [vmem:[#allocation3] sm:$0xff] %vm1075_vm3, %v3259_v2  ;;  %vm990_vm5 = vcmask 97280   ;;  %vm1007_vm6 = vcmask 130048  }
  0x19   :  { %115 = vrot.lane.b32.xlu1 %v3461_v9, %s3258_s13  ;;  %113 = vrot.lane.b32.xlu0 %v3466_v10, %s3258_s13  ;;  %v3536_v20 = vld [vmem:[%s5091_s0 + $0x98] sm:$0xff]  ;;  %v3545_v21 = vld [vmem:[%s5091_s0 + $0xa0] sm:$0xff]  ;;  %1467 = vst.msk [vmem:[#allocation3 + $0x10] sm:$0xff] %vm1075_vm3, %v3259_v2  ;;  %1469 = vst.msk [vmem:[#allocation3 + $0x20] sm:$0xff] %vm1075_vm3, %v3259_v2  ;;  %vm1024_vm7 = vcmask 162816   ;;  %vm1041_vm8 = vcmask 195584  }
  0x1a   :  { %v3550_v22 = vld [vmem:[%s5091_s0 + $0xa8] sm:$0xff]  ;;  %v3559_v23 = vld [vmem:[%s5091_s0 + $0xb0] sm:$0xff]  ;;  %v3564_v24 = vld [vmem:[%s5091_s0 + $0xb8] sm:$0xff]  ;;  %1471 = vst.msk [vmem:[#allocation3 + $0x30] sm:$0xff] %vm1075_vm3, %v3259_v2  ;;  %vm1058_vm9 = vcmask 228352   ;;  %vm1104_vm10 = vcmask 293888  }
  0x1b   :  { %v3573_v25 = vld [vmem:[%s5091_s0 + $0xc0] sm:$0xff]  ;;  %v3578_v26 = vld [vmem:[%s5091_s0 + $0xc8] sm:$0xff]  ;;  %v3587_v27 = vld [vmem:[%s5091_s0 + $0xd0] sm:$0xff]  ;;  %1473 = vst.msk [vmem:[#allocation3 + $0x40] sm:$0xff] %vm1075_vm3, %v3259_v2  ;;  %vm1465_vm11 = vcmask 254976   ;;  %s3268_s30 = smov 64  }
  0x1c   :  { %v3592_v28 = vld [vmem:[%s5091_s0 + $0xd8] sm:$0xff]  ;;  %v3601_v29 = vld [vmem:[%s5091_s0 + $0xe0] sm:$0xff]  ;;  %v3606_v30 = vld [vmem:[%s5091_s0 + $0xe8] sm:$0xff]  ;;  %1475 = vst.msk [vmem:[#allocation3 + $0x50] sm:$0xff] %vm1075_vm3, %v3259_v2  ;;  %vm2067_vm12 = vcmask 523264   ;;  %vm2084_vm13 = vcmask 785408  }
  0x1d   :  { %119 = vrot.lane.b32.xlu1 %v3475_v11, %s3258_s13  ;;  %117 = vrot.lane.b32.xlu0 %v3480_v12, %s3258_s13  ;;  %v3615_v31 = vld [vmem:[%s5091_s0 + $0xf0] sm:$0xff]  ;;  %v3620_v32 = vld [vmem:[%s5091_s0 + $0xf8] sm:$0xff]  ;;  %v316_v33 = vld [vmem:[#allocation2 + $0x1] sm:$0xff]  ;;  %s3262_s0 = smov 12   ;;  %1477 = vst.msk [vmem:[#allocation3 + $0x60] sm:$0xff] %vm1075_vm3, %v3259_v2 }
  0x1e   :  { %v332_v34 = vld [vmem:[#allocation2 + $0x2] sm:$0xff]  ;;  %1479 = vst.msk [vmem:[#allocation3 + $0x70] sm:$0xff] %vm1075_vm3, %v3259_v2  ;;  %1481 = vst.msk [vmem:[#allocation3 + $0x80] sm:$0xff] %vm1075_vm3, %v3259_v2 }
  0x1f   :  { %1483 = vst.msk [vmem:[#allocation3 + $0x90] sm:$0xff] %vm1075_vm3, %v3259_v2  ;;  %1485 = vst.msk [vmem:[#allocation3 + $0xa0] sm:$0xff] %vm1075_vm3, %v3259_v2 }
  0x20   :  { %1487 = vst.msk [vmem:[#allocation3 + $0xb0] sm:$0xff] %vm1075_vm3, %v3259_v2  ;;  %1489 = vst.msk [vmem:[#allocation3 + $0xc0] sm:$0xff] %vm1075_vm3, %v3259_v2 }
  0x21   :  { %123 = vrot.lane.b32.xlu1 %v3489_v13, %s3258_s13  ;;  %121 = vrot.lane.b32.xlu0 %v3494_v14, %s3258_s13  ;;  %1491 = vst.msk [vmem:[#allocation3 + $0xd0] sm:$0xff] %vm1075_vm3, %v3259_v2  ;;  %1493 = vst.msk [vmem:[#allocation3 + $0xe0] sm:$0xff] %vm1075_vm3, %v3259_v2 }
  0x22   :  { %1495 = vst.msk [vmem:[#allocation3 + $0xf0] sm:$0xff] %vm1075_vm3, %v3259_v2  ;;  %1497 = vst.msk [vmem:[#allocation3 + $0x100] sm:$0xff] %vm1075_vm3, %v3259_v2 }
  0x23   :  { %1499 = vst.msk [vmem:[#allocation3 + $0x110] sm:$0xff] %vm1075_vm3, %v3259_v2  ;;  %1501 = vst.msk [vmem:[#allocation3 + $0x120] sm:$0xff] %vm1075_vm3, %v3259_v2 }
  0x24   :  { %1503 = vst.msk [vmem:[#allocation3 + $0x130] sm:$0xff] %vm1075_vm3, %v3259_v2 }
  0x25   :  { %125 = vrot.lane.b32.xlu0 %v3503_v15, %s3258_s13  ;;  %127 = vrot.lane.b32.xlu1 %v3508_v16, %s3258_s13  ;;  %1500 = vst.msk [vmem:[#allocation3 + $0x118] sm:$0x3] %vm1465_vm11, %v3259_v2  ;;  %1466 = vst.msk [vmem:[#allocation3 + $0x8] sm:$0x3] %vm1465_vm11, %v3259_v2 }
  0x26   :  { %1468 = vst.msk [vmem:[#allocation3 + $0x18] sm:$0x3] %vm1465_vm11, %v3259_v2  ;;  %1470 = vst.msk [vmem:[#allocation3 + $0x28] sm:$0x3] %vm1465_vm11, %v3259_v2 }
  0x27   :  { %1472 = vst.msk [vmem:[#allocation3 + $0x38] sm:$0x3] %vm1465_vm11, %v3259_v2  ;;  %1474 = vst.msk [vmem:[#allocation3 + $0x48] sm:$0x3] %vm1465_vm11, %v3259_v2 }
  0x28   :  { %1476 = vst.msk [vmem:[#allocation3 + $0x58] sm:$0x3] %vm1465_vm11, %v3259_v2  ;;  %1478 = vst.msk [vmem:[#allocation3 + $0x68] sm:$0x3] %vm1465_vm11, %v3259_v2 }
  0x29   :  { %129 = vrot.lane.b32.xlu0 %v3517_v17, %s3258_s13  ;;  %131 = vrot.lane.b32.xlu1 %v3522_v18, %s3258_s13  ;;  %1480 = vst.msk [vmem:[#allocation3 + $0x78] sm:$0x3] %vm1465_vm11, %v3259_v2  ;;  %1482 = vst.msk [vmem:[#allocation3 + $0x88] sm:$0x3] %vm1465_vm11, %v3259_v2 }
  0x2a   :  { %1484 = vst.msk [vmem:[#allocation3 + $0x98] sm:$0x3] %vm1465_vm11, %v3259_v2  ;;  %1486 = vst.msk [vmem:[#allocation3 + $0xa8] sm:$0x3] %vm1465_vm11, %v3259_v2 }
  0x2b   :  { %1488 = vst.msk [vmem:[#allocation3 + $0xb8] sm:$0x3] %vm1465_vm11, %v3259_v2  ;;  %1490 = vst.msk [vmem:[#allocation3 + $0xc8] sm:$0x3] %vm1465_vm11, %v3259_v2 }
  0x2c   :  { %1492 = vst.msk [vmem:[#allocation3 + $0xd8] sm:$0x3] %vm1465_vm11, %v3259_v2  ;;  %1494 = vst.msk [vmem:[#allocation3 + $0xe8] sm:$0x3] %vm1465_vm11, %v3259_v2 }
  0x2d   :  { %133 = vrot.lane.b32.xlu0 %v3531_v19, %s3258_s13  ;;  %135 = vrot.lane.b32.xlu1 %v3536_v20, %s3258_s13  ;;  %1496 = vst.msk [vmem:[#allocation3 + $0xf8] sm:$0x3] %vm1465_vm11, %v3259_v2  ;;  %1498 = vst.msk [vmem:[#allocation3 + $0x108] sm:$0x3] %vm1465_vm11, %v3259_v2 }
  0x2e   :  { %1502 = vst.msk [vmem:[#allocation3 + $0x128] sm:$0x3] %vm1465_vm11, %v3259_v2  ;;  %1504 = vst.msk [vmem:[#allocation3 + $0x138] sm:$0x3] %vm1465_vm11, %v3259_v2 }
  0x31   :  { %137 = vrot.lane.b32.xlu0 %v3545_v21, %s3258_s13  ;;  %139 = vrot.lane.b32.xlu1 %v3550_v22, %s3258_s13 }
  0x35   :  { %141 = vrot.lane.b32.xlu0 %v3559_v23, %s3258_s13  ;;  %143 = vrot.lane.b32.xlu1 %v3564_v24, %s3258_s13 }
  0x39   :  { %145 = vrot.lane.b32.xlu0 %v3573_v25, %s3258_s13  ;;  %147 = vrot.lane.b32.xlu1 %v3578_v26, %s3258_s13 }
  0x3d   :  { %149 = vrot.lane.b32.xlu0 %v3587_v27, %s3258_s13  ;;  %151 = vrot.lane.b32.xlu1 %v3592_v28, %s3258_s13 }
  0x41   :  { %153 = vrot.lane.b32.xlu0 %v3601_v29, %s3258_s13  ;;  %155 = vrot.lane.b32.xlu1 %v3606_v30, %s3258_s13 }
  0x45   :  { %157 = vrot.lane.b32.xlu0 %v3615_v31, %s3258_s13  ;;  %159 = vrot.lane.b32.xlu1 %v3620_v32, %s3258_s13  ;;  %s3263_s13 = smov 16  }
  0x49   :  { %461 = vrot.lane.b32.xlu0 %v316_v33, %s3260_s14 }
  0x4d   :  { %525 = vrot.lane.b32.xlu0 %v332_v34, %s3261_s15 }
  0x74   :  { %v98_v35 = vpop.permute.xlu0 %97  ;;  %v102_v36 = vpop.permute.xlu1 %101 }
  0x75   :  { %v195_v37 = vmax.f32 %v3330_v1, %v102_v36  ;;  %v193_v40 = vmax.f32 %v3325_v0, %v98_v35 }
  0x78   :  { %v100_v38 = vpop.permute.xlu0 %99  ;;  %v104_v39 = vpop.permute.xlu1 %103 }
  0x79   :  { %v194_v41 = vmax.f32 %v3379_v3, %v100_v38  ;;  %v196_v42 = vmax.f32 %v3384_v4, %v104_v39 }
  0x7b   :  { %v225_v43 = vmax.f32 %v193_v40, %v194_v41  ;;  %v226_v44 = vmax.f32 %v195_v37, %v196_v42 }
  0x7c   :  { %v108_v45 = vpop.permute.xlu1 %107  ;;  %v106_v46 = vpop.permute.xlu0 %105 }
  0x7d   :  { %284 = vst.msk [vmem:[#allocation2 + $0x11] sm:$0xff] %vm241_vm0, %v225_v43  ;;  %285 = vst.msk [vmem:[#allocation2 + $0x21] sm:$0xff] %vm241_vm0, %v226_v44  ;;  %v198_v47 = vmax.f32 %v3433_v5, %v108_v45  ;;  %v197_v48 = vmax.f32 %v3438_v6, %v106_v46 }
  0x7f   :  { %v227_v49 = vmax.f32 %v197_v48, %v198_v47 }
  0x81   :  { %286 = vst.msk [vmem:[#allocation2 + $0x31] sm:$0xff] %vm241_vm0, %v227_v49 }
  0x84   :  { %v3639_v55 = vld [vmem:[#allocation2 + $0x10] sm:$0xff]  ;;  %v3652_v5 = vld [vmem:[#allocation2 + $0x21] sm:$0xff] }
  0x85   :  { %v317_v56 = vld [vmem:[#allocation2 + $0x11] sm:$0xff]  ;;  %589 = vrot.lane.b32.xlu0 %v3639_v55, %s3262_s0  ;;  %v3654_v6 = vld [vmem:[#allocation2 + $0x20] sm:$0xff] }
  0x86   :  { %463 = vrot.lane.b32.xlu1 %v317_v56, %s3260_s14  ;;  %v333_v62 = vld [vmem:[#allocation2 + $0x12] sm:$0xff]  ;;  %v3672_v37 = vld [vmem:[#allocation2 + $0x22] sm:$0xff] }
  0x87   :  { %v112_v50 = vpop.permute.xlu1 %111  ;;  %v110_v51 = vpop.permute.xlu0 %109 }
  0x88   :  { %v200_v52 = vmax.f32 %v3447_v7, %v112_v50  ;;  %v199_v53 = vmax.f32 %v3452_v8, %v110_v51  ;;  %v3689_v45 = vld [vmem:[#allocation2 + $0x30] sm:$0xff] }
  0x89   :  { %653 = vrot.lane.b32.xlu0 %v317_v56, %s3263_s13 }
  0x8a   :  { %v228_v54 = vmax.f32 %v199_v53, %v200_v52  ;;  %527 = vrot.lane.b32.xlu1 %v333_v62, %s3261_s15  ;;  %v1095_v52 = vld [vmem:[%s5092_s1 + $0x18] sm:$0xff]  ;;  %v1094_v53 = vld [vmem:[%s5092_s1 + $0x10] sm:$0xff] }
  0x8b   :  { %v116_v57 = vpop.permute.xlu1 %115  ;;  %v114_v58 = vpop.permute.xlu0 %113 }
  0x8c   :  { %287 = vst.msk [vmem:[#allocation2 + $0x41] sm:$0xff] %vm241_vm0, %v228_v54  ;;  %v202_v59 = vmax.f32 %v3461_v9, %v116_v57  ;;  %v201_v60 = vmax.f32 %v3466_v10, %v114_v58  ;;  %v1093_v58 = vld [vmem:[%s5092_s1 + $0x8] sm:$0xff] }
  0x8d   :  { %655 = vrot.lane.b32.xlu0 %v3652_v5, %s3263_s13 }
  0x8e   :  { %v229_v61 = vmax.f32 %v201_v60, %v202_v59  ;;  %591 = vrot.lane.b32.xlu1 %v3654_v6, %s3262_s0 }
  0x8f   :  { %v120_v63 = vpop.permute.xlu1 %119  ;;  %v118_v0 = vpop.permute.xlu0 %117 }
  0x90   :  { %288 = vst.msk [vmem:[#allocation2 + $0x51] sm:$0xff] %vm241_vm0, %v229_v61  ;;  %v204_v1 = vmax.f32 %v3475_v11, %v120_v63  ;;  %v203_v3 = vmax.f32 %v3480_v12, %v118_v0  ;;  %v3663_v11 = vld [vmem:[#allocation2 + $0x31] sm:$0xff]  ;;  %v1092_v61 = vld [vmem:[%s5092_s1] sm:$0xff] }
  0x91   :  { %467 = vrot.lane.b32.xlu0 %v3663_v11, %s3260_s14 }
  0x92   :  { %v230_v4 = vmax.f32 %v203_v3, %v204_v1  ;;  %465 = vrot.lane.b32.xlu1 %v3652_v5, %s3260_s14 }
  0x93   :  { %v124_v7 = vpop.permute.xlu1 %123  ;;  %v122_v8 = vpop.permute.xlu0 %121  ;;  %v3701_v48 = vld [vmem:[#allocation2 + $0x40] sm:$0xff] }
  0x94   :  { %289 = vst.msk [vmem:[#allocation2 + $0x61] sm:$0xff] %vm241_vm0, %v230_v4  ;;  %v206_v9 = vmax.f32 %v3489_v13, %v124_v7  ;;  %v205_v10 = vmax.f32 %v3494_v14, %v122_v8  ;;  %v320_v59 = vld [vmem:[#allocation2 + $0x41] sm:$0xff] }
  0x95   :  { %719 = vrot.lane.b32.xlu0 %v3672_v37, %s3264_s16 }
  0x96   :  { %v231_v12 = vmax.f32 %v205_v10, %v206_v9  ;;  %717 = vrot.lane.b32.xlu1 %v333_v62, %s3264_s16 }
  0x97   :  { %v126_v33 = vpop.permute.xlu0 %125  ;;  %v128_v34 = vpop.permute.xlu1 %127 }
  0x98   :  { %290 = vst.msk [vmem:[#allocation2 + $0x71] sm:$0xff] %vm241_vm0, %v231_v12  ;;  %v207_v35 = vmax.f32 %v3503_v15, %v126_v33  ;;  %v208_v36 = vmax.f32 %v3508_v16, %v128_v34  ;;  %v3680_v15 = vld [vmem:[#allocation2 + $0x32] sm:$0xff] }
  0x99   :  { %531 = vrot.lane.b32.xlu0 %v3680_v15, %s3261_s15  ;;  %v3793_v12 = vld [vmem:[#allocation2 + $0x50] sm:$0xff] }
  0x9a   :  { %v232_v13 = vmax.f32 %v207_v35, %v208_v36  ;;  %529 = vrot.lane.b32.xlu1 %v3672_v37, %s3261_s15 }
  0x9b   :  { %v130_v14 = vpop.permute.xlu0 %129  ;;  %v132_v38 = vpop.permute.xlu1 %131  ;;  %v385_v34 = vld [vmem:[#allocation2 + $0x62] sm:$0xff] }
  0x9c   :  { %v209_v39 = vmax.f32 %v3517_v17, %v130_v14  ;;  %291 = vst.msk [vmem:[#allocation2 + $0x81] sm:$0xff] %vm241_vm0, %v232_v13  ;;  %v210_v40 = vmax.f32 %v3522_v18, %v132_v38 }
  0x9d   :  { %783 = vrot.lane.b32.xlu0 %v3689_v45, %s3265_s17 }
  0x9e   :  { %v233_v16 = vmax.f32 %v209_v39, %v210_v40  ;;  %781 = vrot.lane.b32.xlu1 %v3654_v6, %s3265_s17 }
  0x9f   :  { %v134_v41 = vpop.permute.xlu0 %133  ;;  %v136_v42 = vpop.permute.xlu1 %135  ;;  %v323_v33 = vld [vmem:[#allocation2 + $0x71] sm:$0xff] }
  0xa0   :  { %v211_v43 = vmax.f32 %v3531_v19, %v134_v41  ;;  %292 = vst.msk [vmem:[#allocation2 + $0xb1] sm:$0xff] %vm241_vm0, %v233_v16  ;;  %v212_v17 = vmax.f32 %v3536_v20, %v136_v42  ;;  %v1096_v20 = vld [vmem:[%s5092_s1 + $0x20] sm:$0xf]  ;;  %s3267_s1 = smov 32   ;;  %v339_v35 = vld [vmem:[#allocation2 + $0x72] sm:$0xff] }
  0xa1   :  { %2880 = vmatprep.subr.msk.mxu0 %vm1153_vm2, %v1096_v20  ;;  %595 = vrot.lane.b32.xlu0 %v3701_v48, %s3262_s0  ;;  %v3817_v36 = vld [vmem:[#allocation2 + $0x70] sm:$0xff]  ;;  %v340_v16 = vld [vmem:[#allocation2 + $0xa2] sm:$0xff] }
  0xa2   :  { %v234_v44 = vmax.f32 %v211_v43, %v212_v17  ;;  %2881 = vmatpush3.msk.msra.mxu0 %vm1153_vm2, %v1096_v20  ;;  %593 = vrot.lane.b32.xlu1 %v3689_v45, %s3262_s0  ;;  %v404_v17 = vld [vmem:[#allocation2 + $0x90] sm:$0xff] }
  0xa3   :  { %v138_v18 = vpop.permute.xlu0 %137  ;;  %v140_v46 = vpop.permute.xlu1 %139  ;;  %2882 = vmatprep.subr.mxu0 %v1095_v52  ;;  %v355_v13 = vld [vmem:[#allocation2 + $0x80] sm:$0xff] }
  0xa4   :  { %v213_v47 = vmax.f32 %v3545_v21, %v138_v18  ;;  %293 = vst.msk [vmem:[#allocation2 + $0xc1] sm:$0xff] %vm241_vm0, %v234_v44  ;;  %v214_v19 = vmax.f32 %v3550_v22, %v140_v46  ;;  %2883 = vmatpush3.msra.mxu0 %v1095_v52  ;;  %v371_v38 = vld [vmem:[#allocation2 + $0x81] sm:$0xff] }
  0xa5   :  { %2884 = vmatprep.subr.mxu0 %v1094_v53  ;;  %847 = vrot.lane.b32.xlu0 %v3663_v11, %s3266_s24 }
  0xa6   :  { %v235_v49 = vmax.f32 %v213_v47, %v214_v19  ;;  %845 = vrot.lane.b32.xlu1 %v3652_v5, %s3266_s24  ;;  %2885 = vmatpush3.msra.mxu0 %v1094_v53  ;;  %v321_v5 = vld [vmem:[#allocation2 + $0x51] sm:$0xff] }
  0xa7   :  { %v142_v50 = vpop.permute.xlu0 %141  ;;  %v144_v51 = vpop.permute.xlu1 %143  ;;  %2886 = vmatprep.subr.mxu0 %v1093_v58  ;;  %v325_v39 = vld [vmem:[#allocation2 + $0xb1] sm:$0xff] }
  0xa8   :  { %v215_v21 = vmax.f32 %v3559_v23, %v142_v50  ;;  %294 = vst.msk [vmem:[#allocation2 + $0xd1] sm:$0xff] %vm241_vm0, %v235_v49  ;;  %v216_v22 = vmax.f32 %v3564_v24, %v144_v51  ;;  %2887 = vmatpush3.msra.mxu0 %v1093_v58  ;;  %v341_v43 = vld [vmem:[#allocation2 + $0xb2] sm:$0xff] }
  0xa9   :  { %469 = vrot.lane.b32.xlu0 %v320_v59, %s3260_s14  ;;  %2888 = vmatprep.subr.mxu0 %v1092_v61  ;;  %v3848_v19 = vld [vmem:[#allocation2 + $0xb0] sm:$0xff] }
  0xaa   :  { %v236_v54 = vmax.f32 %v215_v21, %v216_v22  ;;  %657 = vrot.lane.b32.xlu1 %v3663_v11, %s3263_s13  ;;  %2889 = vmatpush3.msra.mxu0 %v1092_v61  ;;  %v420_v49 = vld [vmem:[#allocation2 + $0x91] sm:$0xff] }
  0xab   :  { %v146_v56 = vpop.permute.xlu0 %145  ;;  %v148_v57 = vpop.permute.xlu1 %147  ;;  %v3850_v20 = vld [vmem:[#allocation2 + $0xc0] sm:$0xff]  ;;  %v436_v58 = vld [vmem:[#allocation2 + $0x92] sm:$0xff] }
  0xac   :  { %v217_v23 = vmax.f32 %v3573_v25, %v146_v56  ;;  %295 = vst.msk [vmem:[#allocation2 + $0xe1] sm:$0xff] %vm241_vm0, %v236_v54  ;;  %v218_v24 = vmax.f32 %v3578_v26, %v148_v57  ;;  %v326_v52 = vld [vmem:[#allocation2 + $0xc1] sm:$0xff] }
  0xad   :  { %721 = vrot.lane.b32.xlu0 %v3680_v15, %s3264_s16  ;;  %v389_v61 = vld [vmem:[#allocation2 + $0xc2] sm:$0xff] }
  0xae   :  { %v237_v60 = vmax.f32 %v217_v23, %v218_v24  ;;  %909 = vrot.lane.b32.xlu1 %v3672_v37, %s3267_s1  ;;  %v324_v37 = vld [vmem:[#allocation2 + $0xa1] sm:$0xff] }
  0xaf   :  { %v150_v62 = vpop.permute.xlu0 %149  ;;  %v152_v63 = vpop.permute.xlu1 %151  ;;  %v327_v23 = vld [vmem:[#allocation2 + $0xd1] sm:$0xff]  ;;  %v300_v24 = vld [vmem:[#allocation2] sm:$0xff] }
  0xb0   :  { %v219_v25 = vmax.f32 %v3587_v27, %v150_v62  ;;  %296 = vst.msk [vmem:[#allocation2 + $0xf1] sm:$0xff] %vm241_vm0, %v237_v60  ;;  %v220_v26 = vmax.f32 %v3592_v28, %v152_v63 }
  0xb1   :  { %471 = vrot.lane.b32.xlu0 %v321_v5, %s3260_s14 }
  0xb2   :  { %v238_v0 = vmax.f32 %v219_v25, %v220_v26  ;;  %659 = vrot.lane.b32.xlu1 %v320_v59, %s3263_s13 }
  0xb3   :  { %v154_v1 = vpop.permute.xlu0 %153  ;;  %v156_v3 = vpop.permute.xlu1 %155 }
  0xb4   :  { %v221_v4 = vmax.f32 %v3601_v29, %v154_v1  ;;  %297 = vst.msk [vmem:[#allocation2 + $0x101] sm:$0xff] %vm241_vm0, %v238_v0  ;;  %v222_v27 = vmax.f32 %v3606_v30, %v156_v3  ;;  %v383_v29 = vld [vmem:[#allocation2 + $0x42] sm:$0xff]  ;;  %v337_v30 = vld [vmem:[#allocation2 + $0x52] sm:$0xff] }
  0xb5   :  { %723 = vrot.lane.b32.xlu0 %v383_v29, %s3264_s16  ;;  %v343_v0 = vld [vmem:[#allocation2 + $0xd2] sm:$0xff] }
  0xb6   :  { %v239_v28 = vmax.f32 %v221_v4, %v222_v27  ;;  %911 = vrot.lane.b32.xlu1 %v3680_v15, %s3267_s1  ;;  %v387_v15 = vld [vmem:[#allocation2 + $0x82] sm:$0xff] }
  0xb7   :  { %v158_v7 = vpop.permute.xlu0 %157  ;;  %v160_v8 = vpop.permute.xlu1 %159 }
  0xb8   :  { %v223_v9 = vmax.f32 %v3615_v31, %v158_v7  ;;  %298 = vst.msk [vmem:[#allocation2 + $0x111] sm:$0xff] %vm241_vm0, %v239_v28  ;;  %v224_v10 = vmax.f32 %v3620_v32, %v160_v8  ;;  %v3799_v31 = vld [vmem:[#allocation2 + $0x60] sm:$0xff] }
  0xb9   :  { %535 = vrot.lane.b32.xlu0 %v337_v30, %s3261_s15  ;;  %v322_v32 = vld [vmem:[#allocation2 + $0x61] sm:$0xff] }
  0xba   :  { %v240_v11 = vmax.f32 %v223_v9, %v224_v10  ;;  %533 = vrot.lane.b32.xlu1 %v383_v29, %s3261_s15 }
  0xbb   :  { %v462_v14 = vpop.permute.xlu0 %461 }
  0xbc   :  { %299 = vst.msk [vmem:[#allocation2 + $0x121] sm:$0xff] %vm241_vm0, %v240_v11  ;;  %v957_v62 = vsel %vm241_vm0, %v300_v24, %v462_v14 }
  0xbd   :  { %787 = vrot.lane.b32.xlu0 %v3793_v12, %s3265_s17 }
  0xbe   :  { %785 = vrot.lane.b32.xlu1 %v3701_v48, %s3265_s17 }
  0xbf   :  { %v526_v40 = vpop.permute.xlu0 %525 }
  0xc0   :  { %v974_v26 = vsel %vm973_vm4, %v957_v62, %v526_v40 }
  0xc1   :  { %599 = vrot.lane.b32.xlu0 %v3799_v31, %s3262_s0 }
  0xc2   :  { %597 = vrot.lane.b32.xlu1 %v3793_v12, %s3262_s0 }
  0xc5   :  { %851 = vrot.lane.b32.xlu0 %v321_v5, %s3266_s24 }
  0xc6   :  { %849 = vrot.lane.b32.xlu1 %v320_v59, %s3266_s24 }
  0xc9   :  { %473 = vrot.lane.b32.xlu0 %v322_v32, %s3260_s14 }
  0xca   :  { %661 = vrot.lane.b32.xlu1 %v321_v5, %s3263_s13  ;;  %v3886_v5 = vld [vmem:[#allocation2 + $0xd0] sm:$0xff] }
  0xcd   :  { %725 = vrot.lane.b32.xlu0 %v337_v30, %s3264_s16 }
  0xce   :  { %913 = vrot.lane.b32.xlu1 %v383_v29, %s3267_s1 }
  0xd1   :  { %475 = vrot.lane.b32.xlu0 %v323_v33, %s3260_s14 }
  0xd2   :  { %663 = vrot.lane.b32.xlu1 %v322_v32, %s3263_s13 }
  0xd5   :  { %727 = vrot.lane.b32.xlu0 %v385_v34, %s3264_s16 }
  0xd6   :  { %915 = vrot.lane.b32.xlu1 %v337_v30, %s3267_s1  ;;  %v3900_v30 = vld [vmem:[#allocation2 + $0xe0] sm:$0xff] }
  0xd9   :  { %539 = vrot.lane.b32.xlu0 %v339_v35, %s3261_s15 }
  0xda   :  { %537 = vrot.lane.b32.xlu1 %v385_v34, %s3261_s15 }
  0xdd   :  { %791 = vrot.lane.b32.xlu0 %v3817_v36, %s3265_s17 }
  0xde   :  { %789 = vrot.lane.b32.xlu1 %v3799_v31, %s3265_s17 }
  0xe1   :  { %603 = vrot.lane.b32.xlu0 %v355_v13, %s3262_s0 }
  0xe2   :  { %601 = vrot.lane.b32.xlu1 %v3817_v36, %s3262_s0 }
  0xe5   :  { %855 = vrot.lane.b32.xlu0 %v323_v33, %s3266_s24 }
  0xe6   :  { %853 = vrot.lane.b32.xlu1 %v322_v32, %s3266_s24 }
  0xe9   :  { %477 = vrot.lane.b32.xlu0 %v324_v37, %s3260_s14 }
  0xea   :  { %665 = vrot.lane.b32.xlu1 %v323_v33, %s3263_s13 }
  0xed   :  { %729 = vrot.lane.b32.xlu0 %v339_v35, %s3264_s16 }
  0xee   :  { %917 = vrot.lane.b32.xlu1 %v385_v34, %s3267_s1 }
  0xf1   :  { %479 = vrot.lane.b32.xlu0 %v325_v39, %s3260_s14 }
  0xf2   :  { %667 = vrot.lane.b32.xlu1 %v371_v38, %s3263_s13 }
  0xf5   :  { %731 = vrot.lane.b32.xlu0 %v387_v15, %s3264_s16 }
  0xf6   :  { %919 = vrot.lane.b32.xlu1 %v339_v35, %s3267_s1 }
  0xf7   :  { %v590_v42 = vpop.permute.xlu0 %589 }
  0xf8   :  { %v3836_v41 = vpop.permute.xlu1 %463  ;;  %v991_v1 = vsel %vm990_vm5, %v974_v26, %v590_v42 }
  0xf9   :  { %543 = vrot.lane.b32.xlu0 %v341_v43, %s3261_s15  ;;  %v958_v8 = vsel %vm241_vm0, %v3639_v55, %v3836_v41 }
  0xfa   :  { %541 = vrot.lane.b32.xlu1 %v340_v16, %s3261_s15 }
  0xfb   :  { %v654_v18 = vpop.permute.xlu0 %653 }
  0xfc   :  { %v3840_v44 = vpop.permute.xlu1 %527  ;;  %v1008_v27 = vsel %vm1007_vm6, %v991_v1, %v654_v18 }
  0xfd   :  { %795 = vrot.lane.b32.xlu0 %v404_v17, %s3265_s17  ;;  %v975_v29 = vsel %vm973_vm4, %v958_v8, %v3840_v44  ;;  %v329_v17 = vld [vmem:[#allocation2 + $0xf1] sm:$0xff] }
  0xfe   :  { %793 = vrot.lane.b32.xlu1 %v355_v13, %s3265_s17 }
  0xff   :  { %v3846_v47 = vpop.permute.xlu0 %655 }
 0x100   :  { %v3844_v46 = vpop.permute.xlu1 %591 }
 0x101   :  { %607 = vrot.lane.b32.xlu0 %v3850_v20, %s3262_s0  ;;  %v992_v33 = vsel %vm990_vm5, %v975_v29, %v3844_v46  ;;  %v391_v46 = vld [vmem:[#allocation2 + $0xe2] sm:$0xff] }
 0x102   :  { %605 = vrot.lane.b32.xlu1 %v3848_v19, %s3262_s0  ;;  %v1009_v35 = vsel %vm1007_vm6, %v992_v33, %v3846_v47 }
 0x103   :  { %v3858_v51 = vpop.permute.xlu0 %467 }
 0x104   :  { %v3856_v50 = vpop.permute.xlu1 %465 }
 0x105   :  { %859 = vrot.lane.b32.xlu0 %v420_v49, %s3266_s24 }
 0x106   :  { %857 = vrot.lane.b32.xlu1 %v371_v38, %s3266_s24 }
 0x107   :  { %v720_v22 = vpop.permute.xlu0 %719 }
 0x108   :  { %v718_v21 = vpop.permute.xlu1 %717  ;;  %v1026_v13 = vsel %vm1024_vm7, %v1009_v35, %v720_v22  ;;  %v959_v22 = vsel %vm241_vm0, %v3654_v6, %v3856_v50  ;;  %v393_v35 = vld [vmem:[#allocation2 + $0x102] sm:$0xff] }
 0x109   :  { %481 = vrot.lane.b32.xlu0 %v326_v52, %s3260_s14  ;;  %v1025_v28 = vsel %vm1024_vm7, %v1008_v27, %v718_v21  ;;  %v345_v21 = vld [vmem:[#allocation2 + $0xf2] sm:$0xff] }
 0x10a   :  { %669 = vrot.lane.b32.xlu1 %v325_v39, %s3263_s13 }
 0x10b   :  { %v3866_v54 = vpop.permute.xlu0 %531 }
 0x10c   :  { %v3864_v53 = vpop.permute.xlu1 %529 }
 0x10d   :  { %733 = vrot.lane.b32.xlu0 %v341_v43, %s3264_s16 }
 0x10e   :  { %921 = vrot.lane.b32.xlu1 %v387_v15, %s3267_s1  ;;  %v328_v15 = vld [vmem:[#allocation2 + $0xe1] sm:$0xff] }
 0x10f   :  { %v784_v57 = vpop.permute.xlu0 %783 }
 0x110   :  { %v782_v56 = vpop.permute.xlu1 %781  ;;  %v1043_v37 = vsel %vm1041_vm8, %v1026_v13, %v784_v57 }
 0x111   :  { %483 = vrot.lane.b32.xlu0 %v327_v23, %s3260_s14  ;;  %v1042_v7 = vsel %vm1041_vm8, %v1025_v28, %v782_v56 }
 0x112   :  { %671 = vrot.lane.b32.xlu1 %v326_v52, %s3263_s13 }
 0x113   :  { %v3874_v60 = vpop.permute.xlu0 %595 }
 0x114   :  { %v3872_v59 = vpop.permute.xlu1 %593 }
 0x115   :  { %735 = vrot.lane.b32.xlu0 %v389_v61, %s3264_s16 }
 0x116   :  { %923 = vrot.lane.b32.xlu1 %v436_v58, %s3267_s1  ;;  %v3949_v58 = vld [vmem:[#allocation2 + $0xf0] sm:$0xff] }
 0x117   :  { %v848_v25 = vpop.permute.xlu0 %847 }
 0x118   :  { %v846_v63 = vpop.permute.xlu1 %845  ;;  %v1060_v14 = vsel %vm1058_vm9, %v1043_v37, %v848_v25  ;;  %v960_v25 = vsel %vm241_vm0, %v3689_v45, %v3858_v51 }
 0x119   :  { %547 = vrot.lane.b32.xlu0 %v343_v0, %s3261_s15  ;;  %v1059_v9 = vsel %vm1058_vm9, %v1042_v7, %v846_v63  ;;  %v3959_v63 = vld [vmem:[#allocation2 + $0x100] sm:$0xff]  ;;  %v977_v26 = vsel %vm973_vm4, %v960_v25, %v3866_v54 }
 0x11a   :  { %545 = vrot.lane.b32.xlu1 %v389_v61, %s3261_s15 }
 0x11b   :  { %v3883_v4 = vpop.permute.xlu0 %469 }
 0x11c   :  { %v658_v3 = vpop.permute.xlu1 %657 }
 0x11d   :  { %799 = vrot.lane.b32.xlu0 %v3886_v5, %s3265_s17 }
 0x11e   :  { %797 = vrot.lane.b32.xlu1 %v3850_v20, %s3265_s17 }
 0x11f   :  { %v722_v11 = vpop.permute.xlu0 %721 }
 0x120   :  { %v910_v10 = vpop.permute.xlu1 %909 }
 0x121   :  { %v1076_v32 = vsel %vm1075_vm3, %v1059_v9, %v910_v10  ;;  %611 = vrot.lane.b32.xlu0 %v3900_v30, %s3262_s0 }
 0x122   :  { %609 = vrot.lane.b32.xlu1 %v3886_v5, %s3262_s0  ;;  %2890 = vmatprep.mubr.msk.f32.mxu0 %vm1104_vm10, %v1076_v32  ;;  %v331_v32 = vld [vmem:[#allocation2 + $0x111] sm:$0xff] }
 0x123   :  { %v3910_v34 = vpop.permute.xlu0 %471 }
 0x124   :  { %v660_v55 = vpop.permute.xlu1 %659 }
 0x125   :  { %863 = vrot.lane.b32.xlu0 %v327_v23, %s3266_s24 }
 0x126   :  { %861 = vrot.lane.b32.xlu1 %v326_v52, %s3266_s24  ;;  %v976_v52 = vsel %vm973_vm4, %v959_v22, %v3864_v53 }
 0x127   :  { %v724_v39 = vpop.permute.xlu0 %723  ;;  %v993_v56 = vsel %vm990_vm5, %v976_v52, %v3872_v59 }
 0x128   :  { %v912_v38 = vpop.permute.xlu1 %911  ;;  %v1010_v24 = vsel %vm1007_vm6, %v993_v56, %v658_v3 }
 0x129   :  { %v1077_v40 = vsel %vm1075_vm3, %v1060_v14, %v912_v38  ;;  %485 = vrot.lane.b32.xlu0 %v328_v15, %s3260_s14  ;;  %v347_v14 = vld [vmem:[#allocation2 + $0x112] sm:$0xff]  ;;  %v961_v38 = vsel %vm241_vm0, %v3701_v48, %v3883_v4 }
 0x12a   :  { %673 = vrot.lane.b32.xlu1 %v327_v23, %s3263_s13  ;;  %2891 = vmatmul.mubr.msk.f32.vlgmr.msra.gmra.mxu0 %vm1104_vm10, %v1077_v40 }
 0x12b   :  { %v3925_v41 = vpop.permute.xlu0 %535 }
 0x12c   :  { %v3923_v16 = vpop.permute.xlu1 %533 }
 0x12d   :  { %737 = vrot.lane.b32.xlu0 %v343_v0, %s3264_s16 }
 0x12e   :  { %925 = vrot.lane.b32.xlu1 %v389_v61, %s3267_s1  ;;  %v1027_v61 = vsel %vm1024_vm7, %v1010_v24, %v722_v11 }
 0x12f   :  { %v788_v43 = vpop.permute.xlu0 %787 }
 0x130   :  { %v786_v42 = vpop.permute.xlu1 %785 }
 0x131   :  { %487 = vrot.lane.b32.xlu0 %v329_v17, %s3260_s14  ;;  %v1044_v6 = vsel %vm1041_vm8, %v1027_v61, %v786_v42 }
 0x132   :  { %675 = vrot.lane.b32.xlu1 %v328_v15, %s3263_s13 }
 0x133   :  { %v3933_v18 = vpop.permute.xlu0 %599 }
 0x134   :  { %v3931_v44 = vpop.permute.xlu1 %597 }
 0x135   :  { %739 = vrot.lane.b32.xlu0 %v391_v46, %s3264_s16 }
 0x136   :  { %927 = vrot.lane.b32.xlu1 %v343_v0, %s3267_s1  ;;  %v994_v0 = vsel %vm990_vm5, %v977_v26, %v3874_v60  ;;  %v330_v60 = vld [vmem:[#allocation2 + $0x101] sm:$0xff] }
 0x137   :  { %v852_v49 = vpop.permute.xlu0 %851  ;;  %v1011_v27 = vsel %vm1007_vm6, %v994_v0, %v660_v55 }
 0x138   :  { %v850_v47 = vpop.permute.xlu1 %849  ;;  %v1028_v45 = vsel %vm1024_vm7, %v1011_v27, %v724_v39  ;;  %v978_v39 = vsel %vm973_vm4, %v961_v38, %v3923_v16  ;;  %v412_v27 = vld [vmem:[#allocation2 + $0x130] sm:$0xff] }
 0x139   :  { %551 = vrot.lane.b32.xlu0 %v345_v21, %s3261_s15  ;;  %v1061_v50 = vsel %vm1058_vm9, %v1044_v6, %v850_v47  ;;  %v1045_v51 = vsel %vm1041_vm8, %v1028_v45, %v788_v43  ;;  %v995_v40 = vsel %vm990_vm5, %v978_v39, %v3931_v44 }
 0x13a   :  { %549 = vrot.lane.b32.xlu1 %v391_v46, %s3261_s15  ;;  %v1062_v54 = vsel %vm1058_vm9, %v1045_v51, %v852_v49  ;;  %v363_v49 = vld [vmem:[#allocation2 + $0x120] sm:$0xff] }
 0x13b   :  { %v3946_v23 = vpop.permute.xlu0 %473 }
 0x13c   :  { %v662_v57 = vpop.permute.xlu1 %661 }
 0x13d   :  { %803 = vrot.lane.b32.xlu0 %v3949_v58, %s3265_s17  ;;  %v1012_v43 = vsel %vm1007_vm6, %v995_v40, %v662_v57 }
 0x13e   :  { %801 = vrot.lane.b32.xlu1 %v3900_v30, %s3265_s17 }
 0x13f   :  { %v726_v59 = vpop.permute.xlu0 %725 }
 0x140   :  { %v914_v53 = vpop.permute.xlu1 %913 }
 0x141   :  { %v1078_v62 = vsel %vm1075_vm3, %v1061_v50, %v914_v53  ;;  %615 = vrot.lane.b32.xlu0 %v3959_v63, %s3262_s0 }
 0x142   :  { %613 = vrot.lane.b32.xlu1 %v3949_v58, %s3262_s0  ;;  %2893 = vmatprep.mubr.msk.f32.mxu0 %vm1104_vm10, %v1078_v62 }
 0x143   :  { %v3973_v3 = vpop.permute.xlu0 %475 }
 0x144   :  { %v664_v1 = vpop.permute.xlu1 %663 }
 0x145   :  { %867 = vrot.lane.b32.xlu0 %v329_v17, %s3266_s24 }
 0x146   :  { %865 = vrot.lane.b32.xlu1 %v328_v15, %s3266_s24 }
 0x147   :  { %v728_v7 = vpop.permute.xlu0 %727 }
 0x148   :  { %v916_v28 = vpop.permute.xlu1 %915 }
 0x149   :  { %v1079_v8 = vsel %vm1075_vm3, %v1062_v54, %v916_v28  ;;  %489 = vrot.lane.b32.xlu0 %v330_v60, %s3260_s14  ;;  %v963_v54 = vsel %vm241_vm0, %v3799_v31, %v3946_v23  ;;  %v444_v23 = vld [vmem:[#allocation2 + $0x132] sm:$0xff] }
 0x14a   :  { %677 = vrot.lane.b32.xlu1 %v329_v17, %s3263_s13  ;;  %2894 = vmatmul.mubr.msk.f32.gmra.mxu0 %vm1104_vm10, %v1079_v8  ;;  %v4011_v17 = vld [vmem:[#allocation2 + $0x110] sm:$0xff] }
 0x14b   :  { %v3987_v10 = vpop.permute.xlu0 %539 }
 0x14c   :  { %v3985_v9 = vpop.permute.xlu1 %537 }
 0x14d   :  { %741 = vrot.lane.b32.xlu0 %v345_v21, %s3264_s16  ;;  %v980_v28 = vsel %vm973_vm4, %v963_v54, %v3985_v9 }
 0x14e   :  { %929 = vrot.lane.b32.xlu1 %v391_v46, %s3267_s1  ;;  %v1029_v46 = vsel %vm1024_vm7, %v1012_v43, %v726_v59 }
 0x14f   :  { %v792_v29 = vpop.permute.xlu0 %791 }
 0x150   :  { %v790_v11 = vpop.permute.xlu1 %789 }
 0x151   :  { %491 = vrot.lane.b32.xlu0 %v331_v32, %s3260_s14  ;;  %v1046_v48 = vsel %vm1041_vm8, %v1029_v46, %v790_v11 }
 0x152   :  { %679 = vrot.lane.b32.xlu1 %v330_v60, %s3263_s13 }
 0x153   :  { %v3995_v55 = vpop.permute.xlu0 %603 }
 0x154   :  { %v3993_v33 = vpop.permute.xlu1 %601 }
 0x155   :  { %743 = vrot.lane.b32.xlu0 %v393_v35, %s3264_s16  ;;  %v997_v8 = vsel %vm990_vm5, %v980_v28, %v3993_v33  ;;  %v964_v33 = vsel %vm241_vm0, %v3817_v36, %v3973_v3 }
 0x156   :  { %931 = vrot.lane.b32.xlu1 %v345_v21, %s3267_s1  ;;  %v962_v21 = vsel %vm241_vm0, %v3793_v12, %v3910_v34 }
 0x157   :  { %v856_v37 = vpop.permute.xlu0 %855  ;;  %v979_v22 = vsel %vm973_vm4, %v962_v21, %v3925_v41  ;;  %v308_v21 = vld [vmem:[#allocation2 + $0xa0] sm:$0xff] }
 0x158   :  { %v854_v13 = vpop.permute.xlu1 %853  ;;  %v996_v52 = vsel %vm990_vm5, %v979_v22, %v3933_v18  ;;  %v379_v18 = vld [vmem:[#allocation2 + $0x121] sm:$0xff] }
 0x159   :  { %555 = vrot.lane.b32.xlu0 %v347_v14, %s3261_s15  ;;  %v1063_v4 = vsel %vm1058_vm9, %v1046_v48, %v854_v13  ;;  %v1013_v24 = vsel %vm1007_vm6, %v996_v52, %v664_v1  ;;  %v395_v1 = vld [vmem:[#allocation2 + $0x122] sm:$0xff] }
 0x15a   :  { %553 = vrot.lane.b32.xlu1 %v393_v35, %s3261_s15  ;;  %v1030_v12 = vsel %vm1024_vm7, %v1013_v24, %v728_v7  ;;  %v428_v7 = vld [vmem:[#allocation2 + $0x131] sm:$0xff] }
 0x15b   :  { %v4008_v42 = vpop.permute.xlu0 %477  ;;  %v1047_v34 = vsel %vm1041_vm8, %v1030_v12, %v792_v29 }
 0x15c   :  { %v666_v15 = vpop.permute.xlu1 %665  ;;  %v1064_v41 = vsel %vm1058_vm9, %v1047_v34, %v856_v37 }
 0x15d   :  { %807 = vrot.lane.b32.xlu0 %v4011_v17, %s3265_s17  ;;  %v1014_v29 = vsel %vm1007_vm6, %v997_v8, %v666_v15 }
 0x15e   :  { %805 = vrot.lane.b32.xlu1 %v3959_v63, %s3265_s17 }
 0x15f   :  { %v730_v44 = vpop.permute.xlu0 %729 }
 0x160   :  { %v918_v16 = vpop.permute.xlu1 %917 }
 0x161   :  { %v1080_v47 = vsel %vm1075_vm3, %v1063_v4, %v918_v16  ;;  %619 = vrot.lane.b32.xlu0 %v363_v49, %s3262_s0 }
 0x162   :  { %617 = vrot.lane.b32.xlu1 %v4011_v17, %s3262_s0  ;;  %2896 = vmatprep.mubr.msk.f32.mxu0 %vm1104_vm10, %v1080_v47 }
 0x163   :  { %v4032_v57 = vpop.permute.xlu0 %479 }
 0x164   :  { %v668_v56 = vpop.permute.xlu1 %667 }
 0x165   :  { %871 = vrot.lane.b32.xlu0 %v331_v32, %s3266_s24 }
 0x166   :  { %869 = vrot.lane.b32.xlu1 %v330_v60, %s3266_s24 }
 0x167   :  { %v732_v6 = vpop.permute.xlu0 %731 }
 0x168   :  { %v920_v61 = vpop.permute.xlu1 %919 }
 0x169   :  { %v1081_v50 = vsel %vm1075_vm3, %v1064_v41, %v920_v61  ;;  %683 = vrot.lane.b32.xlu0 %v379_v18, %s3263_s13 }
 0x16a   :  { %681 = vrot.lane.b32.xlu1 %v331_v32, %s3263_s13  ;;  %2897 = vmatmul.mubr.msk.f32.gmra.mxu0 %vm1104_vm10, %v1081_v50  ;;  %v1031_v32 = vsel %vm1024_vm7, %v1014_v29, %v730_v44 }
 0x16b   :  { %v4044_v59 = vpop.permute.xlu0 %543 }
 0x16c   :  { %v542_v53 = vpop.permute.xlu1 %541 }
 0x16d   :  { %935 = vrot.lane.b32.xlu0 %v347_v14, %s3267_s1 }
 0x16e   :  { %933 = vrot.lane.b32.xlu1 %v393_v35, %s3267_s1 }
 0x16f   :  { %v796_v25 = vpop.permute.xlu0 %795 }
 0x170   :  { %v794_v62 = vpop.permute.xlu1 %793 }
 0x171   :  { %809 = vrot.lane.b32.xlu0 %v363_v49, %s3265_s17  ;;  %v1048_v31 = vsel %vm1041_vm8, %v1031_v32, %v794_v62 }
 0x172   :  { %745 = vrot.lane.b32.xlu1 %v347_v14, %s3264_s16  ;;  %v981_v14 = vsel %vm973_vm4, %v964_v33, %v3987_v10 }
 0x173   :  { %v4050_v0 = vpop.permute.xlu0 %607  ;;  %v998_v38 = vsel %vm990_vm5, %v981_v14, %v3995_v55 }
 0x174   :  { %v606_v26 = vpop.permute.xlu1 %605  ;;  %v1015_v15 = vsel %vm1007_vm6, %v998_v38, %v668_v56  ;;  %v965_v56 = vsel %vm241_vm0, %v308_v21, %v4008_v42  ;;  %v966_v42 = vsel %vm241_vm0, %v3848_v19, %v4032_v57 }
 0x175   :  { %873 = vrot.lane.b32.xlu0 %v379_v18, %s3266_s24  ;;  %v1032_v43 = vsel %vm1024_vm7, %v1015_v15, %v732_v6  ;;  %v982_v24 = vsel %vm973_vm4, %v965_v56, %v542_v53  ;;  %v983_v53 = vsel %vm973_vm4, %v966_v42, %v4044_v59 }
 0x176   :  { %747 = vrot.lane.b32.xlu1 %v395_v1, %s3264_s16  ;;  %v1049_v46 = vsel %vm1041_vm8, %v1032_v43, %v796_v25  ;;  %v999_v12 = vsel %vm990_vm5, %v982_v24, %v606_v26  ;;  %v1000_v26 = vsel %vm990_vm5, %v983_v53, %v4050_v0 }
 0x177   :  { %v860_v51 = vpop.permute.xlu0 %859 }
 0x178   :  { %v858_v45 = vpop.permute.xlu1 %857  ;;  %v1066_v36 = vsel %vm1058_vm9, %v1049_v46, %v860_v51 }
 0x179   :  { %937 = vrot.lane.b32.xlu0 %v395_v1, %s3267_s1  ;;  %v1065_v35 = vsel %vm1058_vm9, %v1048_v31, %v858_v45 }
 0x17a   :  { %811 = vrot.lane.b32.xlu1 %v412_v27, %s3265_s17 }
 0x17b   :  { %v4063_v11 = vpop.permute.xlu0 %481 }
 0x17c   :  { %v670_v60 = vpop.permute.xlu1 %669 }
 0x17d   :  { %v1016_v61 = vsel %vm1007_vm6, %v999_v12, %v670_v60 }
 0x17e   :  { %875 = vrot.lane.b32.xlu1 %v428_v7, %s3266_s24 }
 0x17f   :  { %v734_v9 = vpop.permute.xlu0 %733 }
 0x180   :  { %v922_v13 = vpop.permute.xlu1 %921  ;;  %v1033_v6 = vsel %vm1024_vm7, %v1016_v61, %v734_v9 }
 0x181   :  { %v1082_v37 = vsel %vm1075_vm3, %v1065_v35, %v922_v13  ;;  %v967_v13 = vsel %vm241_vm0, %v3850_v20, %v4063_v11 }
 0x182   :  { %939 = vrot.lane.b32.xlu1 %v444_v23, %s3267_s1  ;;  %2899 = vmatprep.mubr.msk.f32.mxu0 %vm1104_vm10, %v1082_v37 }
 0x183   :  { %v4080_v40 = vpop.permute.xlu0 %483 }
 0x184   :  { %v672_v39 = vpop.permute.xlu1 %671  ;;  %v968_v20 = vsel %vm241_vm0, %v3886_v5, %v4080_v40 }
 0x185   :  { %v1017_v51 = vsel %vm1007_vm6, %v1000_v26, %v672_v39 }
 0x187   :  { %v736_v48 = vpop.permute.xlu0 %735 }
 0x188   :  { %v924_v3 = vpop.permute.xlu1 %923  ;;  %v1034_v54 = vsel %vm1024_vm7, %v1017_v51, %v736_v48 }
 0x189   :  { %v1083_v4 = vsel %vm1075_vm3, %v1066_v36, %v924_v3 }
 0x18a   :  { %2900 = vmatmul.mubr.msk.f32.gmra.mxu0 %vm1104_vm10, %v1083_v4 }
 0x18b   :  { %v548_v16 = vpop.permute.xlu0 %547 }
 0x18c   :  { %v546_v10 = vpop.permute.xlu1 %545  ;;  %v985_v11 = vsel %vm973_vm4, %v968_v20, %v548_v16 }
 0x18d   :  { %v984_v9 = vsel %vm973_vm4, %v967_v13, %v546_v10 }
 0x18f   :  { %v800_v44 = vpop.permute.xlu0 %799 }
 0x190   :  { %v798_v55 = vpop.permute.xlu1 %797  ;;  %v1051_v28 = vsel %vm1041_vm8, %v1034_v54, %v800_v44 }
 0x191   :  { %v1050_v50 = vsel %vm1041_vm8, %v1033_v6, %v798_v55 }
 0x193   :  { %v612_v49 = vpop.permute.xlu0 %611 }
 0x194   :  { %v610_v47 = vpop.permute.xlu1 %609  ;;  %v1002_v48 = vsel %vm990_vm5, %v985_v11, %v612_v49 }
 0x195   :  { %v1001_v37 = vsel %vm990_vm5, %v984_v9, %v610_v47 }
 0x197   :  { %v864_v52 = vpop.permute.xlu0 %863 }
 0x198   :  { %v862_v22 = vpop.permute.xlu1 %861  ;;  %v1068_v7 = vsel %vm1058_vm9, %v1051_v28, %v864_v52 }
 0x199   :  { %v1067_v18 = vsel %vm1058_vm9, %v1050_v50, %v862_v22 }
 0x19b   :  { %v4092_v41 = vpop.permute.xlu0 %485 }
 0x19c   :  { %v674_v34 = vpop.permute.xlu1 %673  ;;  %v969_v6 = vsel %vm241_vm0, %v3900_v30, %v4092_v41 }
 0x19d   :  { %v1018_v38 = vsel %vm1007_vm6, %v1001_v37, %v674_v34 }
 0x19f   :  { %v738_v25 = vpop.permute.xlu0 %737 }
 0x1a0   :  { %v926_v62 = vpop.permute.xlu1 %925  ;;  %v1035_v39 = vsel %vm1024_vm7, %v1018_v38, %v738_v25 }
 0x1a1   :  { %v1084_v1 = vsel %vm1075_vm3, %v1067_v18, %v926_v62 }
 0x1a2   :  { %2902 = vmatprep.mubr.msk.f32.mxu0 %vm1104_vm10, %v1084_v1 }
 0x1a3   :  { %v488_v45 = vpop.permute.xlu0 %487 }
 0x1a4   :  { %v676_v27 = vpop.permute.xlu1 %675  ;;  %v970_v50 = vsel %vm241_vm0, %v3949_v58, %v488_v45 }
 0x1a5   :  { %v1019_v55 = vsel %vm1007_vm6, %v1002_v48, %v676_v27 }
 0x1a7   :  { %v740_v19 = vpop.permute.xlu0 %739 }
 0x1a8   :  { %v928_v8 = vpop.permute.xlu1 %927  ;;  %v1036_v44 = vsel %vm1024_vm7, %v1019_v55, %v740_v19 }
 0x1a9   :  { %v1085_v57 = vsel %vm1075_vm3, %v1068_v7, %v928_v8 }
 0x1aa   :  { %2903 = vmatmul.mubr.msk.f32.gmra.mxu0 %vm1104_vm10, %v1085_v57 }
 0x1ab   :  { %v552_v60 = vpop.permute.xlu0 %551 }
 0x1ac   :  { %v550_v59 = vpop.permute.xlu1 %549  ;;  %v987_v62 = vsel %vm973_vm4, %v970_v50, %v552_v60 }
 0x1ad   :  { %v986_v18 = vsel %vm973_vm4, %v969_v6, %v550_v59 }
 0x1af   :  { %v804_v0 = vpop.permute.xlu0 %803 }
 0x1b0   :  { %v802_v29 = vpop.permute.xlu1 %801  ;;  %v1053_v47 = vsel %vm1041_vm8, %v1036_v44, %v804_v0 }
 0x1b1   :  { %v1052_v15 = vsel %vm1041_vm8, %v1035_v39, %v802_v29 }
 0x1b3   :  { %v616_v31 = vpop.permute.xlu0 %615 }
 0x1b4   :  { %v614_v32 = vpop.permute.xlu1 %613  ;;  %v1004_v1 = vsel %vm990_vm5, %v987_v62, %v616_v31 }
 0x1b5   :  { %v1003_v25 = vsel %vm990_vm5, %v986_v18, %v614_v32 }
 0x1b7   :  { %v868_v35 = vpop.permute.xlu0 %867 }
 0x1b8   :  { %v866_v23 = vpop.permute.xlu1 %865  ;;  %v1070_v21 = vsel %vm1058_vm9, %v1053_v47, %v868_v35 }
 0x1b9   :  { %v1069_v43 = vsel %vm1058_vm9, %v1052_v15, %v866_v23 }
 0x1bb   :  { %v490_v14 = vpop.permute.xlu0 %489 }
 0x1bc   :  { %v678_v33 = vpop.permute.xlu1 %677  ;;  %v971_v57 = vsel %vm241_vm0, %v3959_v63, %v490_v14 }
 0x1bd   :  { %v1020_v26 = vsel %vm1007_vm6, %v1003_v25, %v678_v33 }
 0x1bf   :  { %v742_v36 = vpop.permute.xlu0 %741 }
 0x1c0   :  { %v930_v46 = vpop.permute.xlu1 %929  ;;  %v1037_v51 = vsel %vm1024_vm7, %v1020_v26, %v742_v36 }
 0x1c1   :  { %v1086_v3 = vsel %vm1075_vm3, %v1069_v43, %v930_v46 }
 0x1c2   :  { %2905 = vmatprep.mubr.msk.f32.mxu0 %vm1104_vm10, %v1086_v3 }
 0x1c3   :  { %v492_v10 = vpop.permute.xlu0 %491 }
 0x1c4   :  { %v680_v4 = vpop.permute.xlu1 %679  ;;  %v972_v14 = vsel %vm241_vm0, %v4011_v17, %v492_v10  ;;  %v4219_v10 = vld [vmem:[%s5093_s2] ss:$0 sm:$0xff] }
 0x1c5   :  { %v1021_v27 = vsel %vm1007_vm6, %v1004_v1, %v680_v4 }
 0x1c7   :  { %v744_v52 = vpop.permute.xlu0 %743 }
 0x1c8   :  { %v932_v22 = vpop.permute.xlu1 %931  ;;  %v1038_v30 = vsel %vm1024_vm7, %v1021_v27, %v744_v52 }
 0x1c9   :  { %v1087_v5 = vsel %vm1075_vm3, %v1070_v21, %v932_v22 }
 0x1ca   :  { %2906 = vmatmul.mubr.msk.f32.gmra.mxu0 %vm1104_vm10, %v1087_v5 }
 0x1cb   :  { %v556_v16 = vpop.permute.xlu0 %555 }
 0x1cc   :  { %v554_v40 = vpop.permute.xlu1 %553  ;;  %v989_v38 = vsel %vm973_vm4, %v972_v14, %v556_v16 }
 0x1cd   :  { %v988_v29 = vsel %vm973_vm4, %v971_v57, %v554_v40 }
 0x1cf   :  { %v808_v49 = vpop.permute.xlu0 %807 }
 0x1d0   :  { %v806_v56 = vpop.permute.xlu1 %805  ;;  %v1055_v41 = vsel %vm1041_vm8, %v1038_v30, %v808_v49 }
 0x1d1   :  { %v1054_v58 = vsel %vm1041_vm8, %v1037_v51, %v806_v56 }
 0x1d3   :  { %v620_v12 = vpop.permute.xlu0 %619 }
 0x1d4   :  { %v618_v24 = vpop.permute.xlu1 %617  ;;  %v1006_v39 = vsel %vm990_vm5, %v989_v38, %v620_v12 }
 0x1d5   :  { %v1005_v0 = vsel %vm990_vm5, %v988_v29, %v618_v24 }
 0x1d7   :  { %v872_v61 = vpop.permute.xlu0 %871 }
 0x1d8   :  { %v870_v34 = vpop.permute.xlu1 %869  ;;  %v1072_v54 = vsel %vm1058_vm9, %v1055_v41, %v872_v61 }
 0x1d9   :  { %v1071_v45 = vsel %vm1058_vm9, %v1054_v58, %v870_v34 }
 0x1db   :  { %v684_v53 = vpop.permute.xlu0 %683 }
 0x1dc   :  { %v682_v42 = vpop.permute.xlu1 %681  ;;  %v1023_v43 = vsel %vm1007_vm6, %v1006_v39, %v684_v53 }
 0x1dd   :  { %v1022_v32 = vsel %vm1007_vm6, %v1005_v0, %v682_v42 }
 0x1df   :  { %v936_v7 = vpop.permute.xlu0 %935 }
 0x1e0   :  { %v934_v28 = vpop.permute.xlu1 %933  ;;  %v1089_v19 = vsel %vm1075_vm3, %v1072_v54, %v936_v7 }
 0x1e1   :  { %v1088_v8 = vsel %vm1075_vm3, %v1071_v45, %v934_v28 }
 0x1e2   :  { %2908 = vmatprep.mubr.msk.f32.mxu0 %vm1104_vm10, %v1088_v8 }
 0x1e3   :  { %2909 = vmatmul.mubr.msk.f32.gmra.mxu0 %vm1104_vm10, %v1089_v19  ;;  %v810_v60 = vpop.permute.xlu0 %809 }
 0x1e4   :  { %v746_v59 = vpop.permute.xlu1 %745 }
 0x1e5   :  { %v1039_v31 = vsel %vm1024_vm7, %v1022_v32, %v746_v59 }
 0x1e6   :  { %v1056_v13 = vsel %vm1041_vm8, %v1039_v31, %v810_v60 }
 0x1e7   :  { %v874_v35 = vpop.permute.xlu0 %873 }
 0x1e8   :  { %v748_v23 = vpop.permute.xlu1 %747  ;;  %v1073_v9 = vsel %vm1058_vm9, %v1056_v13, %v874_v35 }
 0x1e9   :  { %v1040_v46 = vsel %vm1024_vm7, %v1023_v43, %v748_v23 }
 0x1ea   :  { %v2892_v17 = vpop.f32.mrf.mxu0 }
 0x1eb   :  { %v938_v33 = vpop.permute.xlu0 %937  ;;  %v4225_v21 = vadd.f32 %v2892_v17, %v4219_v10 }
 0x1ec   :  { %v812_v37 = vpop.permute.xlu1 %811  ;;  %v1090_v63 = vsel %vm1075_vm3, %v1073_v9, %v938_v33  ;;  %v1223_v48 = vpop.f32.mrf.mxu0 }
 0x1ed   :  { %2911 = vmatprep.mubr.msk.f32.mxu0 %vm1104_vm10, %v1090_v63  ;;  %v1057_v36 = vsel %vm1041_vm8, %v1040_v46, %v812_v37  ;;  %v4222_v44 = vadd.f32 %v4219_v10, %v1223_v48  ;;  %v1340_v5 = vmul.f32 %v4225_v21, %v4225_v21  ;;  %v1303_v56 = vsel %vm1075_vm3, %v4225_v21, 0.0 }
 0x1ef   :  { %v1339_v2 = vmul.f32 %v4222_v44, %v4222_v44  ;;  %v1302_v40 = vsel %vm1075_vm3, %v4222_v44, 0.0  ;;  %v1356_v50 = vsel %vm1075_vm3, %v1340_v5, 0.0 }
 0x1f0   :  { %v876_v15 = vpop.permute.xlu1 %875  ;;  %v1304_v6 = vadd.f32 %v1303_v56, %v1302_v40 }
 0x1f1   :  { %v1074_v3 = vsel %vm1058_vm9, %v1057_v36, %v876_v15  ;;  %v1355_v24 = vsel %vm1075_vm3, %v1339_v2, 0.0 }
 0x1f2   :  { %v1357_v62 = vadd.f32 %v1356_v50, %v1355_v24 }
 0x1f4   :  { %v940_v20 = vpop.permute.xlu1 %939 }
 0x1f5   :  { %v1091_v11 = vsel %vm1075_vm3, %v1074_v3, %v940_v20 }
 0x1f6   :  { %2912 = vmatmul.mubr.msk.f32.gmra.mxu0 %vm1104_vm10, %v1091_v11 }
 0x20a   :  { %v2895_v4 = vpop.f32.mrf.mxu0 }
 0x20b   :  { %v4242_v12 = vadd.f32 %v2895_v4, %v4219_v10 }
 0x20c   :  { %v1233_v55 = vpop.f32.mrf.mxu0 }
 0x20d   :  { %v4228_v22 = vadd.f32 %v4219_v10, %v1233_v55  ;;  %v1342_v42 = vmul.f32 %v4242_v12, %v4242_v12  ;;  %v1307_v51 = vsel %vm1075_vm3, %v4242_v12, 0.0 }
 0x20f   :  { %v1341_v16 = vmul.f32 %v4228_v22, %v4228_v22  ;;  %v1305_v34 = vsel %vm1075_vm3, %v4228_v22, 0.0  ;;  %v1360_v54 = vsel %vm1075_vm3, %v1342_v42, 0.0 }
 0x210   :  { %v1306_v25 = vadd.f32 %v1305_v34, %v1304_v6 }
 0x211   :  { %v1358_v18 = vsel %vm1075_vm3, %v1341_v16, 0.0 }
 0x212   :  { %v1359_v26 = vadd.f32 %v1358_v18, %v1357_v62  ;;  %v1308_v45 = vadd.f32 %v1307_v51, %v1306_v25 }
 0x214   :  { %v1361_v8 = vadd.f32 %v1360_v54, %v1359_v26 }
 0x22a   :  { %v2898_v47 = vpop.f32.mrf.mxu0 }
 0x22b   :  { %v4258_v30 = vadd.f32 %v2898_v47, %v4219_v10 }
 0x22c   :  { %v1243_v52 = vpop.f32.mrf.mxu0 }
 0x22d   :  { %v4247_v61 = vadd.f32 %v4219_v10, %v1243_v52  ;;  %v1344_v57 = vmul.f32 %v4258_v30, %v4258_v30  ;;  %v1311_v0 = vsel %vm1075_vm3, %v4258_v30, 0.0 }
 0x22f   :  { %v1343_v53 = vmul.f32 %v4247_v61, %v4247_v61  ;;  %v1309_v58 = vsel %vm1075_vm3, %v4247_v61, 0.0  ;;  %v1364_v13 = vsel %vm1075_vm3, %v1344_v57, 0.0 }
 0x230   :  { %v1310_v7 = vadd.f32 %v1309_v58, %v1308_v45 }
 0x231   :  { %v1362_v28 = vsel %vm1075_vm3, %v1343_v53, 0.0 }
 0x232   :  { %v1363_v60 = vadd.f32 %v1362_v28, %v1361_v8  ;;  %v1312_v35 = vadd.f32 %v1311_v0, %v1310_v7 }
 0x234   :  { %v1365_v33 = vadd.f32 %v1364_v13, %v1363_v60 }
 0x24a   :  { %v2901_v49 = vpop.f32.mrf.mxu0 }
 0x24b   :  { %v4274_v32 = vadd.f32 %v2901_v49, %v4219_v10 }
 0x24c   :  { %v1253_v1 = vpop.f32.mrf.mxu0 }
 0x24d   :  { %v4263_v41 = vadd.f32 %v4219_v10, %v1253_v1  ;;  %v1346_v14 = vmul.f32 %v4274_v32, %v4274_v32  ;;  %v1315_v43 = vsel %vm1075_vm3, %v4274_v32, 0.0 }
 0x24f   :  { %v1345_v59 = vmul.f32 %v4263_v41, %v4263_v41  ;;  %v1313_v31 = vsel %vm1075_vm3, %v4263_v41, 0.0  ;;  %v1368_v11 = vsel %vm1075_vm3, %v1346_v14, 0.0 }
 0x250   :  { %v1314_v37 = vadd.f32 %v1313_v31, %v1312_v35 }
 0x251   :  { %v1366_v9 = vsel %vm1075_vm3, %v1345_v59, 0.0 }
 0x252   :  { %v1367_v39 = vadd.f32 %v1366_v9, %v1365_v33  ;;  %v1316_v20 = vadd.f32 %v1315_v43, %v1314_v37 }
 0x254   :  { %v1369_v4 = vadd.f32 %v1368_v11, %v1367_v39 }
 0x26a   :  { %v2904_v27 = vpop.f32.mrf.mxu0 }
 0x26b   :  { %v4290_v46 = vadd.f32 %v2904_v27, %v4219_v10 }
 0x26c   :  { %v1263_v19 = vpop.f32.mrf.mxu0 }
 0x26d   :  { %v4279_v23 = vadd.f32 %v4219_v10, %v1263_v19  ;;  %v1348_v47 = vmul.f32 %v4290_v46, %v4290_v46  ;;  %v1319_v5 = vsel %vm1075_vm3, %v4290_v46, 0.0 }
 0x26f   :  { %v1347_v38 = vmul.f32 %v4279_v23, %v4279_v23  ;;  %v1317_v36 = vsel %vm1075_vm3, %v4279_v23, 0.0  ;;  %v1372_v24 = vsel %vm1075_vm3, %v1348_v47, 0.0 }
 0x270   :  { %v1318_v48 = vadd.f32 %v1317_v36, %v1316_v20 }
 0x271   :  { %v1370_v17 = vsel %vm1075_vm3, %v1347_v38, 0.0 }
 0x272   :  { %v1371_v52 = vadd.f32 %v1370_v17, %v1369_v4  ;;  %v1320_v49 = vadd.f32 %v1319_v5, %v1318_v48 }
 0x274   :  { %v1373_v50 = vadd.f32 %v1372_v24, %v1371_v52 }
 0x28a   :  { %v2907_v29 = vpop.f32.mrf.mxu0 }
 0x28b   :  { %v4306_v40 = vadd.f32 %v2907_v29, %v4219_v10 }
 0x28c   :  { %v1273_v63 = vpop.f32.mrf.mxu0 }
 0x28d   :  { %v4295_v3 = vadd.f32 %v4219_v10, %v1273_v63  ;;  %v1350_v18 = vmul.f32 %v4306_v40, %v4306_v40  ;;  %v1323_v1 = vsel %vm1075_vm3, %v4306_v40, 0.0 }
 0x28f   :  { %v1349_v2 = vmul.f32 %v4295_v3, %v4295_v3  ;;  %v1321_v16 = vsel %vm1075_vm3, %v4295_v3, 0.0  ;;  %v1376_v27 = vsel %vm1075_vm3, %v1350_v18, 0.0  ;;  %v2179_v18 = vld [vmem:[%s5096_s5 + $0xf0] sm:$0xff] }
 0x290   :  { %v1322_v6 = vadd.f32 %v1321_v16, %v1320_v49 }
 0x291   :  { %v1374_v34 = vsel %vm1075_vm3, %v1349_v2, 0.0 }
 0x292   :  { %v1375_v25 = vadd.f32 %v1374_v34, %v1373_v50  ;;  %v1324_v26 = vadd.f32 %v1323_v1, %v1322_v6  ;;  %v2180_v34 = vld [vmem:[%s5096_s5 + $0xf8] sm:$0xff]  ;;  %v2162_v1 = vld [vmem:[%s5096_s5 + $0x68] sm:$0xff] }
 0x293   :  { %v2164_v6 = vld [vmem:[%s5096_s5 + $0x78] sm:$0xff]  ;;  %2946 = vmatprep.subr.mxu1 %v2180_v34  ;;  %2780 = vmatprep.subr.mxu0 %v2180_v34 }
 0x294   :  { %v1377_v45 = vadd.f32 %v1376_v27, %v1375_v25  ;;  %2962 = vmatpush3.msra.mxu1 %v2164_v6  ;;  %2781 = vmatpush3.msra.mxu0 %v2164_v6  ;;  %v2178_v25 = vld [vmem:[%s5096_s5 + $0xe8] sm:$0xff]  ;;  %v2161_v27 = vld [vmem:[%s5096_s5 + $0x60] sm:$0xff]  ;;  %v2168_v34 = vld [vmem:[%s5096_s5 + $0x98] sm:$0xff] }
 0x295   :  { %2947 = vmatprep.subr.mxu1 %v2179_v18  ;;  %2782 = vmatprep.subr.mxu0 %v2179_v18  ;;  %v4494_v6 = vld [vmem:[%s5096_s5 + $0x18] sm:$0xff] }
 0x2a3   :  { %v2910_v15 = vpop.f32.mrf.mxu0 }
 0x2a4   :  { %v4322_v42 = vadd.f32 %v2910_v15, %v4219_v10 }
 0x2a5   :  { %v1283_v55 = vpop.f32.mrf.mxu0 }
 0x2a6   :  { %v4311_v56 = vadd.f32 %v4219_v10, %v1283_v55  ;;  %v1352_v28 = vmul.f32 %v4322_v42, %v4322_v42  ;;  %v1327_v57 = vsel %vm1075_vm3, %v4322_v42, 0.0 }
 0x2a8   :  { %v1351_v62 = vmul.f32 %v4311_v56, %v4311_v56  ;;  %v1325_v53 = vsel %vm1075_vm3, %v4311_v56, 0.0  ;;  %v1380_v29 = vsel %vm1075_vm3, %v1352_v28, 0.0  ;;  %v2159_v28 = vld [vmem:[%s5096_s5 + $0x50] sm:$0xff] }
 0x2a9   :  { %v1326_v58 = vadd.f32 %v1325_v53, %v1324_v26  ;;  %v2177_v53 = vld [vmem:[%s5096_s5 + $0xe0] sm:$0xff]  ;;  %v1405_v26 = vlaneseq }
 0x2aa   :  { %v1378_v51 = vsel %vm1075_vm3, %v1351_v62, 0.0  ;;  %v2163_v62 = vld [vmem:[%s5096_s5 + $0x70] sm:$0xff] }
 0x2ab   :  { %v1379_v8 = vadd.f32 %v1378_v51, %v1377_v45  ;;  %v1328_v60 = vadd.f32 %v1327_v57, %v1326_v58  ;;  %2963 = vmatpush3.msra.mxu1 %v2163_v62  ;;  %2783 = vmatpush3.msra.mxu0 %v2163_v62  ;;  %v2176_v51 = vld [vmem:[%s5096_s5 + $0xd8] sm:$0xff]  ;;  %v2175_v45 = vld [vmem:[%s5096_s5 + $0xd0] sm:$0xff]  ;;  %v1397_v57 = vld [vmem:[%s5094_s3] sm:$0x1] }
 0x2ac   :  { %2948 = vmatprep.subr.mxu1 %v2178_v25  ;;  %2784 = vmatprep.subr.mxu0 %v2178_v25  ;;  %v2160_v58 = vld [vmem:[%s5096_s5 + $0x58] sm:$0xff] }
 0x2ad   :  { %v1381_v9 = vadd.f32 %v1380_v29, %v1379_v8  ;;  %2964 = vmatpush3.msra.mxu1 %v2162_v1  ;;  %2785 = vmatpush3.msra.mxu0 %v2162_v1  ;;  %v2174_v8 = vld [vmem:[%s5096_s5 + $0xc8] sm:$0xff]  ;;  %v2167_v1 = vld [vmem:[%s5096_s5 + $0x90] sm:$0xff] }
 0x2ae   :  { %2949 = vmatprep.subr.mxu1 %v2177_v53  ;;  %2786 = vmatprep.subr.mxu0 %v2177_v53  ;;  %v2151_v53 = vld [vmem:[%s5096_s5 + $0x10] sm:$0xff] }
 0x2af   :  { %2965 = vmatpush3.msra.mxu1 %v2161_v27  ;;  %2787 = vmatpush3.msra.mxu0 %v2161_v27 }
 0x2b0   :  { %2950 = vmatprep.subr.mxu1 %v2176_v51  ;;  %2788 = vmatprep.subr.mxu0 %v2176_v51 }
 0x2b1   :  { %2966 = vmatpush3.msra.mxu1 %v2160_v58  ;;  %2789 = vmatpush3.msra.mxu0 %v2160_v58 }
 0x2b2   :  { %2951 = vmatprep.subr.mxu1 %v2175_v45  ;;  %2790 = vmatprep.subr.mxu0 %v2175_v45 }
 0x2b3   :  { %2967 = vmatpush3.msra.mxu1 %v2159_v28  ;;  %2791 = vmatpush3.msra.mxu0 %v2159_v28 }
 0x2b4   :  { %2952 = vmatprep.subr.mxu1 %v2174_v8  ;;  %2792 = vmatprep.subr.mxu0 %v2174_v8 }
 0x2b6   :  { %v2913_v54 = vpop.f32.mrf.mxu0 }
 0x2b7   :  { %v4331_v7 = vadd.f32 %v2913_v54, %v4219_v10  ;;  %v1406_v54 = vshrl.u32 %v1405_v26, 7 }
 0x2b8   :  { %v1293_v19 = vpop.f32.mrf.mxu0 }
 0x2b9   :  { %v4336_v59 = vadd.f32 %v4219_v10, %v1293_v19  ;;  %v1354_v0 = vmul.f32 %v4331_v7, %v4331_v7  ;;  %v1331_v37 = vsel %vm1075_vm3, %v4331_v7, 0.0  ;;  %v2158_v19 = vld [vmem:[%s5096_s5 + $0x48] sm:$0xff]  ;;  %v4401_v29 = vsub.s32 0, %v1406_v54 }
 0x2ba   :  { %2968 = vmatpush3.msra.mxu1 %v2158_v19  ;;  %2793 = vmatpush3.msra.mxu0 %v2158_v19 }
 0x2bb   :  { %v1329_v31 = vsel %vm1075_vm3, %v4336_v59, 0.0  ;;  %v1353_v35 = vmul.f32 %v4336_v59, %v4336_v59  ;;  %v1384_v14 = vsel %vm1075_vm3, %v1354_v0, 0.0  ;;  %v2157_v0 = vld [vmem:[%s5096_s5 + $0x40] sm:$0xff] }
 0x2bc   :  { %v1330_v13 = vadd.f32 %v1329_v31, %v1328_v60  ;;  %v2173_v60 = vld [vmem:[%s5096_s5 + $0xc0] sm:$0xff] }
 0x2bd   :  { %v1382_v10 = vsel %vm1075_vm3, %v1353_v35, 0.0  ;;  %v2172_v35 = vld [vmem:[%s5096_s5 + $0xb8] sm:$0xff]  ;;  %2953 = vmatprep.subr.mxu1 %v2173_v60  ;;  %2794 = vmatprep.subr.mxu0 %v2173_v60 }
 0x2be   :  { %v1332_v33 = vadd.f32 %v1331_v37, %v1330_v13  ;;  %v1383_v63 = vadd.f32 %v1382_v10, %v1381_v9  ;;  %v2156_v9 = vld [vmem:[%s5096_s5 + $0x38] sm:$0xff]  ;;  %v1401_v37 = vld [vmem:[%s5095_s4] sm:$0x1]  ;;  %2969 = vmatpush3.msra.mxu1 %v2157_v0  ;;  %v2171_v10 = vld [vmem:[%s5096_s5 + $0xb0] sm:$0xff]  ;;  %2795 = vmatpush3.msra.mxu0 %v2157_v0  ;;  %s3269_s4 = smov 96  }
 0x2bf   :  { %2954 = vmatprep.subr.mxu1 %v2172_v35  ;;  %2796 = vmatprep.subr.mxu0 %v2172_v35  ;;  %v2150_v35 = vld [vmem:[%s5096_s5 + $0x8] sm:$0xff] }
 0x2c0   :  { %v1333_v38 = vrot.slane %v1332_v33, 4  ;;  %v1385_v39 = vadd.f32 %v1384_v14, %v1383_v63  ;;  %v2155_v14 = vld [vmem:[%s5096_s5 + $0x30] sm:$0xff]  ;;  %2970 = vmatpush3.msra.mxu1 %v2156_v9  ;;  %2797 = vmatpush3.msra.mxu0 %v2156_v9 }
 0x2c1   :  { %2955 = vmatprep.subr.mxu1 %v2171_v10  ;;  %2798 = vmatprep.subr.mxu0 %v2171_v10  ;;  %v2149_v10 = vld [vmem:[%s5096_s5] sm:$0xff] }
 0x2c2   :  { %v1334_v15 = vadd.f32 %v1333_v38, %v1332_v33  ;;  %v1386_v43 = vrot.slane %v1385_v39, 4  ;;  %v4428_v38 = vld [vmem:[%s5096_s5 + $0xa8] sm:$0xff]  ;;  %2971 = vmatpush3.msra.mxu1 %v2155_v14  ;;  %2799 = vmatpush3.msra.mxu0 %v2155_v14 }
 0x2c3   :  { %2956 = vmatprep.subr.mxu1 %v4428_v38  ;;  %2800 = vmatprep.subr.mxu0 %v4428_v38 }
 0x2c4   :  { %v1335_v36 = vrot.slane %v1334_v15, 2  ;;  %v1387_v20 = vadd.f32 %v1386_v43, %v1385_v39 }
 0x2c6   :  { %v1336_v11 = vadd.f32 %v1335_v36, %v1334_v15  ;;  %v1388_v17 = vrot.slane %v1387_v20, 2 }
 0x2c8   :  { %v1337_v48 = vrot.slane %v1336_v11, 1  ;;  %v1389_v4 = vadd.f32 %v1388_v17, %v1387_v20  ;;  %v4439_v20 = vld [vmem:[%s5096_s5 + $0x28] sm:$0xff] }
 0x2c9   :  { %2972 = vmatpush3.msra.mxu1 %v4439_v20  ;;  %2801 = vmatpush3.msra.mxu0 %v4439_v20 }
 0x2ca   :  { %v1338_v55 = vadd.f32 %v1337_v48, %v1336_v11  ;;  %v1390_v47 = vrot.slane %v1389_v4, 1 }
 0x2cc   :  { %v1391_v2 = vadd.f32 %v1390_v47, %v1389_v4  ;;  %v4349_v52 = vmul.f32 0.0078125, %v1338_v55 }
 0x2ce   :  { %v1393_v5 = vmul.f32 0.0078125, %v1391_v2  ;;  %v1394_v16 = vmul.f32 %v4349_v52, %v4349_v52 }
 0x2d0   :  { %v1395_v49 = vsub.f32 %v1393_v5, %v1394_v16 }
 0x2d2   :  { %v1396_v24 = vmax.f32 %v1395_v49, 0.0 }
 0x2d4   :  { %v1398_v50 = vadd.f32 1e-05, %v1396_v24 }
 0x2d6   :  { %3232 = vrsqrt.f32 %v1398_v50 }
 0x2e3   :  { %v3233_v31 = vpop.eup %3232 }
 0x2e4   :  { %v1400_v13 = vmul.f32 %v3233_v31, %v1397_v57  ;;  %v2166_v31 = vld [vmem:[%s5096_s5 + $0x88] sm:$0xff] }
 0x2e6   :  { %v1402_v33 = vmul.f32 %v1400_v13, %v4349_v52  ;;  %v4420_v63 = vrot.slane %v1400_v13, %v4401_v29 }
 0x2e8   :  { %v1403_v39 = vsub.f32 %v1401_v37, %v1402_v33  ;;  %v1424_v15 = vmul.f32 %v4420_v63, %v4336_v59  ;;  %v1411_v43 = vmul.f32 %v4420_v63, %v4225_v21  ;;  %v1413_v36 = vmul.f32 %v4420_v63, %v4242_v12  ;;  %v4452_v12 = vld [vmem:[%s5096_s5 + $0xa0] sm:$0xff] }
 0x2e9   :  { %v1412_v11 = vmul.f32 %v4420_v63, %v4228_v22  ;;  %v1414_v17 = vmul.f32 %v4420_v63, %v4247_v61  ;;  %v1415_v59 = vmul.f32 %v4420_v63, %v4258_v30  ;;  %v1416_v21 = vmul.f32 %v4420_v63, %v4263_v41  ;;  %v4467_v41 = vld [vmem:[%s5096_s5 + $0x20] sm:$0xff]  ;;  %2957 = vmatprep.subr.mxu1 %v4452_v12 }
 0x2ea   :  { %v4455_v48 = vrot.slane %v1403_v39, %v4401_v29  ;;  %v1417_v22 = vmul.f32 %v4420_v63, %v4274_v32  ;;  %v1410_v61 = vmul.f32 %v4420_v63, %v4222_v44  ;;  %v1418_v30 = vmul.f32 %v4420_v63, %v4279_v23  ;;  %2973 = vmatpush3.msra.mxu1 %v4467_v41  ;;  %v2165_v37 = vld [vmem:[%s5096_s5 + $0x80] sm:$0xff] }
 0x2eb   :  { %v1419_v4 = vmul.f32 %v4420_v63, %v4290_v46  ;;  %v1420_v55 = vmul.f32 %v4420_v63, %v4295_v3  ;;  %v1421_v32 = vmul.f32 %v4420_v63, %v4306_v40  ;;  %v1422_v44 = vmul.f32 %v4420_v63, %v4311_v56  ;;  %2958 = vmatprep.subr.mxu1 %v2168_v34 }
 0x2ec   :  { %v1446_v23 = vadd.f32 %v4455_v48, %v1424_v15  ;;  %v1433_v47 = vadd.f32 %v4455_v48, %v1411_v43  ;;  %v1435_v2 = vadd.f32 %v4455_v48, %v1413_v36  ;;  %v1434_v52 = vadd.f32 %v4455_v48, %v1412_v11  ;;  %2974 = vmatpush3.msra.mxu1 %v4494_v6 }
 0x2ed   :  { %v1436_v46 = vadd.f32 %v4455_v48, %v1414_v17  ;;  %v1437_v3 = vadd.f32 %v4455_v48, %v1415_v59  ;;  %v1438_v40 = vadd.f32 %v4455_v48, %v1416_v21  ;;  %v1439_v56 = vadd.f32 %v4455_v48, %v1417_v22  ;;  %2959 = vmatprep.subr.mxu1 %v2167_v1 }
 0x2ee   :  { %v1462_v5 = vmax.f32 %v1446_v23, 0.0  ;;  %v1449_v16 = vmax.f32 %v1433_v47, 0.0  ;;  %v1451_v49 = vmax.f32 %v1435_v2, 0.0  ;;  %v1450_v24 = vmax.f32 %v1434_v52, 0.0  ;;  %2975 = vmatpush3.msra.mxu1 %v2151_v53  ;;  %2802 = vmatprep.subr.mxu0 %v4452_v12 }
 0x2ef   :  { %v1452_v50 = vmax.f32 %v1436_v46, 0.0  ;;  %v1453_v18 = vmax.f32 %v1437_v3, 0.0  ;;  %v1454_v62 = vmax.f32 %v1438_v40, 0.0  ;;  %v1455_v25 = vmax.f32 %v1439_v56, 0.0  ;;  %2960 = vmatprep.subr.mxu1 %v2166_v31  ;;  %2803 = vmatpush3.msra.mxu0 %v4467_v41 }
 0x2f0   :  { %1520 = vst.msk [vmem:[#allocation3 + $0x111] sm:$0xff] %vm1075_vm3, %v1462_v5  ;;  %1507 = vst.msk [vmem:[#allocation3 + $0x21] sm:$0xff] %vm1075_vm3, %v1449_v16  ;;  %v1432_v26 = vadd.f32 %v4455_v48, %v1410_v61  ;;  %v1440_v27 = vadd.f32 %v4455_v48, %v1418_v30  ;;  %v1441_v51 = vadd.f32 %v4455_v48, %v1419_v4  ;;  %2976 = vmatpush3.msra.mxu1 %v2150_v35 }
 0x2f1   :  { %1509 = vst.msk [vmem:[#allocation3 + $0x41] sm:$0xff] %vm1075_vm3, %v1451_v49  ;;  %1508 = vst.msk [vmem:[#allocation3 + $0x31] sm:$0xff] %vm1075_vm3, %v1450_v24  ;;  %v1442_v58 = vadd.f32 %v4455_v48, %v1420_v55  ;;  %v1443_v45 = vadd.f32 %v4455_v48, %v1421_v32  ;;  %v1444_v54 = vadd.f32 %v4455_v48, %v1422_v44  ;;  %2961 = vmatprep.subr.mxu1 %v2165_v37 }
 0x2f2   :  { %1510 = vst.msk [vmem:[#allocation3 + $0x51] sm:$0xff] %vm1075_vm3, %v1452_v50  ;;  %1511 = vst.msk [vmem:[#allocation3 + $0x61] sm:$0xff] %vm1075_vm3, %v1453_v18  ;;  %v1423_v28 = vmul.f32 %v4420_v63, %v4322_v42  ;;  %v1425_v8 = vmul.f32 %v4420_v63, %v4331_v7  ;;  %v1448_v19 = vmax.f32 %v1432_v26, 0.0  ;;  %v1456_v57 = vmax.f32 %v1440_v27, 0.0  ;;  %2977 = vmatpush3.msra.mxu1 %v2149_v10  ;;  %v1626_v27 = vld [vmem:[#allocation3 + $0x90] sm:$0xff] }
 0x2f3   :  { %1512 = vst.msk [vmem:[#allocation3 + $0x71] sm:$0xff] %vm1075_vm3, %v1454_v62  ;;  %1513 = vst.msk [vmem:[#allocation3 + $0x81] sm:$0xff] %vm1075_vm3, %v1455_v25  ;;  %v1457_v60 = vmax.f32 %v1441_v51, 0.0  ;;  %v1458_v0 = vmax.f32 %v1442_v58, 0.0  ;;  %v1459_v42 = vmax.f32 %v1443_v45, 0.0  ;;  %v1460_v13 = vmax.f32 %v1444_v54, 0.0  ;;  %2804 = vmatprep.subr.mxu0 %v2168_v34 }
 0x2f4   :  { %v1445_v7 = vadd.f32 %v4455_v48, %v1423_v28  ;;  %v1447_v9 = vadd.f32 %v4455_v48, %v1425_v8  ;;  %1506 = vst.msk [vmem:[#allocation3 + $0x11] sm:$0xff] %vm1075_vm3, %v1448_v19  ;;  %1514 = vst.msk [vmem:[#allocation3 + $0xb1] sm:$0xff] %vm1075_vm3, %v1456_v57  ;;  %2805 = vmatpush3.msra.mxu0 %v4494_v6  ;;  %v1538_v34 = vld [vmem:[#allocation3 + $0x1] sm:$0xff]  ;;  %v1642_v54 = vld [vmem:[#allocation3 + $0x91] sm:$0xff] }
 0x2f5   :  { %1515 = vst.msk [vmem:[#allocation3 + $0xc1] sm:$0xff] %vm1075_vm3, %v1457_v60  ;;  %1516 = vst.msk [vmem:[#allocation3 + $0xd1] sm:$0xff] %vm1075_vm3, %v1458_v0  ;;  %2806 = vmatprep.subr.mxu0 %v2167_v1  ;;  %v1554_v25 = vld [vmem:[#allocation3 + $0x2] sm:$0xff]  ;;  %v4637_v8 = vld [vmem:[%s5096_s5 + $0x118] sm:$0xff] }
 0x2f6   :  { %1517 = vst.msk [vmem:[#allocation3 + $0xe1] sm:$0xff] %vm1075_vm3, %v1459_v42  ;;  %1518 = vst.msk [vmem:[#allocation3 + $0xf1] sm:$0xff] %vm1075_vm3, %v1460_v13  ;;  %v1461_v33 = vmax.f32 %v1445_v7, 0.0  ;;  %v1463_v63 = vmax.f32 %v1447_v9, 0.0  ;;  %2807 = vmatpush3.msra.mxu0 %v2151_v53  ;;  %v1546_v60 = vld [vmem:[#allocation3 + $0xa1] sm:$0xff] }
 0x2f7   :  { %v4545_v14 = vld [vmem:[#allocation3 + $0x22] sm:$0xff]  ;;  %2808 = vmatprep.subr.mxu0 %v2166_v31 }
 0x2f8   :  { %v4547_v38 = vld [vmem:[#allocation3 + $0x40] sm:$0xff]  ;;  %1519 = vst.msk [vmem:[#allocation3 + $0x101] sm:$0xff] %vm1075_vm3, %v1461_v33  ;;  %1521 = vst.msk [vmem:[#allocation3 + $0x121] sm:$0xff] %vm1075_vm3, %v1463_v63  ;;  %v1604_v43 = vld [vmem:[#allocation3 + $0x32] sm:$0xff]  ;;  %2809 = vmatpush3.msra.mxu0 %v2150_v35 }
 0x2f9   :  { %v4549_v39 = vld [vmem:[#allocation3 + $0x21] sm:$0xff]  ;;  %v2997_v15 = vpack.i.bf16 %v4545_v14, %v4547_v38  ;;  %v4557_v20 = vld [vmem:[#allocation3 + $0x31] sm:$0xff]  ;;  %2810 = vmatprep.subr.mxu0 %v2165_v37 }
 0x2fa   :  { %v2992_v36 = vpack.i.bf16 %v4549_v39, %v1604_v43  ;;  %v1605_v11 = vld [vmem:[#allocation3 + $0x42] sm:$0xff]  ;;  %v4560_v17 = vld [vmem:[#allocation3 + $0x30] sm:$0xff]  ;;  %2811 = vmatpush3.msra.mxu0 %v2149_v10 }
 0x2fb   :  { %2998 = vrot.lane.b32.xlu1 %v2997_v15, %s3268_s30  ;;  %v4562_v59 = vld [vmem:[#allocation3 + $0x41] sm:$0xff]  ;;  %v3007_v21 = vpack.i.bf16 %v4557_v20, %v1605_v11  ;;  %v4568_v48 = vld [vmem:[#allocation3 + $0x51] sm:$0xff]  ;;  %2914 = vmatprep.subr.mxu0 %v4637_v8 }
 0x2fc   :  { %2993 = vrot.lane.b32.xlu0 %v2992_v36, %s3267_s1  ;;  %v3002_v12 = vpack.i.bf16 %v4560_v17, %v4562_v59  ;;  %v4571_v22 = vld [vmem:[#allocation3 + $0x50] sm:$0xff]  ;;  %v3017_v61 = vpack.i.bf16 %v4547_v38, %v4568_v48  ;;  %v4577_v41 = vld [vmem:[#allocation3 + $0x60] sm:$0xff] }
 0x2fd   :  { %v3012_v30 = vpack.i.bf16 %v1604_v43, %v4571_v22  ;;  %v4580_v4 = vld [vmem:[#allocation3 + $0x52] sm:$0xff]  ;;  %v3027_v55 = vpack.i.bf16 %v1605_v11, %v4577_v41  ;;  %v1607_v44 = vld [vmem:[#allocation3 + $0x62] sm:$0xff] }
 0x2fe   :  { %v3022_v32 = vpack.i.bf16 %v4562_v59, %v4580_v4  ;;  %v4587_v23 = vld [vmem:[#allocation3 + $0x61] sm:$0xff]  ;;  %v3037_v47 = vpack.i.bf16 %v4568_v48, %v1607_v44  ;;  %v4593_v52 = vld [vmem:[#allocation3 + $0x71] sm:$0xff] }
 0x2ff   :  { %3008 = vrot.lane.b32.xlu1 %v3007_v21, %s3267_s1  ;;  %v3032_v2 = vpack.i.bf16 %v4571_v22, %v4587_v23  ;;  %v4596_v46 = vld [vmem:[#allocation3 + $0x70] sm:$0xff]  ;;  %v3047_v3 = vpack.i.bf16 %v4577_v41, %v4593_v52  ;;  %v1625_v56 = vld [vmem:[#allocation3 + $0x80] sm:$0xff] }
 0x300   :  { %3003 = vrot.lane.b32.xlu0 %v3002_v12, %s3269_s4  ;;  %v3042_v40 = vpack.i.bf16 %v4580_v4, %v4596_v46  ;;  %v4604_v5 = vld [vmem:[#allocation3 + $0x72] sm:$0xff]  ;;  %v3057_v16 = vpack.i.bf16 %v1607_v44, %v1625_v56  ;;  %v4609_v24 = vld [vmem:[#allocation3 + $0x81] sm:$0xff]  ;;  %v3097_v19 = vpack.i.bf16 %v1625_v56, %v1642_v54 }
 0x301   :  { %v3052_v49 = vpack.i.bf16 %v4587_v23, %v4604_v5  ;;  %v1602_v6 = vld [vmem:[#allocation3 + $0x12] sm:$0xff]  ;;  %v3067_v50 = vpack.i.bf16 %v4596_v46, %v4609_v24  ;;  %v4615_v62 = vld [vmem:[#allocation3 + $0x82] sm:$0xff]  ;;  %v3087_v58 = vpack.i.bf16 %v4604_v5, %v1626_v27 }
 0x302   :  { %v3062_v18 = vpack.i.bf16 %v1538_v34, %v1602_v6  ;;  %v4618_v1 = vld [vmem:[#allocation3 + $0x20] sm:$0xff]  ;;  %v3077_v53 = vpack.i.bf16 %v4593_v52, %v4615_v62  ;;  %v4625_v51 = vld [vmem:[#allocation3 + $0x10] sm:$0xff]  ;;  %v3102_v35 = vpack.i.bf16 %v1602_v6, %v4560_v17 }
 0x303   :  { %3018 = vrot.lane.b32.xlu1 %v3017_v61, %s3269_s4  ;;  %v3072_v26 = vpack.i.bf16 %v1554_v25, %v4618_v1  ;;  %v3082_v45 = vpack.i.bf16 %v4625_v51, %v4549_v39  ;;  %v4632_v28 = vld [vmem:[#allocation3 + $0x11] sm:$0xff]  ;;  %v1562_v42 = vld [vmem:[#allocation3 + $0xa2] sm:$0xff]  ;;  %v3112_v9 = vpack.i.bf16 %v4618_v1, %v4557_v20 }
 0x304   :  { %3013 = vrot.lane.b32.xlu0 %v3012_v30, %s3268_s30  ;;  %v3092_v57 = vpack.i.bf16 %v4632_v28, %v4545_v14  ;;  %v1610_v0 = vld [vmem:[#allocation3 + $0xb2] sm:$0xff]  ;;  %v4646_v13 = vld [vmem:[#allocation3 + $0xc0] sm:$0xff] }
 0x305   :  { %v3107_v31 = vpack.i.bf16 %v1546_v60, %v1610_v0  ;;  %v3117_v7 = vpack.i.bf16 %v1562_v42, %v4646_v13  ;;  %v4653_v37 = vld [vmem:[#allocation3 + $0xb1] sm:$0xff]  ;;  %v4655_v10 = vld [vmem:[#allocation3 + $0xc2] sm:$0xff] }
 0x306   :  { %v4658_v33 = vld [vmem:[#allocation3 + $0xb0] sm:$0xff]  ;;  %v4660_v63 = vld [vmem:[#allocation3 + $0xc1] sm:$0xff]  ;;  %v3127_v14 = vpack.i.bf16 %v4653_v37, %v4655_v10 }
 0x307   :  { %3028 = vrot.lane.b32.xlu1 %v3027_v55, %s3268_s30  ;;  %v3122_v15 = vpack.i.bf16 %v4658_v33, %v4660_v63  ;;  %v4667_v43 = vld [vmem:[#allocation3 + $0xd1] sm:$0xff]  ;;  %v4676_v12 = vld [vmem:[#allocation3 + $0xe0] sm:$0xff] }
 0x308   :  { %3023 = vrot.lane.b32.xlu0 %v3022_v32, %s3267_s1  ;;  %v4670_v36 = vld [vmem:[#allocation3 + $0xd0] sm:$0xff]  ;;  %v3137_v11 = vpack.i.bf16 %v4646_v13, %v4667_v43  ;;  %v3147_v30 = vpack.i.bf16 %v4655_v10, %v4676_v12  ;;  %v4686_v32 = vld [vmem:[#allocation3 + $0xe2] sm:$0xff] }
 0x309   :  { %v3132_v21 = vpack.i.bf16 %v1610_v0, %v4670_v36  ;;  %v4679_v61 = vld [vmem:[#allocation3 + $0xd2] sm:$0xff]  ;;  %v4689_v44 = vld [vmem:[#allocation3 + $0xe1] sm:$0xff] }
 0x30a   :  { %v3142_v55 = vpack.i.bf16 %v4660_v63, %v4679_v61  ;;  %v4709_v34 = vld [vmem:[#allocation3 + $0xf2] sm:$0xff]  ;;  %v4719_v25 = vld [vmem:[#allocation3 + $0x101] sm:$0xff] }
 0x30b   :  { %3038 = vrot.lane.b32.xlu1 %v3037_v47, %s3267_s1  ;;  %v3157_v47 = vpack.i.bf16 %v4667_v43, %v4686_v32  ;;  %v4726_v27 = vld [vmem:[#allocation3 + $0x111] sm:$0xff] }
 0x30c   :  { %3033 = vrot.lane.b32.xlu0 %v3032_v2, %s3269_s4  ;;  %v3152_v2 = vpack.i.bf16 %v4670_v36, %v4689_v44 }
 0x30f   :  { %3048 = vrot.lane.b32.xlu1 %v3047_v3, %s3269_s4  ;;  %v4696_v3 = vld [vmem:[#allocation3 + $0xf1] sm:$0xff] }
 0x310   :  { %3043 = vrot.lane.b32.xlu0 %v3042_v40, %s3268_s30  ;;  %v4699_v40 = vld [vmem:[#allocation3 + $0xf0] sm:$0xff]  ;;  %v3167_v56 = vpack.i.bf16 %v4676_v12, %v4696_v3 }
 0x313   :  { %3058 = vrot.lane.b32.xlu1 %v3057_v16, %s3268_s30  ;;  %v3162_v16 = vpack.i.bf16 %v4679_v61, %v4699_v40 }
 0x314   :  { %3053 = vrot.lane.b32.xlu0 %v3052_v49, %s3267_s1  ;;  %v4706_v49 = vld [vmem:[#allocation3 + $0x100] sm:$0xff] }
 0x315   :  { %v3177_v6 = vpack.i.bf16 %v4686_v32, %v4706_v49 }
 0x317   :  { %3068 = vrot.lane.b32.xlu1 %v3067_v50, %s3269_s4  ;;  %v3172_v50 = vpack.i.bf16 %v4689_v44, %v4709_v34 }
 0x318   :  { %3063 = vrot.lane.b32.xlu0 %v3062_v18, %s3267_s1  ;;  %v4716_v18 = vld [vmem:[#allocation3 + $0x102] sm:$0xff] }
 0x31b   :  { %3078 = vrot.lane.b32.xlu1 %v3077_v53, %s3267_s1  ;;  %v3187_v53 = vpack.i.bf16 %v4696_v3, %v4716_v18 }
 0x31c   :  { %3073 = vrot.lane.b32.xlu0 %v3072_v26, %s3268_s30  ;;  %v3182_v26 = vpack.i.bf16 %v4699_v40, %v4719_v25 }
 0x31f   :  { %3088 = vrot.lane.b32.xlu1 %v3087_v58, %s3268_s30  ;;  %v4729_v58 = vld [vmem:[#allocation3 + $0x110] sm:$0xff] }
 0x320   :  { %3083 = vrot.lane.b32.xlu0 %v3082_v45, %s3269_s4  ;;  %v3197_v45 = vpack.i.bf16 %v4706_v49, %v4726_v27  ;;  %v3192_v54 = vpack.i.bf16 %v4709_v34, %v4729_v58 }
 0x323   :  { %3098 = vrot.lane.b32.xlu1 %v3097_v19, %s3269_s4  ;;  %v1633_v19 = vld [vmem:[#allocation3 + $0x120] sm:$0xff] }
 0x324   :  { %3093 = vrot.lane.b32.xlu0 %v3092_v57, %s3267_s1  ;;  %v4737_v57 = vld [vmem:[#allocation3 + $0x112] sm:$0xff]  ;;  %v3207_v60 = vpack.i.bf16 %v4716_v18, %v1633_v19 }
 0x325   :  { %v3202_v0 = vpack.i.bf16 %v4719_v25, %v4737_v57 }
 0x327   :  { %3108 = vrot.lane.b32.xlu1 %v3107_v31, %s3267_s1  ;;  %v4743_v31 = vld [vmem:[#allocation3 + $0x122] sm:$0xff] }
 0x328   :  { %3103 = vrot.lane.b32.xlu0 %v3102_v35, %s3268_s30  ;;  %v4746_v35 = vld [vmem:[#allocation3 + $0x121] sm:$0xff]  ;;  %v3217_v42 = vpack.i.bf16 %v4726_v27, %v4743_v31 }
 0x32b   :  { %3118 = vrot.lane.b32.xlu1 %v3117_v7, %s3268_s30  ;;  %v3212_v7 = vpack.i.bf16 %v4729_v58, %v4746_v35 }
 0x32c   :  { %3113 = vrot.lane.b32.xlu0 %v3112_v9, %s3269_s4  ;;  %v1650_v9 = vld [vmem:[#allocation3 + $0x131] sm:$0xff] }
 0x32f   :  { %3128 = vrot.lane.b32.xlu1 %v3127_v14, %s3267_s1  ;;  %v1634_v14 = vld [vmem:[#allocation3 + $0x130] sm:$0xff] }
 0x330   :  { %3123 = vrot.lane.b32.xlu0 %v3122_v15, %s3269_s4  ;;  %v3227_v15 = vpack.i.bf16 %v1633_v19, %v1650_v9 }
 0x333   :  { %3138 = vrot.lane.b32.xlu1 %v3137_v11, %s3269_s4  ;;  %v3222_v11 = vpack.i.bf16 %v4737_v57, %v1634_v14 }
 0x334   :  { %3133 = vrot.lane.b32.xlu0 %v3132_v21, %s3268_s30 }
 0x337   :  { %3148 = vrot.lane.b32.xlu1 %v3147_v30, %s3268_s30 }
 0x338   :  { %3143 = vrot.lane.b32.xlu0 %v3142_v55, %s3267_s1 }
 0x33b   :  { %3158 = vrot.lane.b32.xlu1 %v3157_v47, %s3267_s1 }
 0x33c   :  { %3153 = vrot.lane.b32.xlu0 %v3152_v2, %s3269_s4 }
 0x33f   :  { %3168 = vrot.lane.b32.xlu1 %v3167_v56, %s3269_s4 }
 0x340   :  { %3163 = vrot.lane.b32.xlu0 %v3162_v16, %s3268_s30 }
 0x343   :  { %3178 = vrot.lane.b32.xlu1 %v3177_v6, %s3268_s30 }
 0x344   :  { %3173 = vrot.lane.b32.xlu0 %v3172_v50, %s3267_s1 }
 0x347   :  { %3188 = vrot.lane.b32.xlu1 %v3187_v53, %s3267_s1 }
 0x348   :  { %3183 = vrot.lane.b32.xlu0 %v3182_v26, %s3269_s4 }
 0x34b   :  { %3198 = vrot.lane.b32.xlu1 %v3197_v45, %s3269_s4 }
 0x34c   :  { %3193 = vrot.lane.b32.xlu0 %v3192_v54, %s3268_s30 }
 0x34f   :  { %3208 = vrot.lane.b32.xlu1 %v3207_v60, %s3268_s30 }
 0x350   :  { %3203 = vrot.lane.b32.xlu0 %v3202_v0, %s3267_s1 }
 0x353   :  { %3218 = vrot.lane.b32.xlu1 %v3217_v42, %s3267_s1 }
 0x354   :  { %3213 = vrot.lane.b32.xlu0 %v3212_v7, %s3269_s4 }
 0x357   :  { %3228 = vrot.lane.b32.xlu1 %v3227_v15, %s3269_s4 }
 0x358   :  { %3223 = vrot.lane.b32.xlu0 %v3222_v11, %s3268_s30 }
 0x36d   :  { %v2999_v21 = vpop.permute.xlu1 %2998 }
 0x36e   :  { %v2994_v30 = vpop.permute.xlu0 %2993  ;;  %v3001_v2 = vunpack.i.h.bf16 %v2999_v21  ;;  %v3000_v56 = vunpack.i.l.bf16 %v2999_v21 }
 0x36f   :  { %v2996_v55 = vunpack.i.h.bf16 %v2994_v30  ;;  %v2995_v47 = vunpack.i.l.bf16 %v2994_v30 }
 0x371   :  { %v3009_v16 = vpop.permute.xlu1 %3008  ;;  %v2103_v6 = vsel %vm1075_vm3, %v4557_v20, %v2995_v47  ;;  %v2053_v50 = vsel %vm1075_vm3, %v4618_v1, %v2996_v55 }
 0x372   :  { %v3004_v53 = vpop.permute.xlu0 %3003  ;;  %v3011_v54 = vunpack.i.h.bf16 %v3009_v16  ;;  %v3010_v19 = vunpack.i.l.bf16 %v3009_v16  ;;  %v2119_v60 = vsel %vm2067_vm12, %v2103_v6, %v3000_v56  ;;  %v2070_v0 = vsel %vm2067_vm12, %v2053_v50, %v3001_v2 }
 0x373   :  { %v3006_v26 = vunpack.i.h.bf16 %v3004_v53  ;;  %v3005_v45 = vunpack.i.l.bf16 %v3004_v53 }
 0x374   :  { %v2104_v21 = vsel %vm1075_vm3, %v4562_v59, %v3010_v19  ;;  %v2054_v30 = vsel %vm1075_vm3, %v4560_v17, %v3011_v54 }
 0x375   :  { %v3019_v42 = vpop.permute.xlu1 %3018  ;;  %v2135_v7 = vsel %vm2084_vm13, %v2119_v60, %v3005_v45  ;;  %v2087_v9 = vsel %vm2084_vm13, %v2070_v0, %v3006_v26 }
 0x376   :  { %v3021_v14 = vunpack.i.h.bf16 %v3019_v42  ;;  %v3020_v20 = vunpack.i.l.bf16 %v3019_v42  ;;  %v3014_v15 = vpop.permute.xlu0 %3013  ;;  %2314 = vmatprep.mubr.f32.mxu1 %v2135_v7 }
 0x377   :  { %v3016_v1 = vunpack.i.h.bf16 %v3014_v15  ;;  %v3015_v11 = vunpack.i.l.bf16 %v3014_v15  ;;  %2315 = vmatmul.mubr.f32.vlgmr.msra.gmra.mxu1 %v2087_v9 }
 0x379   :  { %v3029_v55 = vpop.permute.xlu1 %3028  ;;  %v2120_v47 = vsel %vm2067_vm12, %v2104_v21, %v3015_v11  ;;  %v2071_v2 = vsel %vm2067_vm12, %v2054_v30, %v3016_v1 }
 0x37a   :  { %v3024_v56 = vpop.permute.xlu0 %3023  ;;  %v2136_v16 = vsel %vm2084_vm13, %v2120_v47, %v3020_v20  ;;  %v2088_v6 = vsel %vm2084_vm13, %v2071_v2, %v3021_v14  ;;  %v3031_v26 = vunpack.i.h.bf16 %v3029_v55  ;;  %v3030_v45 = vunpack.i.l.bf16 %v3029_v55 }
 0x37b   :  { %v3026_v50 = vunpack.i.h.bf16 %v3024_v56  ;;  %v3025_v53 = vunpack.i.l.bf16 %v3024_v56  ;;  %2319 = vmatprep.mubr.f32.mxu1 %v2136_v16 }
 0x37c   :  { %2320 = vmatmul.mubr.f32.gmra.mxu1 %v2088_v6 }
 0x37d   :  { %v3039_v59 = vpop.permute.xlu1 %3038  ;;  %v2105_v17 = vsel %vm1075_vm3, %v4568_v48, %v3025_v53  ;;  %v2055_v54 = vsel %vm1075_vm3, %v4547_v38, %v3026_v50 }
 0x37e   :  { %v3034_v19 = vpop.permute.xlu0 %3033  ;;  %v3041_v42 = vunpack.i.h.bf16 %v3039_v59  ;;  %v3040_v7 = vunpack.i.l.bf16 %v3039_v59  ;;  %v2121_v9 = vsel %vm2067_vm12, %v2105_v17, %v3030_v45  ;;  %v2072_v14 = vsel %vm2067_vm12, %v2055_v54, %v3031_v26 }
 0x37f   :  { %v3036_v60 = vunpack.i.h.bf16 %v3034_v19  ;;  %v3035_v0 = vunpack.i.l.bf16 %v3034_v19 }
 0x380   :  { %v2106_v55 = vsel %vm1075_vm3, %v4587_v23, %v3040_v7  ;;  %v2056_v47 = vsel %vm1075_vm3, %v4571_v22, %v3041_v42 }
 0x381   :  { %v3049_v20 = vpop.permute.xlu1 %3048  ;;  %v2137_v15 = vsel %vm2084_vm13, %v2121_v9, %v3035_v0  ;;  %v2089_v1 = vsel %vm2084_vm13, %v2072_v14, %v3036_v60 }
 0x382   :  { %v3051_v11 = vunpack.i.h.bf16 %v3049_v20  ;;  %v3050_v21 = vunpack.i.l.bf16 %v3049_v20  ;;  %v3044_v48 = vpop.permute.xlu0 %3043  ;;  %2324 = vmatprep.mubr.f32.mxu1 %v2137_v15 }
 0x383   :  { %v3046_v30 = vunpack.i.h.bf16 %v3044_v48  ;;  %v3045_v38 = vunpack.i.l.bf16 %v3044_v48  ;;  %2325 = vmatmul.mubr.f32.gmra.mxu1 %v2089_v1 }
 0x385   :  { %v3059_v2 = vpop.permute.xlu1 %3058  ;;  %v2122_v56 = vsel %vm2067_vm12, %v2106_v55, %v3045_v38  ;;  %v2073_v16 = vsel %vm2067_vm12, %v2056_v47, %v3046_v30 }
 0x386   :  { %v3054_v6 = vpop.permute.xlu0 %3053  ;;  %v2138_v50 = vsel %vm2084_vm13, %v2122_v56, %v3050_v21  ;;  %v2090_v53 = vsel %vm2084_vm13, %v2073_v16, %v3051_v11  ;;  %v3061_v26 = vunpack.i.h.bf16 %v3059_v2  ;;  %v3060_v45 = vunpack.i.l.bf16 %v3059_v2 }
 0x387   :  { %v3056_v59 = vunpack.i.h.bf16 %v3054_v6  ;;  %v3055_v17 = vunpack.i.l.bf16 %v3054_v6  ;;  %2329 = vmatprep.mubr.f32.mxu1 %v2138_v50 }
 0x388   :  { %2330 = vmatmul.mubr.f32.gmra.mxu1 %v2090_v53 }
 0x389   :  { %v3069_v23 = vpop.permute.xlu1 %3068  ;;  %v2107_v22 = vsel %vm1075_vm3, %v4593_v52, %v3055_v17  ;;  %v2057_v54 = vsel %vm1075_vm3, %v4577_v41, %v3056_v59  ;;  %v1522_v52 = vld [vmem:[#allocation3] sm:$0xff] }
 0x38a   :  { %v3071_v19 = vunpack.i.h.bf16 %v3069_v23  ;;  %v3070_v60 = vunpack.i.l.bf16 %v3069_v23  ;;  %v3064_v0 = vpop.permute.xlu0 %3063  ;;  %v2123_v42 = vsel %vm2067_vm12, %v2107_v22, %v3060_v45  ;;  %v2074_v7 = vsel %vm2067_vm12, %v2057_v54, %v3061_v26 }
 0x38b   :  { %v3066_v15 = vunpack.i.h.bf16 %v3064_v0  ;;  %v3065_v1 = vunpack.i.l.bf16 %v3064_v0 }
 0x38c   :  { %v2139_v9 = vsel %vm2084_vm13, %v2123_v42, %v3070_v60  ;;  %v2091_v14 = vsel %vm2084_vm13, %v2074_v7, %v3071_v19  ;;  %v2183_v60 = vld [vmem:[%s5096_s5 + $0x110] sm:$0xff] }
 0x38d   :  { %v3079_v20 = vpop.permute.xlu1 %3078  ;;  %2334 = vmatprep.mubr.f32.mxu1 %v2139_v9  ;;  %v2051_v30 = vsel %vm1075_vm3, %v1522_v52, %v3066_v15  ;;  %v2101_v2 = vsel %vm1075_vm3, %v4632_v28, %v3065_v1  ;;  %v2181_v1 = vld [vmem:[%s5096_s5 + $0x100] sm:$0xff] }
 0x38e   :  { %v3074_v11 = vpop.permute.xlu0 %3073  ;;  %2335 = vmatmul.mubr.f32.gmra.mxu1 %v2091_v14  ;;  %v3081_v38 = vunpack.i.h.bf16 %v3079_v20  ;;  %v3080_v55 = vunpack.i.l.bf16 %v3079_v20 }
 0x38f   :  { %v3076_v21 = vunpack.i.h.bf16 %v3074_v11  ;;  %v3075_v41 = vunpack.i.l.bf16 %v3074_v11 }
 0x390   :  { %v2108_v28 = vsel %vm1075_vm3, %v4609_v24, %v3080_v55  ;;  %v2058_v19 = vsel %vm1075_vm3, %v4596_v46, %v3081_v38  ;;  %v2182_v24 = vld [vmem:[%s5096_s5 + $0x108] sm:$0xff] }
 0x391   :  { %v3089_v48 = vpop.permute.xlu1 %3088  ;;  %v2068_v53 = vsel %vm2067_vm12, %v2051_v30, %v3076_v21  ;;  %v2117_v26 = vsel %vm2067_vm12, %v2101_v2, %v3075_v41 }
 0x392   :  { %v3084_v47 = vpop.permute.xlu0 %3083  ;;  %v3091_v56 = vunpack.i.h.bf16 %v3089_v48  ;;  %v3090_v16 = vunpack.i.l.bf16 %v3089_v48 }
 0x393   :  { %v3086_v6 = vunpack.i.h.bf16 %v3084_v47  ;;  %v3085_v50 = vunpack.i.l.bf16 %v3084_v47 }
 0x394   :  { %v2124_v0 = vsel %vm2067_vm12, %v2108_v28, %v3090_v16  ;;  %v2075_v42 = vsel %vm2067_vm12, %v2058_v19, %v3091_v56 }
 0x395   :  { %v3099_v45 = vpop.permute.xlu1 %3098  ;;  %v2133_v59 = vsel %vm2084_vm13, %v2117_v26, %v3085_v50  ;;  %v2085_v17 = vsel %vm2084_vm13, %v2068_v53, %v3086_v6  ;;  %v1530_v50 = vld [vmem:[#allocation3 + $0xa0] sm:$0xff] }
 0x396   :  { %v3101_v23 = vunpack.i.h.bf16 %v3099_v45  ;;  %v3100_v22 = vunpack.i.l.bf16 %v3099_v45  ;;  %2304 = vmatprep.mubr.f32.mxu0 %v2133_v59  ;;  %v3094_v54 = vpop.permute.xlu0 %3093 }
 0x397   :  { %2305 = vmatmul.mubr.f32.vlgmr.msra.gmra.mxu0 %v2085_v17  ;;  %v3096_v14 = vunpack.i.h.bf16 %v3094_v54  ;;  %v3095_v20 = vunpack.i.l.bf16 %v3094_v54  ;;  %v1651_v17 = vld [vmem:[#allocation3 + $0x22] sm:$0xff] }
 0x398   :  { %v2140_v7 = vsel %vm2084_vm13, %v2124_v0, %v3100_v22  ;;  %v2092_v9 = vsel %vm2084_vm13, %v2075_v42, %v3101_v23  ;;  %2915 = vmatpush3.msra.mxu0 %v4637_v8 }
 0x399   :  { %v3109_v46 = vpop.permute.xlu1 %3108  ;;  %2339 = vmatprep.mubr.f32.mxu1 %v2140_v7  ;;  %2916 = vmatprep.subr.mxu0 %v2183_v60  ;;  %v2102_v41 = vsel %vm1075_vm3, %v4549_v39, %v3095_v20  ;;  %v2052_v48 = vsel %vm1075_vm3, %v4625_v51, %v3096_v14 }
 0x39a   :  { %v3104_v15 = vpop.permute.xlu0 %3103  ;;  %2340 = vmatmul.mubr.f32.gmra.mxu1 %v2092_v9  ;;  %2917 = vmatpush3.msra.mxu0 %v2183_v60  ;;  %v3111_v30 = vunpack.i.h.bf16 %v3109_v46  ;;  %v3110_v38 = vunpack.i.l.bf16 %v3109_v46 }
 0x39b   :  { %2918 = vmatprep.subr.mxu0 %v2182_v24  ;;  %v3106_v11 = vunpack.i.h.bf16 %v3104_v15  ;;  %v3105_v52 = vunpack.i.l.bf16 %v3104_v15  ;;  %v1653_v15 = vld [vmem:[#allocation3 + $0x42] sm:$0xff] }
 0x39c   :  { %2919 = vmatpush3.msra.mxu0 %v2182_v24  ;;  %v2109_v23 = vsel %vm1075_vm3, %v4653_v37, %v3110_v38  ;;  %v2059_v22 = vsel %vm1075_vm3, %v1530_v50, %v3111_v30  ;;  %v1652_v37 = vld [vmem:[#allocation3 + $0x32] sm:$0xff] }
 0x39d   :  { %v3119_v8 = vpop.permute.xlu1 %3118  ;;  %2920 = vmatprep.subr.mxu0 %v2181_v1  ;;  %v2118_v16 = vsel %vm2067_vm12, %v2102_v41, %v3105_v52  ;;  %v2069_v6 = vsel %vm2067_vm12, %v2052_v48, %v3106_v11 }
 0x39e   :  { %v3114_v21 = vpop.permute.xlu0 %3113  ;;  %2921 = vmatpush3.msra.mxu0 %v2181_v1  ;;  %v3121_v2 = vunpack.i.h.bf16 %v3119_v8  ;;  %v3120_v56 = vunpack.i.l.bf16 %v3119_v8 }
 0x39f   :  { %v3116_v55 = vunpack.i.h.bf16 %v3114_v21  ;;  %v3115_v47 = vunpack.i.l.bf16 %v3114_v21 }
 0x3a0   :  { %v2125_v19 = vsel %vm2067_vm12, %v2109_v23, %v3120_v56  ;;  %v2076_v60 = vsel %vm2067_vm12, %v2059_v22, %v3121_v2 }
 0x3a1   :  { %v3129_v53 = vpop.permute.xlu1 %3128  ;;  %v2134_v26 = vsel %vm2084_vm13, %v2118_v16, %v3115_v47  ;;  %v2086_v39 = vsel %vm2084_vm13, %v2069_v6, %v3116_v55 }
 0x3a2   :  { %v3124_v45 = vpop.permute.xlu0 %3123  ;;  %2309 = vmatprep.mubr.f32.mxu0 %v2134_v26  ;;  %v3131_v54 = vunpack.i.h.bf16 %v3129_v53  ;;  %v3130_v28 = vunpack.i.l.bf16 %v3129_v53 }
 0x3a3   :  { %v3126_v51 = vunpack.i.h.bf16 %v3124_v45  ;;  %v3125_v59 = vunpack.i.l.bf16 %v3124_v45  ;;  %2310 = vmatmul.mubr.f32.gmra.mxu0 %v2086_v39 }
 0x3a4   :  { %2922 = vmatprep.mubr.msk.f32.mxu0 %vm1075_vm3, %v1651_v17  ;;  %v2110_v1 = vsel %vm1075_vm3, %v4660_v63, %v3130_v28  ;;  %v2060_v11 = vsel %vm1075_vm3, %v4658_v33, %v3131_v54  ;;  %v1655_v63 = vld [vmem:[#allocation3 + $0x62] sm:$0xff] }
 0x3a5   :  { %v3139_v0 = vpop.permute.xlu1 %3138  ;;  %v2141_v42 = vsel %vm2084_vm13, %v2125_v19, %v3125_v59  ;;  %v2093_v7 = vsel %vm2084_vm13, %v2076_v60, %v3126_v51  ;;  %v1658_v51 = vld [vmem:[#allocation3 + $0x92] sm:$0xff] }
 0x3a6   :  { %v3141_v9 = vunpack.i.h.bf16 %v3139_v0  ;;  %v3140_v24 = vunpack.i.l.bf16 %v3139_v0  ;;  %v3134_v46 = vpop.permute.xlu0 %3133  ;;  %2344 = vmatprep.mubr.f32.mxu1 %v2141_v42 }
 0x3a7   :  { %v3136_v14 = vunpack.i.h.bf16 %v3134_v46  ;;  %v3135_v20 = vunpack.i.l.bf16 %v3134_v46  ;;  %2345 = vmatmul.mubr.f32.gmra.mxu1 %v2093_v7  ;;  %2923 = vmatmul.mubr.msk.f32.vlgmr.msra.gmra.mxu0 %vm1075_vm3, %v1652_v37 }
 0x3a8   :  { %2925 = vmatprep.mubr.msk.f32.mxu0 %vm1075_vm3, %v1653_v15 }
 0x3a9   :  { %v3149_v52 = vpop.permute.xlu1 %3148  ;;  %v2126_v8 = vsel %vm2067_vm12, %v2110_v1, %v3135_v20  ;;  %v2077_v21 = vsel %vm2067_vm12, %v2060_v11, %v3136_v14 }
 0x3aa   :  { %v3144_v41 = vpop.permute.xlu0 %3143  ;;  %v2142_v48 = vsel %vm2084_vm13, %v2126_v8, %v3140_v24  ;;  %v2094_v30 = vsel %vm2084_vm13, %v2077_v21, %v3141_v9  ;;  %v3151_v47 = vunpack.i.h.bf16 %v3149_v52  ;;  %v3150_v2 = vunpack.i.l.bf16 %v3149_v52 }
 0x3ab   :  { %v3146_v38 = vunpack.i.h.bf16 %v3144_v41  ;;  %v3145_v55 = vunpack.i.l.bf16 %v3144_v41  ;;  %2349 = vmatprep.mubr.f32.mxu1 %v2142_v48  ;;  %2926 = vmatmul.mubr.msk.f32.gmra.mxu0 %vm1075_vm3, %v4580_v4 }
 0x3ac   :  { %2350 = vmatmul.mubr.f32.gmra.mxu1 %v2094_v30  ;;  %2928 = vmatprep.mubr.msk.f32.mxu0 %vm1075_vm3, %v1655_v63 }
 0x3ad   :  { %v3159_v33 = vpop.permute.xlu1 %3158  ;;  %v2111_v56 = vsel %vm1075_vm3, %v4667_v43, %v3145_v55  ;;  %v2061_v16 = vsel %vm1075_vm3, %v4646_v13, %v3146_v38  ;;  %v1666_v55 = vld [vmem:[#allocation3 + $0x132] sm:$0xff] }
 0x3ae   :  { %v3154_v6 = vpop.permute.xlu0 %3153  ;;  %v3161_v4 = vunpack.i.h.bf16 %v3159_v33  ;;  %v3160_v26 = vunpack.i.l.bf16 %v3159_v33  ;;  %v2127_v39 = vsel %vm2067_vm12, %v2111_v56, %v3150_v2  ;;  %v2078_v45 = vsel %vm2067_vm12, %v2061_v16, %v3151_v47 }
 0x3af   :  { %v3156_v50 = vunpack.i.h.bf16 %v3154_v6  ;;  %v3155_v53 = vunpack.i.l.bf16 %v3154_v6  ;;  %2929 = vmatmul.mubr.msk.f32.gmra.mxu0 %vm1075_vm3, %v4604_v5 }
 0x3b0   :  { %2931 = vmatprep.mubr.msk.f32.mxu0 %vm1075_vm3, %v4615_v62  ;;  %v2112_v62 = vsel %vm1075_vm3, %v4689_v44, %v3160_v26  ;;  %v2062_v28 = vsel %vm1075_vm3, %v4670_v36, %v3161_v4 }
 0x3b1   :  { %v3169_v43 = vpop.permute.xlu1 %3168  ;;  %v2143_v59 = vsel %vm2084_vm13, %v2127_v39, %v3155_v53  ;;  %v2095_v13 = vsel %vm2084_vm13, %v2078_v45, %v3156_v50 }
 0x3b2   :  { %v3171_v17 = vunpack.i.h.bf16 %v3169_v43  ;;  %v3170_v23 = vunpack.i.l.bf16 %v3169_v43  ;;  %v3164_v22 = vpop.permute.xlu0 %3163  ;;  %2354 = vmatprep.mubr.f32.mxu1 %v2143_v59 }
 0x3b3   :  { %v3166_v5 = vunpack.i.h.bf16 %v3164_v22  ;;  %v3165_v54 = vunpack.i.l.bf16 %v3164_v22  ;;  %2355 = vmatmul.mubr.f32.gmra.mxu1 %v2095_v13  ;;  %2932 = vmatmul.mubr.msk.f32.gmra.mxu0 %vm1075_vm3, %v1658_v51 }
 0x3b4   :  { %2934 = vmatprep.mubr.msk.f32.mxu0 %vm1075_vm3, %v4655_v10 }
 0x3b5   :  { %v3179_v19 = vpop.permute.xlu1 %3178  ;;  %v2128_v60 = vsel %vm2067_vm12, %v2112_v62, %v3165_v54  ;;  %v2079_v0 = vsel %vm2067_vm12, %v2062_v28, %v3166_v5 }
 0x3b6   :  { %v3174_v42 = vpop.permute.xlu0 %3173  ;;  %v2144_v7 = vsel %vm2084_vm13, %v2128_v60, %v3170_v23  ;;  %v2096_v9 = vsel %vm2084_vm13, %v2079_v0, %v3171_v17  ;;  %v3181_v10 = vunpack.i.h.bf16 %v3179_v19  ;;  %v3180_v44 = vunpack.i.l.bf16 %v3179_v19 }
 0x3b7   :  { %v3176_v24 = vunpack.i.h.bf16 %v3174_v42  ;;  %v3175_v46 = vunpack.i.l.bf16 %v3174_v42  ;;  %2359 = vmatprep.mubr.f32.mxu1 %v2144_v7  ;;  %2935 = vmatmul.mubr.msk.f32.gmra.mxu0 %vm1075_vm3, %v4679_v61 }
 0x3b8   :  { %2360 = vmatmul.mubr.f32.gmra.mxu1 %v2096_v9  ;;  %2937 = vmatprep.mubr.msk.f32.mxu0 %vm1075_vm3, %v4686_v32 }
 0x3b9   :  { %v3189_v36 = vpop.permute.xlu1 %3188  ;;  %v2113_v37 = vsel %vm1075_vm3, %v4696_v3, %v3175_v46  ;;  %v2063_v14 = vsel %vm1075_vm3, %v4676_v12, %v3176_v24 }
 0x3ba   :  { %v3184_v20 = vpop.permute.xlu0 %3183  ;;  %v3191_v61 = vunpack.i.h.bf16 %v3189_v36  ;;  %v3190_v11 = vunpack.i.l.bf16 %v3189_v36  ;;  %v2129_v32 = vsel %vm2067_vm12, %v2113_v37, %v3180_v44  ;;  %v2080_v52 = vsel %vm2067_vm12, %v2063_v14, %v3181_v10 }
 0x3bb   :  { %v3186_v15 = vunpack.i.h.bf16 %v3184_v20  ;;  %v3185_v1 = vunpack.i.l.bf16 %v3184_v20  ;;  %2938 = vmatmul.mubr.msk.f32.gmra.mxu0 %vm1075_vm3, %v4709_v34 }
 0x3bc   :  { %2940 = vmatprep.mubr.msk.f32.mxu0 %vm1075_vm3, %v4716_v18  ;;  %v2114_v18 = vsel %vm1075_vm3, %v4719_v25, %v3190_v11  ;;  %v2064_v38 = vsel %vm1075_vm3, %v4699_v40, %v3191_v61 }
 0x3bd   :  { %v3199_v8 = vpop.permute.xlu1 %3198  ;;  %v2145_v3 = vsel %vm2084_vm13, %v2129_v32, %v3185_v1  ;;  %v2097_v12 = vsel %vm2084_vm13, %v2080_v52, %v3186_v15 }
 0x3be   :  { %v3201_v21 = vunpack.i.h.bf16 %v3199_v8  ;;  %v3200_v41 = vunpack.i.l.bf16 %v3199_v8  ;;  %v3194_v48 = vpop.permute.xlu0 %3193  ;;  %2364 = vmatprep.mubr.f32.mxu1 %v2145_v3 }
 0x3bf   :  { %v3196_v30 = vunpack.i.h.bf16 %v3194_v48  ;;  %v3195_v34 = vunpack.i.l.bf16 %v3194_v48  ;;  %2365 = vmatmul.mubr.f32.gmra.mxu1 %v2097_v12  ;;  %2941 = vmatmul.mubr.msk.f32.gmra.mxu0 %vm1075_vm3, %v4737_v57 }
 0x3c0   :  { %2943 = vmatprep.mubr.msk.f32.mxu0 %vm1075_vm3, %v4743_v31 }
 0x3c1   :  { %v3209_v63 = vpop.permute.xlu1 %3208  ;;  %v2130_v47 = vsel %vm2067_vm12, %v2114_v18, %v3195_v34  ;;  %v2081_v2 = vsel %vm2067_vm12, %v2064_v38, %v3196_v30 }
 0x3c2   :  { %v3204_v33 = vpop.permute.xlu0 %3203  ;;  %v2146_v56 = vsel %vm2084_vm13, %v2130_v47, %v3200_v41  ;;  %v2098_v57 = vsel %vm2084_vm13, %v2081_v2, %v3201_v21  ;;  %v3211_v25 = vunpack.i.h.bf16 %v3209_v63  ;;  %v3210_v31 = vunpack.i.l.bf16 %v3209_v63  ;;  %v4923_v21 = vld [vmem:[%s5097_s6] ss:$0 sm:$0xff] }
 0x3c3   :  { %v3206_v16 = vunpack.i.h.bf16 %v3204_v33  ;;  %v3205_v6 = vunpack.i.l.bf16 %v3204_v33  ;;  %2369 = vmatprep.mubr.f32.mxu1 %v2146_v56  ;;  %2944 = vmatmul.mubr.msk.f32.gmra.mxu0 %vm1075_vm3, %v1666_v55 }
 0x3c4   :  { %2370 = vmatmul.mubr.f32.gmra.mxu1 %v2098_v57 }
 0x3c5   :  { %v3219_v40 = vpop.permute.xlu1 %3218  ;;  %v2115_v50 = vsel %vm1075_vm3, %v4726_v27, %v3205_v6  ;;  %v2065_v53 = vsel %vm1075_vm3, %v4706_v49, %v3206_v16 }
 0x3c6   :  { %v3214_v4 = vpop.permute.xlu0 %3213  ;;  %v3221_v45 = vunpack.i.h.bf16 %v3219_v40  ;;  %v3220_v51 = vunpack.i.l.bf16 %v3219_v40  ;;  %v2131_v43 = vsel %vm2067_vm12, %v2115_v50, %v3210_v31  ;;  %v2082_v59 = vsel %vm2067_vm12, %v2065_v53, %v3211_v25 }
 0x3c7   :  { %v3216_v26 = vunpack.i.h.bf16 %v3214_v4  ;;  %v3215_v39 = vunpack.i.l.bf16 %v3214_v4 }
 0x3c8   :  { %v2116_v62 = vsel %vm1075_vm3, %v4746_v35, %v3220_v51  ;;  %v2066_v28 = vsel %vm1075_vm3, %v4729_v58, %v3221_v45 }
 0x3c9   :  { %v3229_v13 = vpop.permute.xlu1 %3228  ;;  %v2147_v17 = vsel %vm2084_vm13, %v2131_v43, %v3215_v39  ;;  %v2099_v23 = vsel %vm2084_vm13, %v2082_v59, %v3216_v26 }
 0x3ca   :  { %v3231_v22 = vunpack.i.h.bf16 %v3229_v13  ;;  %v3230_v5 = vunpack.i.l.bf16 %v3229_v13  ;;  %v3224_v27 = vpop.permute.xlu0 %3223  ;;  %2374 = vmatprep.mubr.f32.mxu1 %v2147_v17 }
 0x3cb   :  { %v3226_v54 = vunpack.i.h.bf16 %v3224_v27  ;;  %v3225_v49 = vunpack.i.l.bf16 %v3224_v27  ;;  %2375 = vmatmul.mubr.f32.gmra.mxu1 %v2099_v23 }
 0x3cd   :  { %v2132_v19 = vsel %vm2067_vm12, %v2116_v62, %v3225_v49  ;;  %v2083_v60 = vsel %vm2067_vm12, %v2066_v28, %v3226_v54 }
 0x3ce   :  { %v2148_v0 = vsel %vm2084_vm13, %v2132_v19, %v3230_v5  ;;  %v2100_v42 = vsel %vm2084_vm13, %v2083_v60, %v3231_v22 }
 0x3cf   :  { %2379 = vmatprep.mubr.f32.mxu1 %v2148_v0 }
 0x3d0   :  { %2380 = vmatmul.mubr.f32.gmra.mxu1 %v2100_v42 }
 0x437   :  { %v2818_v7 = vpop.f32.mrf.mxu1 }
 0x439   :  { %v2819_v9 = vpop.f32.mrf.mxu1 }
 0x43a   :  { %v2820_v8 = vadd.f32 %v2819_v9, %v2818_v7 }
 0x43c   :  { %v2821_v24 = vpop.f32.mrf.mxu1  ;;  %v2317_v33 = vadd.f32 %v2820_v8, %v4923_v21 }
 0x43e   :  { %v2822_v46 = vpop.f32.mrf.mxu1 }
 0x43f   :  { %v2823_v3 = vadd.f32 %v2822_v46, %v2821_v24 }
 0x441   :  { %v2322_v47 = vadd.f32 %v2823_v3, %v4923_v21 }
 0x443   :  { %v2824_v10 = vpop.f32.mrf.mxu1 }
 0x445   :  { %v2825_v44 = vpop.f32.mrf.mxu1 }
 0x446   :  { %v2826_v63 = vadd.f32 %v2825_v44, %v2824_v10 }
 0x448   :  { %v2827_v35 = vpop.f32.mrf.mxu1  ;;  %v2327_v13 = vadd.f32 %v2826_v63, %v4923_v21 }
 0x44a   :  { %v2828_v36 = vpop.f32.mrf.mxu1 }
 0x44b   :  { %v2829_v25 = vadd.f32 %v2828_v36, %v2827_v35 }
 0x44d   :  { %v2332_v27 = vadd.f32 %v2829_v25, %v4923_v21 }
 0x44e   :  { %v2830_v37 = vpop.f32.mrf.mxu1 }
 0x450   :  { %v2831_v14 = vpop.f32.mrf.mxu1 }
 0x451   :  { %v2832_v17 = vadd.f32 %v2831_v14, %v2830_v37 }
 0x453   :  { %v2337_v36 = vadd.f32 %v2832_v17, %v4923_v21 }
 0x457   :  { %v2812_v58 = vpop.f32.mrf.mxu0 }
 0x459   :  { %v2813_v20 = vpop.f32.mrf.mxu0 }
 0x45a   :  { %v2833_v15 = vpop.f32.mrf.mxu1  ;;  %v2814_v61 = vadd.f32 %v2813_v20, %v2812_v58 }
 0x45c   :  { %v2834_v11 = vpop.f32.mrf.mxu1  ;;  %v2307_v30 = vadd.f32 %v2814_v61, %v4923_v21 }
 0x45d   :  { %v2835_v9 = vadd.f32 %v2834_v11, %v2833_v15 }
 0x463   :  { %v2815_v1 = vpop.f32.mrf.mxu0 }
 0x465   :  { %v2816_v32 = vpop.f32.mrf.mxu0 }
 0x466   :  { %v2817_v52 = vadd.f32 %v2816_v32, %v2815_v1  ;;  %v2342_v32 = vadd.f32 %v2835_v9, %v4923_v21 }
 0x467   :  { %v2836_v12 = vpop.f32.mrf.mxu1  ;;  %v2924_v41 = vpop.f32.mrf.mxu0 }
 0x468   :  { %v2312_v48 = vadd.f32 %v2817_v52, %v4923_v21 }
 0x469   :  { %v2837_v34 = vpop.f32.mrf.mxu1  ;;  %v2451_v18 = vpop.f32.mrf.mxu0 }
 0x46a   :  { %v4927_v38 = vadd.f32 %v2924_v41, %v2312_v48  ;;  %v4929_v55 = vadd.f32 %v2451_v18, %v2307_v30  ;;  %v2838_v20 = vadd.f32 %v2837_v34, %v2836_v12 }
 0x46b   :  { %v2927_v2 = vpop.f32.mrf.mxu0 }
 0x46c   :  { %v2531_v56 = vsel %vm1075_vm3, %v4927_v38, 0.0  ;;  %v2568_v57 = vmul.f32 %v4927_v38, %v4927_v38  ;;  %v2530_v16 = vsel %vm1075_vm3, %v4929_v55, 0.0  ;;  %v2567_v6 = vmul.f32 %v4929_v55, %v4929_v55  ;;  %v2839_v40 = vpop.f32.mrf.mxu1 }
 0x46d   :  { %v4941_v31 = vadd.f32 %v2927_v2, %v2322_v47  ;;  %v2461_v50 = vpop.f32.mrf.mxu0  ;;  %v2532_v39 = vadd.f32 %v2531_v56, %v2530_v16  ;;  %v2347_v18 = vadd.f32 %v2838_v20, %v4923_v21 }
 0x46e   :  { %v2584_v53 = vsel %vm1075_vm3, %v2568_v57, 0.0  ;;  %v2583_v4 = vsel %vm1075_vm3, %v2567_v6, 0.0  ;;  %v4945_v26 = vadd.f32 %v2461_v50, %v2317_v33  ;;  %v2840_v5 = vpop.f32.mrf.mxu1 }
 0x46f   :  { %v2930_v45 = vpop.f32.mrf.mxu0  ;;  %v2570_v51 = vmul.f32 %v4941_v31, %v4941_v31  ;;  %v2585_v23 = vadd.f32 %v2584_v53, %v2583_v4  ;;  %v2535_v49 = vsel %vm1075_vm3, %v4941_v31, 0.0  ;;  %v2841_v47 = vadd.f32 %v2840_v5, %v2839_v40 }
 0x470   :  { %v2533_v43 = vsel %vm1075_vm3, %v4945_v26, 0.0  ;;  %v2569_v59 = vmul.f32 %v4945_v26, %v4945_v26  ;;  %v4960_v60 = vadd.f32 %v2930_v45, %v2332_v27 }
 0x471   :  { %v2534_v22 = vadd.f32 %v2533_v43, %v2532_v39  ;;  %v2471_v54 = vpop.f32.mrf.mxu0  ;;  %v2588_v24 = vsel %vm1075_vm3, %v2570_v51, 0.0  ;;  %v2352_v39 = vadd.f32 %v2841_v47, %v4923_v21 }
 0x472   :  { %v2586_v62 = vsel %vm1075_vm3, %v2569_v59, 0.0  ;;  %v4958_v28 = vadd.f32 %v2471_v54, %v2327_v13  ;;  %v2572_v15 = vmul.f32 %v4960_v60, %v4960_v60  ;;  %v2539_v52 = vsel %vm1075_vm3, %v4960_v60, 0.0 }
 0x473   :  { %v2587_v19 = vadd.f32 %v2586_v62, %v2585_v23  ;;  %v2536_v0 = vadd.f32 %v2535_v49, %v2534_v22  ;;  %v2842_v42 = vpop.f32.mrf.mxu1  ;;  %v2933_v7 = vpop.f32.mrf.mxu0 }
 0x474   :  { %v2537_v46 = vsel %vm1075_vm3, %v4958_v28, 0.0  ;;  %v2571_v10 = vmul.f32 %v4958_v28, %v4958_v28  ;;  %v4978_v48 = vadd.f32 %v2933_v7, %v2342_v32  ;;  %v2592_v30 = vsel %vm1075_vm3, %v2572_v15, 0.0 }
 0x475   :  { %v2589_v44 = vadd.f32 %v2588_v24, %v2587_v19  ;;  %v2843_v35 = vpop.f32.mrf.mxu1  ;;  %v2481_v37 = vpop.f32.mrf.mxu0  ;;  %v2538_v58 = vadd.f32 %v2537_v46, %v2536_v0 }
 0x476   :  { %v2590_v14 = vsel %vm1075_vm3, %v2571_v10, 0.0  ;;  %v4971_v1 = vadd.f32 %v2481_v37, %v2337_v36  ;;  %v2574_v16 = vmul.f32 %v4978_v48, %v4978_v48  ;;  %v2844_v25 = vadd.f32 %v2843_v35, %v2842_v42 }
 0x477   :  { %v2936_v61 = vpop.f32.mrf.mxu0  ;;  %v2591_v11 = vadd.f32 %v2590_v14, %v2589_v44  ;;  %v2540_v12 = vadd.f32 %v2539_v52, %v2538_v58  ;;  %v2543_v4 = vsel %vm1075_vm3, %v4978_v48, 0.0 }
 0x478   :  { %v2573_v8 = vmul.f32 %v4971_v1, %v4971_v1  ;;  %v2845_v3 = vpop.f32.mrf.mxu1  ;;  %v2541_v34 = vsel %vm1075_vm3, %v4971_v1, 0.0  ;;  %v2596_v59 = vsel %vm1075_vm3, %v2574_v16, 0.0  ;;  %v4995_v17 = vadd.f32 %v2936_v61, %v2352_v39 }
 0x479   :  { %v2491_v41 = vpop.f32.mrf.mxu0  ;;  %v2593_v63 = vadd.f32 %v2592_v30, %v2591_v11  ;;  %v2542_v6 = vadd.f32 %v2541_v34, %v2540_v12  ;;  %v2357_v22 = vadd.f32 %v2844_v25, %v4923_v21 }
 0x47a   :  { %v2594_v2 = vsel %vm1075_vm3, %v2573_v8, 0.0  ;;  %v4985_v33 = vadd.f32 %v2491_v41, %v2347_v18  ;;  %v2846_v56 = vpop.f32.mrf.mxu1  ;;  %v2576_v9 = vmul.f32 %v4995_v17, %v4995_v17  ;;  %v2547_v44 = vsel %vm1075_vm3, %v4995_v17, 0.0 }
 0x47b   :  { %v2939_v57 = vpop.f32.mrf.mxu0  ;;  %v2595_v53 = vadd.f32 %v2594_v2, %v2593_v63  ;;  %v2847_v45 = vadd.f32 %v2846_v56, %v2845_v3  ;;  %v2544_v13 = vadd.f32 %v2543_v4, %v2542_v6 }
 0x47c   :  { %v2575_v40 = vmul.f32 %v4985_v33, %v4985_v33  ;;  %v2545_v23 = vsel %vm1075_vm3, %v4985_v33, 0.0  ;;  %v2600_v20 = vsel %vm1075_vm3, %v2576_v9, 0.0 }
 0x47d   :  { %v2501_v51 = vpop.f32.mrf.mxu0  ;;  %v2597_v27 = vadd.f32 %v2596_v59, %v2595_v53  ;;  %v2362_v62 = vadd.f32 %v2847_v45, %v4923_v21  ;;  %v2546_v42 = vadd.f32 %v2545_v23, %v2544_v13 }
 0x47e   :  { %v2598_v49 = vsel %vm1075_vm3, %v2575_v40, 0.0  ;;  %v5002_v19 = vadd.f32 %v2501_v51, %v2357_v22 }
 0x47f   :  { %v2848_v50 = vpop.f32.mrf.mxu1  ;;  %v2942_v0 = vpop.f32.mrf.mxu0  ;;  %v2599_v10 = vadd.f32 %v2598_v49, %v2597_v27  ;;  %v5009_v35 = vadd.f32 %v2939_v57, %v2362_v62  ;;  %v2548_v14 = vadd.f32 %v2547_v44, %v2546_v42 }
 0x480   :  { %v2577_v36 = vmul.f32 %v5002_v19, %v5002_v19  ;;  %v2549_v15 = vsel %vm1075_vm3, %v5002_v19, 0.0 }
 0x481   :  { %v2849_v43 = vpop.f32.mrf.mxu1  ;;  %v2511_v37 = vpop.f32.mrf.mxu0  ;;  %v2601_v52 = vadd.f32 %v2600_v20, %v2599_v10  ;;  %v2578_v8 = vmul.f32 %v5009_v35, %v5009_v35  ;;  %v2550_v30 = vadd.f32 %v2549_v15, %v2548_v14  ;;  %v2551_v18 = vsel %vm1075_vm3, %v5009_v35, 0.0 }
 0x482   :  { %v2850_v5 = vadd.f32 %v2849_v43, %v2848_v50  ;;  %v2602_v3 = vsel %vm1075_vm3, %v2577_v36, 0.0 }
 0x483   :  { %v2945_v32 = vpop.f32.mrf.mxu0  ;;  %v2603_v2 = vadd.f32 %v2602_v3, %v2601_v52  ;;  %v2604_v16 = vsel %vm1075_vm3, %v2578_v8, 0.0  ;;  %v2552_v50 = vadd.f32 %v2551_v18, %v2550_v30 }
 0x484   :  { %v2851_v54 = vpop.f32.mrf.mxu1  ;;  %v2367_v24 = vadd.f32 %v2850_v5, %v4923_v21 }
 0x485   :  { %v2521_v47 = vpop.f32.mrf.mxu0  ;;  %v2605_v43 = vadd.f32 %v2604_v16, %v2603_v2 }
 0x486   :  { %v2852_v7 = vpop.f32.mrf.mxu1  ;;  %v5017_v61 = vadd.f32 %v2511_v37, %v2367_v24 }
 0x487   :  { %v2853_v46 = vadd.f32 %v2852_v7, %v2851_v54 }
 0x488   :  { %v2579_v63 = vmul.f32 %v5017_v61, %v5017_v61  ;;  %v2553_v6 = vsel %vm1075_vm3, %v5017_v61, 0.0 }
 0x489   :  { %v2372_v58 = vadd.f32 %v2853_v46, %v4923_v21  ;;  %v2554_v51 = vadd.f32 %v2553_v6, %v2552_v50 }
 0x48a   :  { %v2606_v39 = vsel %vm1075_vm3, %v2579_v63, 0.0 }
 0x48b   :  { %v2854_v11 = vpop.f32.mrf.mxu1  ;;  %v5022_v41 = vadd.f32 %v2942_v0, %v2372_v58  ;;  %v2607_v5 = vadd.f32 %v2606_v39, %v2605_v43 }
 0x48d   :  { %v2855_v12 = vpop.f32.mrf.mxu1  ;;  %v2580_v25 = vmul.f32 %v5022_v41, %v5022_v41  ;;  %v2555_v40 = vsel %vm1075_vm3, %v5022_v41, 0.0 }
 0x48e   :  { %v2856_v34 = vadd.f32 %v2855_v12, %v2854_v11  ;;  %v2556_v27 = vadd.f32 %v2555_v40, %v2554_v51 }
 0x48f   :  { %v2608_v23 = vsel %vm1075_vm3, %v2580_v25, 0.0 }
 0x490   :  { %v2857_v56 = vpop.f32.mrf.mxu1  ;;  %v2377_v57 = vadd.f32 %v2856_v34, %v4923_v21  ;;  %v2609_v0 = vadd.f32 %v2608_v23, %v2607_v5 }
 0x492   :  { %v5034_v53 = vadd.f32 %v2521_v47, %v2377_v57  ;;  %v2858_v4 = vpop.f32.mrf.mxu1  ;;  %v2625_v47 = vld [vmem:[%s5098_s7] sm:$0x1]  ;;  %s3270_s7 = smov [#allocation4]  }
 0x493   :  { %v2859_v45 = vadd.f32 %v2858_v4, %v2857_v56  ;;  %v2629_v57 = vld [vmem:[%s5099_s8] sm:$0x1]  ;;  %s2713_s8 = sshll.u32 %s3270_s7, 4  ;;  %s2714_s8 = int_to_ptr.vmem [resolvable:$true] %s2713_s8 }
 0x494   :  { %v2581_v59 = vmul.f32 %v5034_v53, %v5034_v53  ;;  %v2557_v13 = vsel %vm1075_vm3, %v5034_v53, 0.0  ;;  %s3236_s20 = scalar_lea.vmem %s2714_s8, 2048  ;;  %p3241_p1 = scmp.lt.s32.totalorder %s2714_s8, %s2714_s8 }
 0x495   :  { %v2382_v22 = vadd.f32 %v2859_v45, %v4923_v21  ;;  %v2558_v62 = vadd.f32 %v2557_v13, %v2556_v27  ;;  %p3237_p0 = scmp.ne.s32.totalorder %s2714_s8, %s3236_s20  ;;  %p3242_p2 = scmp.lt.s32.totalorder %s3236_s20, %s3236_s20 }
 0x496   :  { %v2610_v54 = vsel %vm1075_vm3, %v2581_v59, 0.0 }
 0x497   :  { %v2527_v49 = vadd.f32 %v2945_v32, %v2382_v22  ;;  %v2611_v9 = vadd.f32 %v2610_v54, %v2609_v0  ;;  %p3243_p3 = por %p3242_p2, %p3241_p1 }
 0x499   :  { %v2559_v42 = vsel %vm1075_vm3, %v2527_v49, 0.0  ;;  %v2582_v7 = vmul.f32 %v2527_v49, %v2527_v49  ;;  %p3244_p4 = pnand %p3243_p3, %p3237_p0 }
 0x49a   :  { %v2560_v24 = vadd.f32 %v2559_v42, %v2558_v62 }
 0x49b   :  { %v2612_v46 = vsel %vm1075_vm3, %v2582_v7, 0.0 }
 0x49c   :  { %v2561_v10 = vrot.slane %v2560_v24, 4  ;;  %v2613_v44 = vadd.f32 %v2612_v46, %v2611_v9 }
 0x49e   :  { %v2562_v36 = vadd.f32 %v2561_v10, %v2560_v24  ;;  %v2614_v37 = vrot.slane %v2613_v44, 4 }
 0x4a0   :  { %v2563_v58 = vrot.slane %v2562_v36, 2  ;;  %v2615_v21 = vadd.f32 %v2614_v37, %v2613_v44 }
 0x4a2   :  { %v2564_v14 = vadd.f32 %v2563_v58, %v2562_v36  ;;  %v2616_v20 = vrot.slane %v2615_v21, 2 }
 0x4a4   :  { %v2565_v15 = vrot.slane %v2564_v14, 1  ;;  %v2617_v11 = vadd.f32 %v2616_v20, %v2615_v21 }
 0x4a6   :  { %v2566_v32 = vadd.f32 %v2565_v15, %v2564_v14  ;;  %v2618_v52 = vrot.slane %v2617_v11, 1 }
 0x4a8   :  { %v2619_v8 = vadd.f32 %v2618_v52, %v2617_v11  ;;  %v2620_v3 = vmul.f32 0.0078125, %v2566_v32 }
 0x4aa   :  { %v2621_v12 = vmul.f32 0.0078125, %v2619_v8  ;;  %v2622_v30 = vmul.f32 %v2620_v3, %v2620_v3 }
 0x4ac   :  { %v2623_v34 = vsub.f32 %v2621_v12, %v2622_v30 }
 0x4ae   :  { %v2624_v18 = vmax.f32 %v2623_v34, 0.0 }
 0x4b0   :  { %v2626_v63 = vadd.f32 1e-05, %v2624_v18 }
 0x4b2   :  { %3234 = vrsqrt.f32 %v2626_v63 }
 0x4bf   :  { %v3235_v2 = vpop.eup %3234 }
 0x4c0   :  { %v2628_v56 = vmul.f32 %v3235_v2, %v2625_v47 }
 0x4c2   :  { %v2630_v16 = vmul.f32 %v2628_v56, %v2620_v3  ;;  %v2636_v6 = vrot.slane %v2628_v56, %v4401_v29 }
 0x4c4   :  { %v2631_v25 = vsub.f32 %v2629_v57, %v2630_v16  ;;  %v2653_v50 = vmul.f32 %v2636_v6, %v2527_v49  ;;  %v2638_v4 = vmul.f32 %v2636_v6, %v4929_v55  ;;  %v2639_v39 = vmul.f32 %v2636_v6, %v4927_v38 }
 0x4c5   :  { %v2640_v40 = vmul.f32 %v2636_v6, %v4945_v26  ;;  %v2641_v45 = vmul.f32 %v2636_v6, %v4941_v31  ;;  %v2642_v51 = vmul.f32 %v2636_v6, %v4958_v28  ;;  %v2643_v43 = vmul.f32 %v2636_v6, %v4960_v60 }
 0x4c6   :  { %v2658_v59 = vrot.slane %v2631_v25, %v4401_v29  ;;  %v2644_v13 = vmul.f32 %v2636_v6, %v4971_v1  ;;  %v2645_v23 = vmul.f32 %v2636_v6, %v4978_v48  ;;  %v2646_v22 = vmul.f32 %v2636_v6, %v4985_v33 }
 0x4c7   :  { %v2647_v55 = vmul.f32 %v2636_v6, %v4995_v17  ;;  %v2648_v38 = vmul.f32 %v2636_v6, %v5002_v19  ;;  %v2649_v26 = vmul.f32 %v2636_v6, %v5009_v35  ;;  %v2650_v31 = vmul.f32 %v2636_v6, %v5017_v61 }
 0x4c8   :  { %v2675_v5 = vadd.f32 %v2658_v59, %v2653_v50  ;;  %v2651_v28 = vmul.f32 %v2636_v6, %v5022_v41  ;;  %v2652_v60 = vmul.f32 %v2636_v6, %v5034_v53  ;;  %v2660_v29 = vadd.f32 %v2658_v59, %v2638_v4 }
 0x4c9   :  { %v2661_v27 = vadd.f32 %v2658_v59, %v2639_v39  ;;  %v2662_v1 = vadd.f32 %v2658_v59, %v2640_v40  ;;  %v2663_v54 = vadd.f32 %v2658_v59, %v2641_v45  ;;  %v2664_v48 = vadd.f32 %v2658_v59, %v2642_v51 }
 0x4ca   :  { %v2691_v49 = vmax.f32 %v2675_v5, 0.0  ;;  %v2665_v33 = vadd.f32 %v2658_v59, %v2643_v43  ;;  %v2666_v62 = vadd.f32 %v2658_v59, %v2644_v13  ;;  %v2667_v17 = vadd.f32 %v2658_v59, %v2645_v23 }
 0x4cb   :  { %v2668_v0 = vadd.f32 %v2658_v59, %v2646_v22  ;;  %v2669_v19 = vadd.f32 %v2658_v59, %v2647_v55  ;;  %v2670_v42 = vadd.f32 %v2658_v59, %v2648_v38  ;;  %v2671_v35 = vadd.f32 %v2658_v59, %v2649_v26 }
 0x4cc   :  { %2707 = vst.msk [vmem:[#allocation4 + $0x78] sm:$0xff] %vm1075_vm3, %v2691_v49  ;;  %v2672_v61 = vadd.f32 %v2658_v59, %v2650_v31  ;;  %v2673_v7 = vadd.f32 %v2658_v59, %v2651_v28  ;;  %v2674_v41 = vadd.f32 %v2658_v59, %v2652_v60  ;;  %v2676_v9 = vmax.f32 %v2660_v29, 0.0 }
 0x4cd   :  { %v2677_v53 = vmax.f32 %v2661_v27, 0.0  ;;  %v2678_v24 = vmax.f32 %v2662_v1, 0.0  ;;  %v2679_v46 = vmax.f32 %v2663_v54, 0.0  ;;  %v2680_v10 = vmax.f32 %v2664_v48, 0.0 }
 0x4ce   :  { %v2681_v44 = vmax.f32 %v2665_v33, 0.0  ;;  %v2682_v36 = vmax.f32 %v2666_v62, 0.0  ;;  %v2683_v37 = vmax.f32 %v2667_v17, 0.0  ;;  %v2684_v58 = vmax.f32 %v2668_v0, 0.0  ;;  %2692 = vst.msk [vmem:[#allocation4] sm:$0xff] %vm1075_vm3, %v2676_v9 }
 0x4cf   :  { %v2685_v21 = vmax.f32 %v2669_v19, 0.0  ;;  %v2686_v14 = vmax.f32 %v2670_v42, 0.0  ;;  %v2687_v20 = vmax.f32 %v2671_v35, 0.0  ;;  %v2688_v15 = vmax.f32 %v2672_v61, 0.0  ;;  %2693 = vst.msk [vmem:[#allocation4 + $0x8] sm:$0xff] %vm1075_vm3, %v2677_v53  ;;  %2694 = vst.msk [vmem:[#allocation4 + $0x10] sm:$0xff] %vm1075_vm3, %v2678_v24 }
 0x4d0   :  { %2695 = vst.msk [vmem:[#allocation4 + $0x18] sm:$0xff] %vm1075_vm3, %v2679_v46  ;;  %2696 = vst.msk [vmem:[#allocation4 + $0x20] sm:$0xff] %vm1075_vm3, %v2680_v10  ;;  %v2689_v11 = vmax.f32 %v2673_v7, 0.0  ;;  %v2690_v32 = vmax.f32 %v2674_v41, 0.0 }
 0x4d1   :  { %2697 = vst.msk [vmem:[#allocation4 + $0x28] sm:$0xff] %vm1075_vm3, %v2681_v44  ;;  %2698 = vst.msk [vmem:[#allocation4 + $0x30] sm:$0xff] %vm1075_vm3, %v2682_v36 }
 0x4d2   :  { %2699 = vst.msk [vmem:[#allocation4 + $0x38] sm:$0xff] %vm1075_vm3, %v2683_v37  ;;  %2700 = vst.msk [vmem:[#allocation4 + $0x40] sm:$0xff] %vm1075_vm3, %v2684_v58 }
 0x4d3   :  { %2701 = vst.msk [vmem:[#allocation4 + $0x48] sm:$0xff] %vm1075_vm3, %v2685_v21  ;;  %2702 = vst.msk [vmem:[#allocation4 + $0x50] sm:$0xff] %vm1075_vm3, %v2686_v14 }
 0x4d4   :  { %2703 = vst.msk [vmem:[#allocation4 + $0x58] sm:$0xff] %vm1075_vm3, %v2687_v20  ;;  %2704 = vst.msk [vmem:[#allocation4 + $0x60] sm:$0xff] %vm1075_vm3, %v2688_v15 }
 0x4d5   :  { %2705 = vst.msk [vmem:[#allocation4 + $0x68] sm:$0xff] %vm1075_vm3, %v2689_v11  ;;  %2706 = vst.msk [vmem:[#allocation4 + $0x70] sm:$0xff] %vm1075_vm3, %v2690_v32 }
 0x4d6   :  { %3247 = shalt.err (!%p3244_p4)
}
 0x4d7   :  { %s3271_s21 = smov 128  }
 0x4d8   :  { %2719 = dma.vmem_to_hbm [thread:$0]  %s2714_s8, 2048, %s5100_s9, [#allocation5], %s3271_s21, %s3271_s21, %s3261_s15  }
 0x4d9   :  { %3256 = dma.done.wait [#allocation5], 2048  }
 0x4da   :  { %3257 = vsyncadd [#allocation5], 4294965248 }
 0x4db   :  { %2723 = vsyncpa [#allocation5], 1 }

</bundles_post_ra>
